<compile_context>
chip_gen: v7x
topology: tpu7x:2x2x1
jax: 0.10.0
libtpu: 0.0.40
codegen_flags: <defaults>
</compile_context>

<pallas_src>
import functools

import jax
import jax.numpy as jnp
from jax import lax
from jax.experimental import pallas as pl
from jax.experimental.pallas import tpu as pltpu


# ------------------------------ helpers -------------------------------------
def _round_up(x, m):
    return ((x + m - 1) // m) * m


def _pad_gate_matrix(w_t, h, h_pad, in_pad=None):
    """w_t: (in, 3h), PyTorch gate order [r|z|n] -> (in_pad or in, 3*h_pad)."""
    in_f = w_t.shape[0]
    w3 = w_t.reshape(in_f, 3, h)
    w3 = jnp.pad(w3, ((0, 0), (0, 0), (0, h_pad - h)))
    w2 = w3.reshape(in_f, 3 * h_pad)
    if in_pad is not None and in_pad != in_f:
        w2 = jnp.pad(w2, ((0, in_pad - in_f), (0, 0)))
    return w2


def _pad_gate_vector(b, h, h_pad):
    """b: (3h,) -> (3*h_pad,) with each gate zero-padded to h_pad."""
    return jnp.pad(b.reshape(3, h), ((0, 0), (0, h_pad - h))).reshape(3 * h_pad)


def _const_spec(shape):
    """Grid-invariant operand: full-array block, single-buffered if supported."""
    idx = lambda b, c, _n=len(shape): (0,) * _n
    try:
        return pl.BlockSpec(shape, idx, pipeline_mode=pl.Buffered(1))
    except (TypeError, AttributeError):
        # older JAX without pipeline_mode: fall back to default double-buffering
        return pl.BlockSpec(shape, idx)


# ------------------------- fused GRU-stack kernel ----------------------------
def _gru_stack_kernel(x_ref, wih0_ref, bih0_ref, wih_ref, bih_ref, whh_ref,
                      bhhn_ref, h0_ref, y_ref, hT_ref, h_st, chunk, gi_s,
                      *, num_layers, h_pad, t_blk, b_tile, seq_len, seq_pad,
                      unroll):
    """One grid step = t_blk timesteps of ALL GRU layers for one batch tile.

    x_ref   : (t_blk, b_tile, e_pad) bf16   embedded inputs (time-major chunk)
    wih0_ref: (e_pad, 3*h_pad) bf16         layer-0 input-proj weights
    bih0_ref: (1, 3*h_pad) f32              layer-0 merged b_ih(+b_hh r,z)
    wih_ref : (max(L-1,1), h_pad, 3*h_pad) bf16   input-proj weights, layers>=1
    bih_ref : (max(L-1,1), 1, 3*h_pad) f32        merged biases, layers>=1
    whh_ref : (L, h_pad, 3*h_pad) bf16      recurrent weights (no bias)
    bhhn_ref: (L, 1, h_pad) f32             hidden bias of the n gate
    h0_ref  : (L, b_tile, h_pad) f32        initial hidden state
    y_ref   : (t_blk, b_tile, h_pad) f32    last-layer outputs for this chunk
    hT_ref  : (L, b_tile, h_pad) f32        final hidden state (last chunk)
    h_st    : (L, b_tile, h_pad) f32        carried hidden state (VMEM)
    chunk   : (t_blk, b_tile, h_pad) bf16   inter-layer activations (VMEM)
    gi_s    : (t_blk, b_tile, 3*h_pad) bf16 per-layer gate pre-acts (VMEM)
    """
    c = pl.program_id(1)
    last_c = pl.num_programs(1) - 1
    H = h_pad
    needs_mask = seq_pad != seq_len  # static
    t_base = c * t_blk

    @pl.when(c == 0)
    def _():
        h_st[...] = h0_ref[...].astype(jnp.float32)

    def project(x_bf16, w, b):
        # Chunk-level input projection: one MXU matmul per (chunk, layer).
        m = t_blk * b_tile
        gi = jnp.dot(x_bf16.reshape(m, x_bf16.shape[-1]), w,
                     preferred_element_type=jnp.float32) + b
        gi_s[...] = gi.reshape(t_blk, b_tile, 3 * H).astype(gi_s.dtype)

    def run_layer(layer, masked):
        is_last_layer = layer == num_layers - 1
        whh_l = whh_ref[layer]                                    # (H, 3H) bf16
        bhhn_l = jnp.broadcast_to(bhhn_ref[layer], (b_tile, H))   # hoisted bcast

        def step(i, carry):
            h_prev = h_st[layer]                                  # (b_tile, H) f32
            gi = gi_s[i]                                          # (b_tile, 3H) bf16
            gh = jnp.dot(h_prev.astype(jnp.bfloat16), whh_l,
                         preferred_element_type=jnp.float32)
            r = jax.nn.sigmoid(gi[:, 0:H] + gh[:, 0:H])
            z = jax.nn.sigmoid(gi[:, H:2 * H] + gh[:, H:2 * H])
            n = jnp.tanh(gi[:, 2 * H:3 * H] + r * (gh[:, 2 * H:3 * H] + bhhn_l))
            h_new = n + z * (h_prev - n)           # == (1-z)*n + z*h, 1 op less
            if masked:
                h_new = jnp.where(t_base + i < seq_len, h_new, h_prev)
            h_st[layer] = h_new
            if is_last_layer:
                y_ref[i] = h_new.astype(y_ref.dtype)     # f32 output, no extra buf
            else:
                chunk[i] = h_new.astype(chunk.dtype)     # bf16 inter-layer feed
            return carry

        lax.fori_loop(0, t_blk, step, 0, unroll=unroll)

    def run_all(masked):
        # Layer 0: project the streamed embedded chunk in-kernel.
        project(x_ref[...], wih0_ref[...], bih0_ref[...])
        run_layer(0, masked)
        # Layers >= 1: inter-layer activations never leave VMEM.
        for layer in range(1, num_layers):
            project(chunk[...], wih_ref[layer - 1], bih_ref[layer - 1])
            run_layer(layer, masked)

    if needs_mask:
        # Only the final time chunk contains padded steps: keep the per-step
        # select off the hot path of every other chunk.
        @pl.when(c != last_c)
        def _():
            run_all(False)

        @pl.when(c == last_c)
        def _():
            run_all(True)
    else:
        run_all(False)

    @pl.when(c == last_c)
    def _():
        hT_ref[...] = h_st[...].astype(hT_ref.dtype)


# ------------------------------ Encoder glue ---------------------------------
def init_encoder_params(key, vocab_size, embed_size, num_hiddens, num_layers):
    k_emb, *k_layers = jax.random.split(key, num_layers + 1)
    params = {
        "embedding": jax.random.normal(
            k_emb, (vocab_size, embed_size), jnp.float32),
        "gru": [],
    }
    bound = 1.0 / float(num_hiddens) ** 0.5
    for l in range(num_layers):
        in_f = embed_size if l == 0 else num_hiddens
        k1, k2, k3, k4 = jax.random.split(k_layers[l], 4)
        params["gru"].append(dict(
            w_ih=jax.random.uniform(k1, (3 * num_hiddens, in_f),
                                    jnp.float32, -bound, bound),
            w_hh=jax.random.uniform(k2, (3 * num_hiddens, num_hiddens),
                                    jnp.float32, -bound, bound),
            b_ih=jax.random.uniform(k3, (3 * num_hiddens,),
                                    jnp.float32, -bound, bound),
            b_hh=jax.random.uniform(k4, (3 * num_hiddens,),
                                    jnp.float32, -bound, bound),
        ))
    return params


def encoder_forward(params, inputs, state=None, t_blk_max=32):
    """Matches Encoder.forward: embedding(inputs).permute(1,0,2) -> nn.GRU."""
    gru = params["gru"]
    num_layers = len(gru)
    hidden = gru[0]["w_hh"].shape[1]
    embed = gru[0]["w_ih"].shape[1]
    batch, seq_len = inputs.shape

    # lane/sublane-aligned padded sizes + tiling
    h_pad = _round_up(hidden, 128)
    e_pad = _round_up(embed, 128)
    b_pad = _round_up(batch, 8)
    sub = b_pad // 8
    if sub >= 2:
        # >=2 batch tiles once there are >=16 rows (v7x megacore), <=128 rows
        # per tile (MXU row fill on v5e/v6e).
        tile_sub = min(16, -(-sub // 2))
    else:
        tile_sub = 1
    b_tile = 8 * tile_sub
    b_pad = _round_up(b_pad, b_tile)
    t_blk = min(t_blk_max, seq_len)
    seq_pad = _round_up(seq_len, t_blk)

    # ---- embedding lookup + time-major layout (XLA glue), streamed as bf16 --
    emb = jnp.take(params["embedding"], inputs.astype(jnp.int32), axis=0)  # (B,S,E)
    x = jnp.transpose(emb, (1, 0, 2))                                      # (S,B,E)
    x = jnp.pad(x, ((0, seq_pad - seq_len), (0, b_pad - batch),
                    (0, e_pad - embed))).astype(jnp.bfloat16)

    # ---- layer-0 projection weights (used in-kernel, chunk-level matmul) ----
    p0 = gru[0]
    wih0 = _pad_gate_matrix(p0["w_ih"].T, hidden, h_pad, e_pad).astype(jnp.bfloat16)
    bih0 = _pad_gate_vector(
        p0["b_ih"] + jnp.concatenate(
            [p0["b_hh"][:2 * hidden], jnp.zeros((hidden,), jnp.float32)]),
        hidden, h_pad)[None, :]                               # (1, 3*h_pad) f32

    # ---- per-layer recurrent weights (all layers) + layers>=1 input proj ----
    whh_l, bhhn_l, wr_l, br_l = [], [], [], []
    for l, p in enumerate(gru):
        whh_l.append(_pad_gate_matrix(p["w_hh"].T, hidden, h_pad, h_pad))
        bhhn_l.append(jnp.pad(p["b_hh"][2 * hidden:], (0, h_pad - hidden))[None, :])
        if l >= 1:
            wr_l.append(_pad_gate_matrix(p["w_ih"].T, hidden, h_pad, h_pad))
            merged = p["b_ih"] + jnp.concatenate(
                [p["b_hh"][:2 * hidden], jnp.zeros((hidden,), jnp.float32)])
            br_l.append(_pad_gate_vector(merged, hidden, h_pad)[None, :])
    whh_stack = jnp.stack(whh_l).astype(jnp.bfloat16)          # (L, H, 3H)
    bhhn_stack = jnp.stack(bhhn_l)                             # (L, 1, H)
    if num_layers > 1:
        wih_rest = jnp.stack(wr_l).astype(jnp.bfloat16)        # (L-1, H, 3H)
        bih_rest = jnp.stack(br_l)                             # (L-1, 1, 3H)
    else:
        wih_rest = jnp.zeros((1, h_pad, 3 * h_pad), jnp.bfloat16)  # never read
        bih_rest = jnp.zeros((1, 1, 3 * h_pad), jnp.float32)
    n_rest = wih_rest.shape[0]

    if state is None:                         # begin_state() -> None -> zeros
        h0 = jnp.zeros((num_layers, b_pad, h_pad), jnp.float32)
    else:
        h0 = jnp.pad(state.astype(jnp.float32),
                     ((0, 0), (0, b_pad - state.shape[1]),
                      (0, h_pad - state.shape[2])))

    n_btiles = b_pad // b_tile
    n_chunks = seq_pad // t_blk
    unroll = min(8, t_blk)                    # partial unroll: avoid vreg spills

    # ---- explicit VMEM budget (blocks + weights + scratch), capped for v7x --
    est = (2 * t_blk * b_tile * e_pad * 2            # x stream (x2 buffers)
           + 2 * t_blk * b_tile * h_pad * 4          # y stream
           + 2 * num_layers * b_tile * h_pad * 4     # hT
           + 2 * num_layers * b_tile * h_pad * 4     # h0
           + e_pad * 3 * h_pad * 2 + 3 * h_pad * 4   # wih0 + bih0 (single buf)
           + n_rest * h_pad * 3 * h_pad * 2 + n_rest * 3 * h_pad * 4
           + num_layers * h_pad * 3 * h_pad * 2 + num_layers * h_pad * 4
           + num_layers * b_tile * h_pad * 4         # h_st
           + t_blk * b_tile * h_pad * 2              # chunk (bf16)
           + t_blk * b_tile * 3 * h_pad * 2)         # gi_s (bf16)
    vmem_limit = int(min(max(2 * est, 32 << 20), 56 << 20))

    kernel = functools.partial(
        _gru_stack_kernel, num_layers=num_layers, h_pad=h_pad, t_blk=t_blk,
        b_tile=b_tile, seq_len=seq_len, seq_pad=seq_pad, unroll=unroll)

    grid_spec = pltpu.PrefetchScalarGridSpec(
        num_scalar_prefetch=0,
        # h_st is carried across the time axis: batch MUST be the outer
        # ("parallel") axis and time the inner ("arbitrary") axis.
        grid=(n_btiles, n_chunks),
        in_specs=[
            pl.BlockSpec((t_blk, b_tile, e_pad), lambda b, c: (c, b, 0)),   # x
            _const_spec((e_pad, 3 * h_pad)),                                # wih0
            _const_spec((1, 3 * h_pad)),                                    # bih0
            _const_spec((n_rest, h_pad, 3 * h_pad)),                        # wih >=1
            _const_spec((n_rest, 1, 3 * h_pad)),                            # bih >=1
            _const_spec((num_layers, h_pad, 3 * h_pad)),                    # whh
            _const_spec((num_layers, 1, h_pad)),                            # bhhn
            pl.BlockSpec((num_layers, b_tile, h_pad), lambda b, c: (0, b, 0)),  # h0
        ],
        out_specs=[
            pl.BlockSpec((t_blk, b_tile, h_pad), lambda b, c: (c, b, 0)),   # y
            pl.BlockSpec((num_layers, b_tile, h_pad), lambda b, c: (0, b, 0)),  # hT
        ],
        scratch_shapes=[
            pltpu.VMEM((num_layers, b_tile, h_pad), jnp.float32),   # h state (f32)
            pltpu.VMEM((t_blk, b_tile, h_pad), jnp.bfloat16),       # layer chunk
            pltpu.VMEM((t_blk, b_tile, 3 * h_pad), jnp.bfloat16),   # gate pre-acts
        ],
    )

    y_pad, hT_pad = pl.pallas_call(
        kernel,
        out_shape=(
            jax.ShapeDtypeStruct((seq_pad, b_pad, h_pad), jnp.float32),
            jax.ShapeDtypeStruct((num_layers, b_pad, h_pad), jnp.float32),
        ),
        grid_spec=grid_spec,
        compiler_params=pltpu.CompilerParams(
            dimension_semantics=("parallel", "arbitrary"),
            vmem_limit_bytes=vmem_limit),
    )(x, wih0, bih0, wih_rest, bih_rest, whh_stack, bhhn_stack, h0)

    outputs = y_pad[:seq_len, :batch, :hidden]     # (seq, batch, H) time-major
    h_n = hT_pad[:, :batch, :hidden]               # (num_layers, batch, H)
    return outputs, h_n


if __name__ == "__main__":
    vocab_size, embed_size, num_hiddens, num_layers = 50, 32, 32, 2
    batch, seq_len = 4, 8

    key = jax.random.PRNGKey(0)
    k_params, k_in = jax.random.split(key)
    params = init_encoder_params(k_params, vocab_size, embed_size,
                                 num_hiddens, num_layers)
    inputs = jax.random.randint(k_in, (batch, seq_len), 0, vocab_size,
                                dtype=jnp.int32)

    outputs, h_n = jax.jit(encoder_forward)(params, inputs)
    jax.block_until_ready((outputs, h_n))

    assert outputs.shape == (seq_len, batch, num_hiddens)
    assert h_n.shape == (num_layers, batch, num_hiddens)
    print("KERNEL_OK")
</pallas_src>

<mosaic_0001>
module attributes {stable_mosaic.version = 11 : i64} {
  func.func @_gru_stack_kernel(%arg0: i32, %arg1: i32, %arg2: memref<8x8x128xbf16, #tpu.memory_space<vmem>>, %arg3: memref<128x384xbf16, #tpu.memory_space<vmem>>, %arg4: memref<1x384xf32, #tpu.memory_space<vmem>>, %arg5: memref<1x128x384xbf16, #tpu.memory_space<vmem>>, %arg6: memref<1x1x384xf32, #tpu.memory_space<vmem>>, %arg7: memref<2x128x384xbf16, #tpu.memory_space<vmem>>, %arg8: memref<2x1x128xf32, #tpu.memory_space<vmem>>, %arg9: memref<2x8x128xf32, #tpu.memory_space<vmem>>, %arg10: memref<8x8x128xf32, #tpu.memory_space<vmem>>, %arg11: memref<2x8x128xf32, #tpu.memory_space<vmem>>, %arg12: memref<2x8x128xf32, #tpu.memory_space<vmem>>, %arg13: memref<8x8x128xbf16, #tpu.memory_space<vmem>>, %arg14: memref<8x8x384xbf16, #tpu.memory_space<vmem>>) attributes {dimension_semantics = [#tpu.dimension_semantics<parallel>, #tpu.dimension_semantics<arbitrary>], iteration_bounds = array<i64: 1, 1>, scalar_prefetch = 0 : i64, scratch_operands = 3 : i64, tpu.core_type = #tpu.core_type<tc>, window_params = [{transform_indices = @transform_0, window_bounds = array<i64: 8, 8, 128>}, {pipeline_mode = #tpu.pipeline_mode<synchronous>, transform_indices = @transform_1, window_bounds = array<i64: 128, 384>}, {pipeline_mode = #tpu.pipeline_mode<synchronous>, transform_indices = @transform_2, window_bounds = array<i64: 1, 384>}, {pipeline_mode = #tpu.pipeline_mode<synchronous>, transform_indices = @transform_3, window_bounds = array<i64: 1, 128, 384>}, {pipeline_mode = #tpu.pipeline_mode<synchronous>, transform_indices = @transform_4, window_bounds = array<i64: 1, 1, 384>}, {pipeline_mode = #tpu.pipeline_mode<synchronous>, transform_indices = @transform_5, window_bounds = array<i64: 2, 128, 384>}, {pipeline_mode = #tpu.pipeline_mode<synchronous>, transform_indices = @transform_6, window_bounds = array<i64: 2, 1, 128>}, {transform_indices = @transform_7, window_bounds = array<i64: 2, 8, 128>}, {transform_indices = @transform_8, window_bounds = array<i64: 8, 8, 128>}, {transform_indices = @transform_9, window_bounds = array<i64: 2, 8, 128>}]} {
    %c0_i32 = arith.constant 0 : i32
    %0 = arith.cmpi eq, %arg1, %c0_i32 : i32
    %1 = arith.extui %0 : i1 to i32
    %c0_i32_0 = arith.constant 0 : i32
    %2 = arith.cmpi ne, %1, %c0_i32_0 : i32
    scf.if %2 {
      %c0_254 = arith.constant 0 : index
      %c0_255 = arith.constant 0 : index
      %c0_256 = arith.constant 0 : index
      %720 = vector.load %arg9[%c0_254, %c0_255, %c0_256] : memref<2x8x128xf32, #tpu.memory_space<vmem>>, vector<2x8x128xf32>
      %c0_257 = arith.constant 0 : index
      %c0_258 = arith.constant 0 : index
      %c0_259 = arith.constant 0 : index
      %721 = vector.load %arg12[%c0_257, %c0_258, %c0_259] : memref<2x8x128xf32, #tpu.memory_space<vmem>>, vector<2x8x128xf32>
      tpu.vector_store %arg12[%c0_257, %c0_258, %c0_259], %720 {strides = array<i32>} : memref<2x8x128xf32, #tpu.memory_space<vmem>>, vector<2x8x128xf32>,
    } else {
    }
    %c0 = arith.constant 0 : index
    %c0_1 = arith.constant 0 : index
    %c0_2 = arith.constant 0 : index
    %3 = vector.load %arg2[%c0, %c0_1, %c0_2] : memref<8x8x128xbf16, #tpu.memory_space<vmem>>, vector<8x8x128xbf16>
    %c0_3 = arith.constant 0 : index
    %c0_4 = arith.constant 0 : index
    %4 = vector.load %arg3[%c0_3, %c0_4] : memref<128x384xbf16, #tpu.memory_space<vmem>>, vector<128x384xbf16>
    %c0_5 = arith.constant 0 : index
    %c0_6 = arith.constant 0 : index
    %5 = vector.load %arg4[%c0_5, %c0_6] : memref<1x384xf32, #tpu.memory_space<vmem>>, vector<1x384xf32>
    %6 = vector.shape_cast %3 : vector<8x8x128xbf16> to vector<64x128xbf16>
    %cst = arith.constant dense<0.000000e+00> : vector<64x384xf32>
    %7 = tpu.matmul %6, %4, %cst {dimension_numbers = #tpu.dot_dimension_numbers<[1], [0], [0], [1], [0, 0, 1, 1], [], []>} : vector<64x128xbf16>, vector<128x384xbf16>, vector<64x384xf32> -> vector<64x384xf32>
    %8 = vector.broadcast %5 : vector<1x384xf32> to vector<64x384xf32>
    %9 = arith.addf %7, %8 : vector<64x384xf32>
    %10 = vector.shape_cast %9 : vector<64x384xf32> to vector<8x8x384xf32>
    %11 = arith.truncf %10 : vector<8x8x384xf32> to vector<8x8x384xbf16>
    %c0_7 = arith.constant 0 : index
    %c0_8 = arith.constant 0 : index
    %c0_9 = arith.constant 0 : index
    %12 = vector.load %arg14[%c0_7, %c0_8, %c0_9] : memref<8x8x384xbf16, #tpu.memory_space<vmem>>, vector<8x8x384xbf16>
    tpu.vector_store %arg14[%c0_7, %c0_8, %c0_9], %11 {strides = array<i32>} : memref<8x8x384xbf16, #tpu.memory_space<vmem>>, vector<8x8x384xbf16>,
    %c0_10 = arith.constant 0 : index
    %c0_11 = arith.constant 0 : index
    %c0_12 = arith.constant 0 : index
    %13 = vector.load %arg7[%c0_10, %c0_11, %c0_12] : memref<2x128x384xbf16, #tpu.memory_space<vmem>>, vector<1x128x384xbf16>
    %14 = vector.shape_cast %13 : vector<1x128x384xbf16> to vector<128x384xbf16>
    %c0_13 = arith.constant 0 : index
    %c0_14 = arith.constant 0 : index
    %c0_15 = arith.constant 0 : index
    %15 = vector.load %arg8[%c0_13, %c0_14, %c0_15] : memref<2x1x128xf32, #tpu.memory_space<vmem>>, vector<1x1x128xf32>
    %16 = vector.shape_cast %15 : vector<1x1x128xf32> to vector<1x128xf32>
    %17 = vector.shape_cast %16 : vector<1x128xf32> to vector<1x128xf32>
    %18 = vector.broadcast %17 : vector<1x128xf32> to vector<8x128xf32>
    %c0_i32_16 = arith.constant 0 : i32
    %c0_17 = arith.constant 0 : index
    %c0_18 = arith.constant 0 : index
    %c0_19 = arith.constant 0 : index
    %19 = vector.load %arg12[%c0_17, %c0_18, %c0_19] : memref<2x8x128xf32, #tpu.memory_space<vmem>>, vector<1x8x128xf32>
    %20 = vector.shape_cast %19 : vector<1x8x128xf32> to vector<8x128xf32>
    %21 = arith.index_cast %c0_i32_16 : i32 to index
    %c0_20 = arith.constant 0 : index
    %c0_21 = arith.constant 0 : index
    %22 = vector.load %arg14[%21, %c0_20, %c0_21] : memref<8x8x384xbf16, #tpu.memory_space<vmem>>, vector<1x8x384xbf16>
    %23 = vector.shape_cast %22 : vector<1x8x384xbf16> to vector<8x384xbf16>
    %24 = arith.truncf %20 : vector<8x128xf32> to vector<8x128xbf16>
    %cst_22 = arith.constant dense<0.000000e+00> : vector<8x384xf32>
    %25 = tpu.matmul %24, %14, %cst_22 {dimension_numbers = #tpu.dot_dimension_numbers<[1], [0], [0], [1], [0, 0, 1, 1], [], []>} : vector<8x128xbf16>, vector<128x384xbf16>, vector<8x384xf32> -> vector<8x384xf32>
    %26 = vector.extract_strided_slice %23 {offsets = [0, 0], sizes = [8, 128], strides = [1, 1]} : vector<8x384xbf16> to vector<8x128xbf16>
    %27 = vector.extract_strided_slice %25 {offsets = [0, 0], sizes = [8, 128], strides = [1, 1]} : vector<8x384xf32> to vector<8x128xf32>
    %28 = arith.extf %26 : vector<8x128xbf16> to vector<8x128xf32>
    %29 = arith.addf %28, %27 : vector<8x128xf32>
    %30 = arith.negf %29 : vector<8x128xf32>
    %31 = math.exp %30 : vector<8x128xf32>
    %cst_23 = arith.constant 1.000000e+00 : f32
    %32 = vector.broadcast %cst_23 : f32 to vector<8x128xf32>
    %33 = arith.addf %32, %31 : vector<8x128xf32>
    %34 = arith.divf %32, %33 : vector<8x128xf32>
    %35 = vector.extract_strided_slice %23 {offsets = [0, 128], sizes = [8, 128], strides = [1, 1]} : vector<8x384xbf16> to vector<8x128xbf16>
    %36 = vector.extract_strided_slice %25 {offsets = [0, 128], sizes = [8, 128], strides = [1, 1]} : vector<8x384xf32> to vector<8x128xf32>
    %37 = arith.extf %35 : vector<8x128xbf16> to vector<8x128xf32>
    %38 = arith.addf %37, %36 : vector<8x128xf32>
    %39 = arith.negf %38 : vector<8x128xf32>
    %40 = math.exp %39 : vector<8x128xf32>
    %cst_24 = arith.constant 1.000000e+00 : f32
    %41 = vector.broadcast %cst_24 : f32 to vector<8x128xf32>
    %42 = arith.addf %41, %40 : vector<8x128xf32>
    %43 = arith.divf %41, %42 : vector<8x128xf32>
    %44 = vector.extract_strided_slice %23 {offsets = [0, 256], sizes = [8, 128], strides = [1, 1]} : vector<8x384xbf16> to vector<8x128xbf16>
    %45 = vector.extract_strided_slice %25 {offsets = [0, 256], sizes = [8, 128], strides = [1, 1]} : vector<8x384xf32> to vector<8x128xf32>
    %46 = arith.addf %45, %18 : vector<8x128xf32>
    %47 = arith.mulf %34, %46 : vector<8x128xf32>
    %48 = arith.extf %44 : vector<8x128xbf16> to vector<8x128xf32>
    %49 = arith.addf %48, %47 : vector<8x128xf32>
    %50 = math.tanh %49 : vector<8x128xf32>
    %51 = arith.subf %20, %50 : vector<8x128xf32>
    %52 = arith.mulf %43, %51 : vector<8x128xf32>
    %53 = arith.addf %50, %52 : vector<8x128xf32>
    %c0_25 = arith.constant 0 : index
    %c0_26 = arith.constant 0 : index
    %c0_27 = arith.constant 0 : index
    %54 = vector.load %arg12[%c0_25, %c0_26, %c0_27] : memref<2x8x128xf32, #tpu.memory_space<vmem>>, vector<1x8x128xf32>
    %55 = vector.shape_cast %54 : vector<1x8x128xf32> to vector<8x128xf32>
    %56 = vector.shape_cast %53 : vector<8x128xf32> to vector<1x8x128xf32>
    tpu.vector_store %arg12[%c0_25, %c0_26, %c0_27], %56 {strides = array<i32>} : memref<2x8x128xf32, #tpu.memory_space<vmem>>, vector<1x8x128xf32>,
    %57 = arith.truncf %53 : vector<8x128xf32> to vector<8x128xbf16>
    %58 = arith.index_cast %c0_i32_16 : i32 to index
    %c0_28 = arith.constant 0 : index
    %c0_29 = arith.constant 0 : index
    %59 = vector.load %arg13[%58, %c0_28, %c0_29] : memref<8x8x128xbf16, #tpu.memory_space<vmem>>, vector<1x8x128xbf16>
    %60 = vector.shape_cast %59 : vector<1x8x128xbf16> to vector<8x128xbf16>
    %61 = vector.shape_cast %57 : vector<8x128xbf16> to vector<1x8x128xbf16>
    tpu.vector_store %arg13[%58, %c0_28, %c0_29], %61 {strides = array<i32>} : memref<8x8x128xbf16, #tpu.memory_space<vmem>>, vector<1x8x128xbf16>,
    %c1_i32 = arith.constant 1 : i32
    %c0_30 = arith.constant 0 : index
    %c0_31 = arith.constant 0 : index
    %c0_32 = arith.constant 0 : index
    %62 = vector.load %arg12[%c0_30, %c0_31, %c0_32] : memref<2x8x128xf32, #tpu.memory_space<vmem>>, vector<1x8x128xf32>
    %63 = vector.shape_cast %62 : vector<1x8x128xf32> to vector<8x128xf32>
    %64 = arith.index_cast %c1_i32 : i32 to index
    %c0_33 = arith.constant 0 : index
    %c0_34 = arith.constant 0 : index
    %65 = vector.load %arg14[%64, %c0_33, %c0_34] : memref<8x8x384xbf16, #tpu.memory_space<vmem>>, vector<1x8x384xbf16>
    %66 = vector.shape_cast %65 : vector<1x8x384xbf16> to vector<8x384xbf16>
    %67 = arith.truncf %63 : vector<8x128xf32> to vector<8x128xbf16>
    %cst_35 = arith.constant dense<0.000000e+00> : vector<8x384xf32>
    %68 = tpu.matmul %67, %14, %cst_35 {dimension_numbers = #tpu.dot_dimension_numbers<[1], [0], [0], [1], [0, 0, 1, 1], [], []>} : vector<8x128xbf16>, vector<128x384xbf16>, vector<8x384xf32> -> vector<8x384xf32>
    %69 = vector.extract_strided_slice %66 {offsets = [0, 0], sizes = [8, 128], strides = [1, 1]} : vector<8x384xbf16> to vector<8x128xbf16>
    %70 = vector.extract_strided_slice %68 {offsets = [0, 0], sizes = [8, 128], strides = [1, 1]} : vector<8x384xf32> to vector<8x128xf32>
    %71 = arith.extf %69 : vector<8x128xbf16> to vector<8x128xf32>
    %72 = arith.addf %71, %70 : vector<8x128xf32>
    %73 = arith.negf %72 : vector<8x128xf32>
    %74 = math.exp %73 : vector<8x128xf32>
    %cst_36 = arith.constant 1.000000e+00 : f32
    %75 = vector.broadcast %cst_36 : f32 to vector<8x128xf32>
    %76 = arith.addf %75, %74 : vector<8x128xf32>
    %77 = arith.divf %75, %76 : vector<8x128xf32>
    %78 = vector.extract_strided_slice %66 {offsets = [0, 128], sizes = [8, 128], strides = [1, 1]} : vector<8x384xbf16> to vector<8x128xbf16>
    %79 = vector.extract_strided_slice %68 {offsets = [0, 128], sizes = [8, 128], strides = [1, 1]} : vector<8x384xf32> to vector<8x128xf32>
    %80 = arith.extf %78 : vector<8x128xbf16> to vector<8x128xf32>
    %81 = arith.addf %80, %79 : vector<8x128xf32>
    %82 = arith.negf %81 : vector<8x128xf32>
    %83 = math.exp %82 : vector<8x128xf32>
    %cst_37 = arith.constant 1.000000e+00 : f32
    %84 = vector.broadcast %cst_37 : f32 to vector<8x128xf32>
    %85 = arith.addf %84, %83 : vector<8x128xf32>
    %86 = arith.divf %84, %85 : vector<8x128xf32>
    %87 = vector.extract_strided_slice %66 {offsets = [0, 256], sizes = [8, 128], strides = [1, 1]} : vector<8x384xbf16> to vector<8x128xbf16>
    %88 = vector.extract_strided_slice %68 {offsets = [0, 256], sizes = [8, 128], strides = [1, 1]} : vector<8x384xf32> to vector<8x128xf32>
    %89 = arith.addf %88, %18 : vector<8x128xf32>
    %90 = arith.mulf %77, %89 : vector<8x128xf32>
    %91 = arith.extf %87 : vector<8x128xbf16> to vector<8x128xf32>
    %92 = arith.addf %91, %90 : vector<8x128xf32>
    %93 = math.tanh %92 : vector<8x128xf32>
    %94 = arith.subf %63, %93 : vector<8x128xf32>
    %95 = arith.mulf %86, %94 : vector<8x128xf32>
    %96 = arith.addf %93, %95 : vector<8x128xf32>
    %c0_38 = arith.constant 0 : index
    %c0_39 = arith.constant 0 : index
    %c0_40 = arith.constant 0 : index
    %97 = vector.load %arg12[%c0_38, %c0_39, %c0_40] : memref<2x8x128xf32, #tpu.memory_space<vmem>>, vector<1x8x128xf32>
    %98 = vector.shape_cast %97 : vector<1x8x128xf32> to vector<8x128xf32>
    %99 = vector.shape_cast %96 : vector<8x128xf32> to vector<1x8x128xf32>
    tpu.vector_store %arg12[%c0_38, %c0_39, %c0_40], %99 {strides = array<i32>} : memref<2x8x128xf32, #tpu.memory_space<vmem>>, vector<1x8x128xf32>,
    %100 = arith.truncf %96 : vector<8x128xf32> to vector<8x128xbf16>
    %101 = arith.index_cast %c1_i32 : i32 to index
    %c0_41 = arith.constant 0 : index
    %c0_42 = arith.constant 0 : index
    %102 = vector.load %arg13[%101, %c0_41, %c0_42] : memref<8x8x128xbf16, #tpu.memory_space<vmem>>, vector<1x8x128xbf16>
    %103 = vector.shape_cast %102 : vector<1x8x128xbf16> to vector<8x128xbf16>
    %104 = vector.shape_cast %100 : vector<8x128xbf16> to vector<1x8x128xbf16>
    tpu.vector_store %arg13[%101, %c0_41, %c0_42], %104 {strides = array<i32>} : memref<8x8x128xbf16, #tpu.memory_space<vmem>>, vector<1x8x128xbf16>,
    %c2_i32 = arith.constant 2 : i32
    %c0_43 = arith.constant 0 : index
    %c0_44 = arith.constant 0 : index
    %c0_45 = arith.constant 0 : index
    %105 = vector.load %arg12[%c0_43, %c0_44, %c0_45] : memref<2x8x128xf32, #tpu.memory_space<vmem>>, vector<1x8x128xf32>
    %106 = vector.shape_cast %105 : vector<1x8x128xf32> to vector<8x128xf32>
    %107 = arith.index_cast %c2_i32 : i32 to index
    %c0_46 = arith.constant 0 : index
    %c0_47 = arith.constant 0 : index
    %108 = vector.load %arg14[%107, %c0_46, %c0_47] : memref<8x8x384xbf16, #tpu.memory_space<vmem>>, vector<1x8x384xbf16>
    %109 = vector.shape_cast %108 : vector<1x8x384xbf16> to vector<8x384xbf16>
    %110 = arith.truncf %106 : vector<8x128xf32> to vector<8x128xbf16>
    %cst_48 = arith.constant dense<0.000000e+00> : vector<8x384xf32>
    %111 = tpu.matmul %110, %14, %cst_48 {dimension_numbers = #tpu.dot_dimension_numbers<[1], [0], [0], [1], [0, 0, 1, 1], [], []>} : vector<8x128xbf16>, vector<128x384xbf16>, vector<8x384xf32> -> vector<8x384xf32>
    %112 = vector.extract_strided_slice %109 {offsets = [0, 0], sizes = [8, 128], strides = [1, 1]} : vector<8x384xbf16> to vector<8x128xbf16>
    %113 = vector.extract_strided_slice %111 {offsets = [0, 0], sizes = [8, 128], strides = [1, 1]} : vector<8x384xf32> to vector<8x128xf32>
    %114 = arith.extf %112 : vector<8x128xbf16> to vector<8x128xf32>
    %115 = arith.addf %114, %113 : vector<8x128xf32>
    %116 = arith.negf %115 : vector<8x128xf32>
    %117 = math.exp %116 : vector<8x128xf32>
    %cst_49 = arith.constant 1.000000e+00 : f32
    %118 = vector.broadcast %cst_49 : f32 to vector<8x128xf32>
    %119 = arith.addf %118, %117 : vector<8x128xf32>
    %120 = arith.divf %118, %119 : vector<8x128xf32>
    %121 = vector.extract_strided_slice %109 {offsets = [0, 128], sizes = [8, 128], strides = [1, 1]} : vector<8x384xbf16> to vector<8x128xbf16>
    %122 = vector.extract_strided_slice %111 {offsets = [0, 128], sizes = [8, 128], strides = [1, 1]} : vector<8x384xf32> to vector<8x128xf32>
    %123 = arith.extf %121 : vector<8x128xbf16> to vector<8x128xf32>
    %124 = arith.addf %123, %122 : vector<8x128xf32>
    %125 = arith.negf %124 : vector<8x128xf32>
    %126 = math.exp %125 : vector<8x128xf32>
    %cst_50 = arith.constant 1.000000e+00 : f32
    %127 = vector.broadcast %cst_50 : f32 to vector<8x128xf32>
    %128 = arith.addf %127, %126 : vector<8x128xf32>
    %129 = arith.divf %127, %128 : vector<8x128xf32>
    %130 = vector.extract_strided_slice %109 {offsets = [0, 256], sizes = [8, 128], strides = [1, 1]} : vector<8x384xbf16> to vector<8x128xbf16>
    %131 = vector.extract_strided_slice %111 {offsets = [0, 256], sizes = [8, 128], strides = [1, 1]} : vector<8x384xf32> to vector<8x128xf32>
    %132 = arith.addf %131, %18 : vector<8x128xf32>
    %133 = arith.mulf %120, %132 : vector<8x128xf32>
    %134 = arith.extf %130 : vector<8x128xbf16> to vector<8x128xf32>
    %135 = arith.addf %134, %133 : vector<8x128xf32>
    %136 = math.tanh %135 : vector<8x128xf32>
    %137 = arith.subf %106, %136 : vector<8x128xf32>
    %138 = arith.mulf %129, %137 : vector<8x128xf32>
    %139 = arith.addf %136, %138 : vector<8x128xf32>
    %c0_51 = arith.constant 0 : index
    %c0_52 = arith.constant 0 : index
    %c0_53 = arith.constant 0 : index
    %140 = vector.load %arg12[%c0_51, %c0_52, %c0_53] : memref<2x8x128xf32, #tpu.memory_space<vmem>>, vector<1x8x128xf32>
    %141 = vector.shape_cast %140 : vector<1x8x128xf32> to vector<8x128xf32>
    %142 = vector.shape_cast %139 : vector<8x128xf32> to vector<1x8x128xf32>
    tpu.vector_store %arg12[%c0_51, %c0_52, %c0_53], %142 {strides = array<i32>} : memref<2x8x128xf32, #tpu.memory_space<vmem>>, vector<1x8x128xf32>,
    %143 = arith.truncf %139 : vector<8x128xf32> to vector<8x128xbf16>
    %144 = arith.index_cast %c2_i32 : i32 to index
    %c0_54 = arith.constant 0 : index
    %c0_55 = arith.constant 0 : index
    %145 = vector.load %arg13[%144, %c0_54, %c0_55] : memref<8x8x128xbf16, #tpu.memory_space<vmem>>, vector<1x8x128xbf16>
    %146 = vector.shape_cast %145 : vector<1x8x128xbf16> to vector<8x128xbf16>
    %147 = vector.shape_cast %143 : vector<8x128xbf16> to vector<1x8x128xbf16>
    tpu.vector_store %arg13[%144, %c0_54, %c0_55], %147 {strides = array<i32>} : memref<8x8x128xbf16, #tpu.memory_space<vmem>>, vector<1x8x128xbf16>,
    %c3_i32 = arith.constant 3 : i32
    %c0_56 = arith.constant 0 : index
    %c0_57 = arith.constant 0 : index
    %c0_58 = arith.constant 0 : index
    %148 = vector.load %arg12[%c0_56, %c0_57, %c0_58] : memref<2x8x128xf32, #tpu.memory_space<vmem>>, vector<1x8x128xf32>
    %149 = vector.shape_cast %148 : vector<1x8x128xf32> to vector<8x128xf32>
    %150 = arith.index_cast %c3_i32 : i32 to index
    %c0_59 = arith.constant 0 : index
    %c0_60 = arith.constant 0 : index
    %151 = vector.load %arg14[%150, %c0_59, %c0_60] : memref<8x8x384xbf16, #tpu.memory_space<vmem>>, vector<1x8x384xbf16>
    %152 = vector.shape_cast %151 : vector<1x8x384xbf16> to vector<8x384xbf16>
    %153 = arith.truncf %149 : vector<8x128xf32> to vector<8x128xbf16>
    %cst_61 = arith.constant dense<0.000000e+00> : vector<8x384xf32>
    %154 = tpu.matmul %153, %14, %cst_61 {dimension_numbers = #tpu.dot_dimension_numbers<[1], [0], [0], [1], [0, 0, 1, 1], [], []>} : vector<8x128xbf16>, vector<128x384xbf16>, vector<8x384xf32> -> vector<8x384xf32>
    %155 = vector.extract_strided_slice %152 {offsets = [0, 0], sizes = [8, 128], strides = [1, 1]} : vector<8x384xbf16> to vector<8x128xbf16>
    %156 = vector.extract_strided_slice %154 {offsets = [0, 0], sizes = [8, 128], strides = [1, 1]} : vector<8x384xf32> to vector<8x128xf32>
    %157 = arith.extf %155 : vector<8x128xbf16> to vector<8x128xf32>
    %158 = arith.addf %157, %156 : vector<8x128xf32>
    %159 = arith.negf %158 : vector<8x128xf32>
    %160 = math.exp %159 : vector<8x128xf32>
    %cst_62 = arith.constant 1.000000e+00 : f32
    %161 = vector.broadcast %cst_62 : f32 to vector<8x128xf32>
    %162 = arith.addf %161, %160 : vector<8x128xf32>
    %163 = arith.divf %161, %162 : vector<8x128xf32>
    %164 = vector.extract_strided_slice %152 {offsets = [0, 128], sizes = [8, 128], strides = [1, 1]} : vector<8x384xbf16> to vector<8x128xbf16>
    %165 = vector.extract_strided_slice %154 {offsets = [0, 128], sizes = [8, 128], strides = [1, 1]} : vector<8x384xf32> to vector<8x128xf32>
    %166 = arith.extf %164 : vector<8x128xbf16> to vector<8x128xf32>
    %167 = arith.addf %166, %165 : vector<8x128xf32>
    %168 = arith.negf %167 : vector<8x128xf32>
    %169 = math.exp %168 : vector<8x128xf32>
    %cst_63 = arith.constant 1.000000e+00 : f32
    %170 = vector.broadcast %cst_63 : f32 to vector<8x128xf32>
    %171 = arith.addf %170, %169 : vector<8x128xf32>
    %172 = arith.divf %170, %171 : vector<8x128xf32>
    %173 = vector.extract_strided_slice %152 {offsets = [0, 256], sizes = [8, 128], strides = [1, 1]} : vector<8x384xbf16> to vector<8x128xbf16>
    %174 = vector.extract_strided_slice %154 {offsets = [0, 256], sizes = [8, 128], strides = [1, 1]} : vector<8x384xf32> to vector<8x128xf32>
    %175 = arith.addf %174, %18 : vector<8x128xf32>
    %176 = arith.mulf %163, %175 : vector<8x128xf32>
    %177 = arith.extf %173 : vector<8x128xbf16> to vector<8x128xf32>
    %178 = arith.addf %177, %176 : vector<8x128xf32>
    %179 = math.tanh %178 : vector<8x128xf32>
    %180 = arith.subf %149, %179 : vector<8x128xf32>
    %181 = arith.mulf %172, %180 : vector<8x128xf32>
    %182 = arith.addf %179, %181 : vector<8x128xf32>
    %c0_64 = arith.constant 0 : index
    %c0_65 = arith.constant 0 : index
    %c0_66 = arith.constant 0 : index
    %183 = vector.load %arg12[%c0_64, %c0_65, %c0_66] : memref<2x8x128xf32, #tpu.memory_space<vmem>>, vector<1x8x128xf32>
    %184 = vector.shape_cast %183 : vector<1x8x128xf32> to vector<8x128xf32>
    %185 = vector.shape_cast %182 : vector<8x128xf32> to vector<1x8x128xf32>
    tpu.vector_store %arg12[%c0_64, %c0_65, %c0_66], %185 {strides = array<i32>} : memref<2x8x128xf32, #tpu.memory_space<vmem>>, vector<1x8x128xf32>,
    %186 = arith.truncf %182 : vector<8x128xf32> to vector<8x128xbf16>
    %187 = arith.index_cast %c3_i32 : i32 to index
    %c0_67 = arith.constant 0 : index
    %c0_68 = arith.constant 0 : index
    %188 = vector.load %arg13[%187, %c0_67, %c0_68] : memref<8x8x128xbf16, #tpu.memory_space<vmem>>, vector<1x8x128xbf16>
    %189 = vector.shape_cast %188 : vector<1x8x128xbf16> to vector<8x128xbf16>
    %190 = vector.shape_cast %186 : vector<8x128xbf16> to vector<1x8x128xbf16>
    tpu.vector_store %arg13[%187, %c0_67, %c0_68], %190 {strides = array<i32>} : memref<8x8x128xbf16, #tpu.memory_space<vmem>>, vector<1x8x128xbf16>,
    %c4_i32 = arith.constant 4 : i32
    %c0_69 = arith.constant 0 : index
    %c0_70 = arith.constant 0 : index
    %c0_71 = arith.constant 0 : index
    %191 = vector.load %arg12[%c0_69, %c0_70, %c0_71] : memref<2x8x128xf32, #tpu.memory_space<vmem>>, vector<1x8x128xf32>
    %192 = vector.shape_cast %191 : vector<1x8x128xf32> to vector<8x128xf32>
    %193 = arith.index_cast %c4_i32 : i32 to index
    %c0_72 = arith.constant 0 : index
    %c0_73 = arith.constant 0 : index
    %194 = vector.load %arg14[%193, %c0_72, %c0_73] : memref<8x8x384xbf16, #tpu.memory_space<vmem>>, vector<1x8x384xbf16>
    %195 = vector.shape_cast %194 : vector<1x8x384xbf16> to vector<8x384xbf16>
    %196 = arith.truncf %192 : vector<8x128xf32> to vector<8x128xbf16>
    %cst_74 = arith.constant dense<0.000000e+00> : vector<8x384xf32>
    %197 = tpu.matmul %196, %14, %cst_74 {dimension_numbers = #tpu.dot_dimension_numbers<[1], [0], [0], [1], [0, 0, 1, 1], [], []>} : vector<8x128xbf16>, vector<128x384xbf16>, vector<8x384xf32> -> vector<8x384xf32>
    %198 = vector.extract_strided_slice %195 {offsets = [0, 0], sizes = [8, 128], strides = [1, 1]} : vector<8x384xbf16> to vector<8x128xbf16>
    %199 = vector.extract_strided_slice %197 {offsets = [0, 0], sizes = [8, 128], strides = [1, 1]} : vector<8x384xf32> to vector<8x128xf32>
    %200 = arith.extf %198 : vector<8x128xbf16> to vector<8x128xf32>
    %201 = arith.addf %200, %199 : vector<8x128xf32>
    %202 = arith.negf %201 : vector<8x128xf32>
    %203 = math.exp %202 : vector<8x128xf32>
    %cst_75 = arith.constant 1.000000e+00 : f32
    %204 = vector.broadcast %cst_75 : f32 to vector<8x128xf32>
    %205 = arith.addf %204, %203 : vector<8x128xf32>
    %206 = arith.divf %204, %205 : vector<8x128xf32>
    %207 = vector.extract_strided_slice %195 {offsets = [0, 128], sizes = [8, 128], strides = [1, 1]} : vector<8x384xbf16> to vector<8x128xbf16>
    %208 = vector.extract_strided_slice %197 {offsets = [0, 128], sizes = [8, 128], strides = [1, 1]} : vector<8x384xf32> to vector<8x128xf32>
    %209 = arith.extf %207 : vector<8x128xbf16> to vector<8x128xf32>
    %210 = arith.addf %209, %208 : vector<8x128xf32>
    %211 = arith.negf %210 : vector<8x128xf32>
    %212 = math.exp %211 : vector<8x128xf32>
    %cst_76 = arith.constant 1.000000e+00 : f32
    %213 = vector.broadcast %cst_76 : f32 to vector<8x128xf32>
    %214 = arith.addf %213, %212 : vector<8x128xf32>
    %215 = arith.divf %213, %214 : vector<8x128xf32>
    %216 = vector.extract_strided_slice %195 {offsets = [0, 256], sizes = [8, 128], strides = [1, 1]} : vector<8x384xbf16> to vector<8x128xbf16>
    %217 = vector.extract_strided_slice %197 {offsets = [0, 256], sizes = [8, 128], strides = [1, 1]} : vector<8x384xf32> to vector<8x128xf32>
    %218 = arith.addf %217, %18 : vector<8x128xf32>
    %219 = arith.mulf %206, %218 : vector<8x128xf32>
    %220 = arith.extf %216 : vector<8x128xbf16> to vector<8x128xf32>
    %221 = arith.addf %220, %219 : vector<8x128xf32>
    %222 = math.tanh %221 : vector<8x128xf32>
    %223 = arith.subf %192, %222 : vector<8x128xf32>
    %224 = arith.mulf %215, %223 : vector<8x128xf32>
    %225 = arith.addf %222, %224 : vector<8x128xf32>
    %c0_77 = arith.constant 0 : index
    %c0_78 = arith.constant 0 : index
    %c0_79 = arith.constant 0 : index
    %226 = vector.load %arg12[%c0_77, %c0_78, %c0_79] : memref<2x8x128xf32, #tpu.memory_space<vmem>>, vector<1x8x128xf32>
    %227 = vector.shape_cast %226 : vector<1x8x128xf32> to vector<8x128xf32>
    %228 = vector.shape_cast %225 : vector<8x128xf32> to vector<1x8x128xf32>
    tpu.vector_store %arg12[%c0_77, %c0_78, %c0_79], %228 {strides = array<i32>} : memref<2x8x128xf32, #tpu.memory_space<vmem>>, vector<1x8x128xf32>,
    %229 = arith.truncf %225 : vector<8x128xf32> to vector<8x128xbf16>
    %230 = arith.index_cast %c4_i32 : i32 to index
    %c0_80 = arith.constant 0 : index
    %c0_81 = arith.constant 0 : index
    %231 = vector.load %arg13[%230, %c0_80, %c0_81] : memref<8x8x128xbf16, #tpu.memory_space<vmem>>, vector<1x8x128xbf16>
    %232 = vector.shape_cast %231 : vector<1x8x128xbf16> to vector<8x128xbf16>
    %233 = vector.shape_cast %229 : vector<8x128xbf16> to vector<1x8x128xbf16>
    tpu.vector_store %arg13[%230, %c0_80, %c0_81], %233 {strides = array<i32>} : memref<8x8x128xbf16, #tpu.memory_space<vmem>>, vector<1x8x128xbf16>,
    %c5_i32 = arith.constant 5 : i32
    %c0_82 = arith.constant 0 : index
    %c0_83 = arith.constant 0 : index
    %c0_84 = arith.constant 0 : index
    %234 = vector.load %arg12[%c0_82, %c0_83, %c0_84] : memref<2x8x128xf32, #tpu.memory_space<vmem>>, vector<1x8x128xf32>
    %235 = vector.shape_cast %234 : vector<1x8x128xf32> to vector<8x128xf32>
    %236 = arith.index_cast %c5_i32 : i32 to index
    %c0_85 = arith.constant 0 : index
    %c0_86 = arith.constant 0 : index
    %237 = vector.load %arg14[%236, %c0_85, %c0_86] : memref<8x8x384xbf16, #tpu.memory_space<vmem>>, vector<1x8x384xbf16>
    %238 = vector.shape_cast %237 : vector<1x8x384xbf16> to vector<8x384xbf16>
    %239 = arith.truncf %235 : vector<8x128xf32> to vector<8x128xbf16>
    %cst_87 = arith.constant dense<0.000000e+00> : vector<8x384xf32>
    %240 = tpu.matmul %239, %14, %cst_87 {dimension_numbers = #tpu.dot_dimension_numbers<[1], [0], [0], [1], [0, 0, 1, 1], [], []>} : vector<8x128xbf16>, vector<128x384xbf16>, vector<8x384xf32> -> vector<8x384xf32>
    %241 = vector.extract_strided_slice %238 {offsets = [0, 0], sizes = [8, 128], strides = [1, 1]} : vector<8x384xbf16> to vector<8x128xbf16>
    %242 = vector.extract_strided_slice %240 {offsets = [0, 0], sizes = [8, 128], strides = [1, 1]} : vector<8x384xf32> to vector<8x128xf32>
    %243 = arith.extf %241 : vector<8x128xbf16> to vector<8x128xf32>
    %244 = arith.addf %243, %242 : vector<8x128xf32>
    %245 = arith.negf %244 : vector<8x128xf32>
    %246 = math.exp %245 : vector<8x128xf32>
    %cst_88 = arith.constant 1.000000e+00 : f32
    %247 = vector.broadcast %cst_88 : f32 to vector<8x128xf32>
    %248 = arith.addf %247, %246 : vector<8x128xf32>
    %249 = arith.divf %247, %248 : vector<8x128xf32>
    %250 = vector.extract_strided_slice %238 {offsets = [0, 128], sizes = [8, 128], strides = [1, 1]} : vector<8x384xbf16> to vector<8x128xbf16>
    %251 = vector.extract_strided_slice %240 {offsets = [0, 128], sizes = [8, 128], strides = [1, 1]} : vector<8x384xf32> to vector<8x128xf32>
    %252 = arith.extf %250 : vector<8x128xbf16> to vector<8x128xf32>
    %253 = arith.addf %252, %251 : vector<8x128xf32>
    %254 = arith.negf %253 : vector<8x128xf32>
    %255 = math.exp %254 : vector<8x128xf32>
    %cst_89 = arith.constant 1.000000e+00 : f32
    %256 = vector.broadcast %cst_89 : f32 to vector<8x128xf32>
    %257 = arith.addf %256, %255 : vector<8x128xf32>
    %258 = arith.divf %256, %257 : vector<8x128xf32>
    %259 = vector.extract_strided_slice %238 {offsets = [0, 256], sizes = [8, 128], strides = [1, 1]} : vector<8x384xbf16> to vector<8x128xbf16>
    %260 = vector.extract_strided_slice %240 {offsets = [0, 256], sizes = [8, 128], strides = [1, 1]} : vector<8x384xf32> to vector<8x128xf32>
    %261 = arith.addf %260, %18 : vector<8x128xf32>
    %262 = arith.mulf %249, %261 : vector<8x128xf32>
    %263 = arith.extf %259 : vector<8x128xbf16> to vector<8x128xf32>
    %264 = arith.addf %263, %262 : vector<8x128xf32>
    %265 = math.tanh %264 : vector<8x128xf32>
    %266 = arith.subf %235, %265 : vector<8x128xf32>
    %267 = arith.mulf %258, %266 : vector<8x128xf32>
    %268 = arith.addf %265, %267 : vector<8x128xf32>
    %c0_90 = arith.constant 0 : index
    %c0_91 = arith.constant 0 : index
    %c0_92 = arith.constant 0 : index
    %269 = vector.load %arg12[%c0_90, %c0_91, %c0_92] : memref<2x8x128xf32, #tpu.memory_space<vmem>>, vector<1x8x128xf32>
    %270 = vector.shape_cast %269 : vector<1x8x128xf32> to vector<8x128xf32>
    %271 = vector.shape_cast %268 : vector<8x128xf32> to vector<1x8x128xf32>
    tpu.vector_store %arg12[%c0_90, %c0_91, %c0_92], %271 {strides = array<i32>} : memref<2x8x128xf32, #tpu.memory_space<vmem>>, vector<1x8x128xf32>,
    %272 = arith.truncf %268 : vector<8x128xf32> to vector<8x128xbf16>
    %273 = arith.index_cast %c5_i32 : i32 to index
    %c0_93 = arith.constant 0 : index
    %c0_94 = arith.constant 0 : index
    %274 = vector.load %arg13[%273, %c0_93, %c0_94] : memref<8x8x128xbf16, #tpu.memory_space<vmem>>, vector<1x8x128xbf16>
    %275 = vector.shape_cast %274 : vector<1x8x128xbf16> to vector<8x128xbf16>
    %276 = vector.shape_cast %272 : vector<8x128xbf16> to vector<1x8x128xbf16>
    tpu.vector_store %arg13[%273, %c0_93, %c0_94], %276 {strides = array<i32>} : memref<8x8x128xbf16, #tpu.memory_space<vmem>>, vector<1x8x128xbf16>,
    %c6_i32 = arith.constant 6 : i32
    %c0_95 = arith.constant 0 : index
    %c0_96 = arith.constant 0 : index
    %c0_97 = arith.constant 0 : index
    %277 = vector.load %arg12[%c0_95, %c0_96, %c0_97] : memref<2x8x128xf32, #tpu.memory_space<vmem>>, vector<1x8x128xf32>
    %278 = vector.shape_cast %277 : vector<1x8x128xf32> to vector<8x128xf32>
    %279 = arith.index_cast %c6_i32 : i32 to index
    %c0_98 = arith.constant 0 : index
    %c0_99 = arith.constant 0 : index
    %280 = vector.load %arg14[%279, %c0_98, %c0_99] : memref<8x8x384xbf16, #tpu.memory_space<vmem>>, vector<1x8x384xbf16>
    %281 = vector.shape_cast %280 : vector<1x8x384xbf16> to vector<8x384xbf16>
    %282 = arith.truncf %278 : vector<8x128xf32> to vector<8x128xbf16>
    %cst_100 = arith.constant dense<0.000000e+00> : vector<8x384xf32>
    %283 = tpu.matmul %282, %14, %cst_100 {dimension_numbers = #tpu.dot_dimension_numbers<[1], [0], [0], [1], [0, 0, 1, 1], [], []>} : vector<8x128xbf16>, vector<128x384xbf16>, vector<8x384xf32> -> vector<8x384xf32>
    %284 = vector.extract_strided_slice %281 {offsets = [0, 0], sizes = [8, 128], strides = [1, 1]} : vector<8x384xbf16> to vector<8x128xbf16>
    %285 = vector.extract_strided_slice %283 {offsets = [0, 0], sizes = [8, 128], strides = [1, 1]} : vector<8x384xf32> to vector<8x128xf32>
    %286 = arith.extf %284 : vector<8x128xbf16> to vector<8x128xf32>
    %287 = arith.addf %286, %285 : vector<8x128xf32>
    %288 = arith.negf %287 : vector<8x128xf32>
    %289 = math.exp %288 : vector<8x128xf32>
    %cst_101 = arith.constant 1.000000e+00 : f32
    %290 = vector.broadcast %cst_101 : f32 to vector<8x128xf32>
    %291 = arith.addf %290, %289 : vector<8x128xf32>
    %292 = arith.divf %290, %291 : vector<8x128xf32>
    %293 = vector.extract_strided_slice %281 {offsets = [0, 128], sizes = [8, 128], strides = [1, 1]} : vector<8x384xbf16> to vector<8x128xbf16>
    %294 = vector.extract_strided_slice %283 {offsets = [0, 128], sizes = [8, 128], strides = [1, 1]} : vector<8x384xf32> to vector<8x128xf32>
    %295 = arith.extf %293 : vector<8x128xbf16> to vector<8x128xf32>
    %296 = arith.addf %295, %294 : vector<8x128xf32>
    %297 = arith.negf %296 : vector<8x128xf32>
    %298 = math.exp %297 : vector<8x128xf32>
    %cst_102 = arith.constant 1.000000e+00 : f32
    %299 = vector.broadcast %cst_102 : f32 to vector<8x128xf32>
    %300 = arith.addf %299, %298 : vector<8x128xf32>
    %301 = arith.divf %299, %300 : vector<8x128xf32>
    %302 = vector.extract_strided_slice %281 {offsets = [0, 256], sizes = [8, 128], strides = [1, 1]} : vector<8x384xbf16> to vector<8x128xbf16>
    %303 = vector.extract_strided_slice %283 {offsets = [0, 256], sizes = [8, 128], strides = [1, 1]} : vector<8x384xf32> to vector<8x128xf32>
    %304 = arith.addf %303, %18 : vector<8x128xf32>
    %305 = arith.mulf %292, %304 : vector<8x128xf32>
    %306 = arith.extf %302 : vector<8x128xbf16> to vector<8x128xf32>
    %307 = arith.addf %306, %305 : vector<8x128xf32>
    %308 = math.tanh %307 : vector<8x128xf32>
    %309 = arith.subf %278, %308 : vector<8x128xf32>
    %310 = arith.mulf %301, %309 : vector<8x128xf32>
    %311 = arith.addf %308, %310 : vector<8x128xf32>
    %c0_103 = arith.constant 0 : index
    %c0_104 = arith.constant 0 : index
    %c0_105 = arith.constant 0 : index
    %312 = vector.load %arg12[%c0_103, %c0_104, %c0_105] : memref<2x8x128xf32, #tpu.memory_space<vmem>>, vector<1x8x128xf32>
    %313 = vector.shape_cast %312 : vector<1x8x128xf32> to vector<8x128xf32>
    %314 = vector.shape_cast %311 : vector<8x128xf32> to vector<1x8x128xf32>
    tpu.vector_store %arg12[%c0_103, %c0_104, %c0_105], %314 {strides = array<i32>} : memref<2x8x128xf32, #tpu.memory_space<vmem>>, vector<1x8x128xf32>,
    %315 = arith.truncf %311 : vector<8x128xf32> to vector<8x128xbf16>
    %316 = arith.index_cast %c6_i32 : i32 to index
    %c0_106 = arith.constant 0 : index
    %c0_107 = arith.constant 0 : index
    %317 = vector.load %arg13[%316, %c0_106, %c0_107] : memref<8x8x128xbf16, #tpu.memory_space<vmem>>, vector<1x8x128xbf16>
    %318 = vector.shape_cast %317 : vector<1x8x128xbf16> to vector<8x128xbf16>
    %319 = vector.shape_cast %315 : vector<8x128xbf16> to vector<1x8x128xbf16>
    tpu.vector_store %arg13[%316, %c0_106, %c0_107], %319 {strides = array<i32>} : memref<8x8x128xbf16, #tpu.memory_space<vmem>>, vector<1x8x128xbf16>,
    %c7_i32 = arith.constant 7 : i32
    %c0_108 = arith.constant 0 : index
    %c0_109 = arith.constant 0 : index
    %c0_110 = arith.constant 0 : index
    %320 = vector.load %arg12[%c0_108, %c0_109, %c0_110] : memref<2x8x128xf32, #tpu.memory_space<vmem>>, vector<1x8x128xf32>
    %321 = vector.shape_cast %320 : vector<1x8x128xf32> to vector<8x128xf32>
    %322 = arith.index_cast %c7_i32 : i32 to index
    %c0_111 = arith.constant 0 : index
    %c0_112 = arith.constant 0 : index
    %323 = vector.load %arg14[%322, %c0_111, %c0_112] : memref<8x8x384xbf16, #tpu.memory_space<vmem>>, vector<1x8x384xbf16>
    %324 = vector.shape_cast %323 : vector<1x8x384xbf16> to vector<8x384xbf16>
    %325 = arith.truncf %321 : vector<8x128xf32> to vector<8x128xbf16>
    %cst_113 = arith.constant dense<0.000000e+00> : vector<8x384xf32>
    %326 = tpu.matmul %325, %14, %cst_113 {dimension_numbers = #tpu.dot_dimension_numbers<[1], [0], [0], [1], [0, 0, 1, 1], [], []>} : vector<8x128xbf16>, vector<128x384xbf16>, vector<8x384xf32> -> vector<8x384xf32>
    %327 = vector.extract_strided_slice %324 {offsets = [0, 0], sizes = [8, 128], strides = [1, 1]} : vector<8x384xbf16> to vector<8x128xbf16>
    %328 = vector.extract_strided_slice %326 {offsets = [0, 0], sizes = [8, 128], strides = [1, 1]} : vector<8x384xf32> to vector<8x128xf32>
    %329 = arith.extf %327 : vector<8x128xbf16> to vector<8x128xf32>
    %330 = arith.addf %329, %328 : vector<8x128xf32>
    %331 = arith.negf %330 : vector<8x128xf32>
    %332 = math.exp %331 : vector<8x128xf32>
    %cst_114 = arith.constant 1.000000e+00 : f32
    %333 = vector.broadcast %cst_114 : f32 to vector<8x128xf32>
    %334 = arith.addf %333, %332 : vector<8x128xf32>
    %335 = arith.divf %333, %334 : vector<8x128xf32>
    %336 = vector.extract_strided_slice %324 {offsets = [0, 128], sizes = [8, 128], strides = [1, 1]} : vector<8x384xbf16> to vector<8x128xbf16>
    %337 = vector.extract_strided_slice %326 {offsets = [0, 128], sizes = [8, 128], strides = [1, 1]} : vector<8x384xf32> to vector<8x128xf32>
    %338 = arith.extf %336 : vector<8x128xbf16> to vector<8x128xf32>
    %339 = arith.addf %338, %337 : vector<8x128xf32>
    %340 = arith.negf %339 : vector<8x128xf32>
    %341 = math.exp %340 : vector<8x128xf32>
    %cst_115 = arith.constant 1.000000e+00 : f32
    %342 = vector.broadcast %cst_115 : f32 to vector<8x128xf32>
    %343 = arith.addf %342, %341 : vector<8x128xf32>
    %344 = arith.divf %342, %343 : vector<8x128xf32>
    %345 = vector.extract_strided_slice %324 {offsets = [0, 256], sizes = [8, 128], strides = [1, 1]} : vector<8x384xbf16> to vector<8x128xbf16>
    %346 = vector.extract_strided_slice %326 {offsets = [0, 256], sizes = [8, 128], strides = [1, 1]} : vector<8x384xf32> to vector<8x128xf32>
    %347 = arith.addf %346, %18 : vector<8x128xf32>
    %348 = arith.mulf %335, %347 : vector<8x128xf32>
    %349 = arith.extf %345 : vector<8x128xbf16> to vector<8x128xf32>
    %350 = arith.addf %349, %348 : vector<8x128xf32>
    %351 = math.tanh %350 : vector<8x128xf32>
    %352 = arith.subf %321, %351 : vector<8x128xf32>
    %353 = arith.mulf %344, %352 : vector<8x128xf32>
    %354 = arith.addf %351, %353 : vector<8x128xf32>
    %c0_116 = arith.constant 0 : index
    %c0_117 = arith.constant 0 : index
    %c0_118 = arith.constant 0 : index
    %355 = vector.load %arg12[%c0_116, %c0_117, %c0_118] : memref<2x8x128xf32, #tpu.memory_space<vmem>>, vector<1x8x128xf32>
    %356 = vector.shape_cast %355 : vector<1x8x128xf32> to vector<8x128xf32>
    %357 = vector.shape_cast %354 : vector<8x128xf32> to vector<1x8x128xf32>
    tpu.vector_store %arg12[%c0_116, %c0_117, %c0_118], %357 {strides = array<i32>} : memref<2x8x128xf32, #tpu.memory_space<vmem>>, vector<1x8x128xf32>,
    %358 = arith.truncf %354 : vector<8x128xf32> to vector<8x128xbf16>
    %359 = arith.index_cast %c7_i32 : i32 to index
    %c0_119 = arith.constant 0 : index
    %c0_120 = arith.constant 0 : index
    %360 = vector.load %arg13[%359, %c0_119, %c0_120] : memref<8x8x128xbf16, #tpu.memory_space<vmem>>, vector<1x8x128xbf16>
    %361 = vector.shape_cast %360 : vector<1x8x128xbf16> to vector<8x128xbf16>
    %362 = vector.shape_cast %358 : vector<8x128xbf16> to vector<1x8x128xbf16>
    tpu.vector_store %arg13[%359, %c0_119, %c0_120], %362 {strides = array<i32>} : memref<8x8x128xbf16, #tpu.memory_space<vmem>>, vector<1x8x128xbf16>,
    %c8_i32 = arith.constant 8 : i32
    %c0_121 = arith.constant 0 : index
    %c0_122 = arith.constant 0 : index
    %c0_123 = arith.constant 0 : index
    %363 = vector.load %arg13[%c0_121, %c0_122, %c0_123] : memref<8x8x128xbf16, #tpu.memory_space<vmem>>, vector<8x8x128xbf16>
    %c0_124 = arith.constant 0 : index
    %c0_125 = arith.constant 0 : index
    %c0_126 = arith.constant 0 : index
    %364 = vector.load %arg5[%c0_124, %c0_125, %c0_126] : memref<1x128x384xbf16, #tpu.memory_space<vmem>>, vector<1x128x384xbf16>
    %365 = vector.shape_cast %364 : vector<1x128x384xbf16> to vector<128x384xbf16>
    %c0_127 = arith.constant 0 : index
    %c0_128 = arith.constant 0 : index
    %c0_129 = arith.constant 0 : index
    %366 = vector.load %arg6[%c0_127, %c0_128, %c0_129] : memref<1x1x384xf32, #tpu.memory_space<vmem>>, vector<1x1x384xf32>
    %367 = vector.shape_cast %366 : vector<1x1x384xf32> to vector<1x384xf32>
    %368 = vector.shape_cast %363 : vector<8x8x128xbf16> to vector<64x128xbf16>
    %cst_130 = arith.constant dense<0.000000e+00> : vector<64x384xf32>
    %369 = tpu.matmul %368, %365, %cst_130 {dimension_numbers = #tpu.dot_dimension_numbers<[1], [0], [0], [1], [0, 0, 1, 1], [], []>} : vector<64x128xbf16>, vector<128x384xbf16>, vector<64x384xf32> -> vector<64x384xf32>
    %370 = vector.broadcast %367 : vector<1x384xf32> to vector<64x384xf32>
    %371 = arith.addf %369, %370 : vector<64x384xf32>
    %372 = vector.shape_cast %371 : vector<64x384xf32> to vector<8x8x384xf32>
    %373 = arith.truncf %372 : vector<8x8x384xf32> to vector<8x8x384xbf16>
    %c0_131 = arith.constant 0 : index
    %c0_132 = arith.constant 0 : index
    %c0_133 = arith.constant 0 : index
    %374 = vector.load %arg14[%c0_131, %c0_132, %c0_133] : memref<8x8x384xbf16, #tpu.memory_space<vmem>>, vector<8x8x384xbf16>
    tpu.vector_store %arg14[%c0_131, %c0_132, %c0_133], %373 {strides = array<i32>} : memref<8x8x384xbf16, #tpu.memory_space<vmem>>, vector<8x8x384xbf16>,
    %c1 = arith.constant 1 : index
    %c0_134 = arith.constant 0 : index
    %c0_135 = arith.constant 0 : index
    %375 = vector.load %arg7[%c1, %c0_134, %c0_135] : memref<2x128x384xbf16, #tpu.memory_space<vmem>>, vector<1x128x384xbf16>
    %376 = vector.shape_cast %375 : vector<1x128x384xbf16> to vector<128x384xbf16>
    %c1_136 = arith.constant 1 : index
    %c0_137 = arith.constant 0 : index
    %c0_138 = arith.constant 0 : index
    %377 = vector.load %arg8[%c1_136, %c0_137, %c0_138] : memref<2x1x128xf32, #tpu.memory_space<vmem>>, vector<1x1x128xf32>
    %378 = vector.shape_cast %377 : vector<1x1x128xf32> to vector<1x128xf32>
    %379 = vector.shape_cast %378 : vector<1x128xf32> to vector<1x128xf32>
    %380 = vector.broadcast %379 : vector<1x128xf32> to vector<8x128xf32>
    %c0_i32_139 = arith.constant 0 : i32
    %c1_140 = arith.constant 1 : index
    %c0_141 = arith.constant 0 : index
    %c0_142 = arith.constant 0 : index
    %381 = vector.load %arg12[%c1_140, %c0_141, %c0_142] : memref<2x8x128xf32, #tpu.memory_space<vmem>>, vector<1x8x128xf32>
    %382 = vector.shape_cast %381 : vector<1x8x128xf32> to vector<8x128xf32>
    %383 = arith.index_cast %c0_i32_139 : i32 to index
    %c0_143 = arith.constant 0 : index
    %c0_144 = arith.constant 0 : index
    %384 = vector.load %arg14[%383, %c0_143, %c0_144] : memref<8x8x384xbf16, #tpu.memory_space<vmem>>, vector<1x8x384xbf16>
    %385 = vector.shape_cast %384 : vector<1x8x384xbf16> to vector<8x384xbf16>
    %386 = arith.truncf %382 : vector<8x128xf32> to vector<8x128xbf16>
    %cst_145 = arith.constant dense<0.000000e+00> : vector<8x384xf32>
    %387 = tpu.matmul %386, %376, %cst_145 {dimension_numbers = #tpu.dot_dimension_numbers<[1], [0], [0], [1], [0, 0, 1, 1], [], []>} : vector<8x128xbf16>, vector<128x384xbf16>, vector<8x384xf32> -> vector<8x384xf32>
    %388 = vector.extract_strided_slice %385 {offsets = [0, 0], sizes = [8, 128], strides = [1, 1]} : vector<8x384xbf16> to vector<8x128xbf16>
    %389 = vector.extract_strided_slice %387 {offsets = [0, 0], sizes = [8, 128], strides = [1, 1]} : vector<8x384xf32> to vector<8x128xf32>
    %390 = arith.extf %388 : vector<8x128xbf16> to vector<8x128xf32>
    %391 = arith.addf %390, %389 : vector<8x128xf32>
    %392 = arith.negf %391 : vector<8x128xf32>
    %393 = math.exp %392 : vector<8x128xf32>
    %cst_146 = arith.constant 1.000000e+00 : f32
    %394 = vector.broadcast %cst_146 : f32 to vector<8x128xf32>
    %395 = arith.addf %394, %393 : vector<8x128xf32>
    %396 = arith.divf %394, %395 : vector<8x128xf32>
    %397 = vector.extract_strided_slice %385 {offsets = [0, 128], sizes = [8, 128], strides = [1, 1]} : vector<8x384xbf16> to vector<8x128xbf16>
    %398 = vector.extract_strided_slice %387 {offsets = [0, 128], sizes = [8, 128], strides = [1, 1]} : vector<8x384xf32> to vector<8x128xf32>
    %399 = arith.extf %397 : vector<8x128xbf16> to vector<8x128xf32>
    %400 = arith.addf %399, %398 : vector<8x128xf32>
    %401 = arith.negf %400 : vector<8x128xf32>
    %402 = math.exp %401 : vector<8x128xf32>
    %cst_147 = arith.constant 1.000000e+00 : f32
    %403 = vector.broadcast %cst_147 : f32 to vector<8x128xf32>
    %404 = arith.addf %403, %402 : vector<8x128xf32>
    %405 = arith.divf %403, %404 : vector<8x128xf32>
    %406 = vector.extract_strided_slice %385 {offsets = [0, 256], sizes = [8, 128], strides = [1, 1]} : vector<8x384xbf16> to vector<8x128xbf16>
    %407 = vector.extract_strided_slice %387 {offsets = [0, 256], sizes = [8, 128], strides = [1, 1]} : vector<8x384xf32> to vector<8x128xf32>
    %408 = arith.addf %407, %380 : vector<8x128xf32>
    %409 = arith.mulf %396, %408 : vector<8x128xf32>
    %410 = arith.extf %406 : vector<8x128xbf16> to vector<8x128xf32>
    %411 = arith.addf %410, %409 : vector<8x128xf32>
    %412 = math.tanh %411 : vector<8x128xf32>
    %413 = arith.subf %382, %412 : vector<8x128xf32>
    %414 = arith.mulf %405, %413 : vector<8x128xf32>
    %415 = arith.addf %412, %414 : vector<8x128xf32>
    %c1_148 = arith.constant 1 : index
    %c0_149 = arith.constant 0 : index
    %c0_150 = arith.constant 0 : index
    %416 = vector.load %arg12[%c1_148, %c0_149, %c0_150] : memref<2x8x128xf32, #tpu.memory_space<vmem>>, vector<1x8x128xf32>
    %417 = vector.shape_cast %416 : vector<1x8x128xf32> to vector<8x128xf32>
    %418 = vector.shape_cast %415 : vector<8x128xf32> to vector<1x8x128xf32>
    tpu.vector_store %arg12[%c1_148, %c0_149, %c0_150], %418 {strides = array<i32>} : memref<2x8x128xf32, #tpu.memory_space<vmem>>, vector<1x8x128xf32>,
    %419 = arith.index_cast %c0_i32_139 : i32 to index
    %c0_151 = arith.constant 0 : index
    %c0_152 = arith.constant 0 : index
    %420 = vector.load %arg10[%419, %c0_151, %c0_152] : memref<8x8x128xf32, #tpu.memory_space<vmem>>, vector<1x8x128xf32>
    %421 = vector.shape_cast %420 : vector<1x8x128xf32> to vector<8x128xf32>
    %422 = vector.shape_cast %415 : vector<8x128xf32> to vector<1x8x128xf32>
    tpu.vector_store %arg10[%419, %c0_151, %c0_152], %422 {strides = array<i32>} : memref<8x8x128xf32, #tpu.memory_space<vmem>>, vector<1x8x128xf32>,
    %c1_i32_153 = arith.constant 1 : i32
    %c1_154 = arith.constant 1 : index
    %c0_155 = arith.constant 0 : index
    %c0_156 = arith.constant 0 : index
    %423 = vector.load %arg12[%c1_154, %c0_155, %c0_156] : memref<2x8x128xf32, #tpu.memory_space<vmem>>, vector<1x8x128xf32>
    %424 = vector.shape_cast %423 : vector<1x8x128xf32> to vector<8x128xf32>
    %425 = arith.index_cast %c1_i32_153 : i32 to index
    %c0_157 = arith.constant 0 : index
    %c0_158 = arith.constant 0 : index
    %426 = vector.load %arg14[%425, %c0_157, %c0_158] : memref<8x8x384xbf16, #tpu.memory_space<vmem>>, vector<1x8x384xbf16>
    %427 = vector.shape_cast %426 : vector<1x8x384xbf16> to vector<8x384xbf16>
    %428 = arith.truncf %424 : vector<8x128xf32> to vector<8x128xbf16>
    %cst_159 = arith.constant dense<0.000000e+00> : vector<8x384xf32>
    %429 = tpu.matmul %428, %376, %cst_159 {dimension_numbers = #tpu.dot_dimension_numbers<[1], [0], [0], [1], [0, 0, 1, 1], [], []>} : vector<8x128xbf16>, vector<128x384xbf16>, vector<8x384xf32> -> vector<8x384xf32>
    %430 = vector.extract_strided_slice %427 {offsets = [0, 0], sizes = [8, 128], strides = [1, 1]} : vector<8x384xbf16> to vector<8x128xbf16>
    %431 = vector.extract_strided_slice %429 {offsets = [0, 0], sizes = [8, 128], strides = [1, 1]} : vector<8x384xf32> to vector<8x128xf32>
    %432 = arith.extf %430 : vector<8x128xbf16> to vector<8x128xf32>
    %433 = arith.addf %432, %431 : vector<8x128xf32>
    %434 = arith.negf %433 : vector<8x128xf32>
    %435 = math.exp %434 : vector<8x128xf32>
    %cst_160 = arith.constant 1.000000e+00 : f32
    %436 = vector.broadcast %cst_160 : f32 to vector<8x128xf32>
    %437 = arith.addf %436, %435 : vector<8x128xf32>
    %438 = arith.divf %436, %437 : vector<8x128xf32>
    %439 = vector.extract_strided_slice %427 {offsets = [0, 128], sizes = [8, 128], strides = [1, 1]} : vector<8x384xbf16> to vector<8x128xbf16>
    %440 = vector.extract_strided_slice %429 {offsets = [0, 128], sizes = [8, 128], strides = [1, 1]} : vector<8x384xf32> to vector<8x128xf32>
    %441 = arith.extf %439 : vector<8x128xbf16> to vector<8x128xf32>
    %442 = arith.addf %441, %440 : vector<8x128xf32>
    %443 = arith.negf %442 : vector<8x128xf32>
    %444 = math.exp %443 : vector<8x128xf32>
    %cst_161 = arith.constant 1.000000e+00 : f32
    %445 = vector.broadcast %cst_161 : f32 to vector<8x128xf32>
    %446 = arith.addf %445, %444 : vector<8x128xf32>
    %447 = arith.divf %445, %446 : vector<8x128xf32>
    %448 = vector.extract_strided_slice %427 {offsets = [0, 256], sizes = [8, 128], strides = [1, 1]} : vector<8x384xbf16> to vector<8x128xbf16>
    %449 = vector.extract_strided_slice %429 {offsets = [0, 256], sizes = [8, 128], strides = [1, 1]} : vector<8x384xf32> to vector<8x128xf32>
    %450 = arith.addf %449, %380 : vector<8x128xf32>
    %451 = arith.mulf %438, %450 : vector<8x128xf32>
    %452 = arith.extf %448 : vector<8x128xbf16> to vector<8x128xf32>
    %453 = arith.addf %452, %451 : vector<8x128xf32>
    %454 = math.tanh %453 : vector<8x128xf32>
    %455 = arith.subf %424, %454 : vector<8x128xf32>
    %456 = arith.mulf %447, %455 : vector<8x128xf32>
    %457 = arith.addf %454, %456 : vector<8x128xf32>
    %c1_162 = arith.constant 1 : index
    %c0_163 = arith.constant 0 : index
    %c0_164 = arith.constant 0 : index
    %458 = vector.load %arg12[%c1_162, %c0_163, %c0_164] : memref<2x8x128xf32, #tpu.memory_space<vmem>>, vector<1x8x128xf32>
    %459 = vector.shape_cast %458 : vector<1x8x128xf32> to vector<8x128xf32>
    %460 = vector.shape_cast %457 : vector<8x128xf32> to vector<1x8x128xf32>
    tpu.vector_store %arg12[%c1_162, %c0_163, %c0_164], %460 {strides = array<i32>} : memref<2x8x128xf32, #tpu.memory_space<vmem>>, vector<1x8x128xf32>,
    %461 = arith.index_cast %c1_i32_153 : i32 to index
    %c0_165 = arith.constant 0 : index
    %c0_166 = arith.constant 0 : index
    %462 = vector.load %arg10[%461, %c0_165, %c0_166] : memref<8x8x128xf32, #tpu.memory_space<vmem>>, vector<1x8x128xf32>
    %463 = vector.shape_cast %462 : vector<1x8x128xf32> to vector<8x128xf32>
    %464 = vector.shape_cast %457 : vector<8x128xf32> to vector<1x8x128xf32>
    tpu.vector_store %arg10[%461, %c0_165, %c0_166], %464 {strides = array<i32>} : memref<8x8x128xf32, #tpu.memory_space<vmem>>, vector<1x8x128xf32>,
    %c2_i32_167 = arith.constant 2 : i32
    %c1_168 = arith.constant 1 : index
    %c0_169 = arith.constant 0 : index
    %c0_170 = arith.constant 0 : index
    %465 = vector.load %arg12[%c1_168, %c0_169, %c0_170] : memref<2x8x128xf32, #tpu.memory_space<vmem>>, vector<1x8x128xf32>
    %466 = vector.shape_cast %465 : vector<1x8x128xf32> to vector<8x128xf32>
    %467 = arith.index_cast %c2_i32_167 : i32 to index
    %c0_171 = arith.constant 0 : index
    %c0_172 = arith.constant 0 : index
    %468 = vector.load %arg14[%467, %c0_171, %c0_172] : memref<8x8x384xbf16, #tpu.memory_space<vmem>>, vector<1x8x384xbf16>
    %469 = vector.shape_cast %468 : vector<1x8x384xbf16> to vector<8x384xbf16>
    %470 = arith.truncf %466 : vector<8x128xf32> to vector<8x128xbf16>
    %cst_173 = arith.constant dense<0.000000e+00> : vector<8x384xf32>
    %471 = tpu.matmul %470, %376, %cst_173 {dimension_numbers = #tpu.dot_dimension_numbers<[1], [0], [0], [1], [0, 0, 1, 1], [], []>} : vector<8x128xbf16>, vector<128x384xbf16>, vector<8x384xf32> -> vector<8x384xf32>
    %472 = vector.extract_strided_slice %469 {offsets = [0, 0], sizes = [8, 128], strides = [1, 1]} : vector<8x384xbf16> to vector<8x128xbf16>
    %473 = vector.extract_strided_slice %471 {offsets = [0, 0], sizes = [8, 128], strides = [1, 1]} : vector<8x384xf32> to vector<8x128xf32>
    %474 = arith.extf %472 : vector<8x128xbf16> to vector<8x128xf32>
    %475 = arith.addf %474, %473 : vector<8x128xf32>
    %476 = arith.negf %475 : vector<8x128xf32>
    %477 = math.exp %476 : vector<8x128xf32>
    %cst_174 = arith.constant 1.000000e+00 : f32
    %478 = vector.broadcast %cst_174 : f32 to vector<8x128xf32>
    %479 = arith.addf %478, %477 : vector<8x128xf32>
    %480 = arith.divf %478, %479 : vector<8x128xf32>
    %481 = vector.extract_strided_slice %469 {offsets = [0, 128], sizes = [8, 128], strides = [1, 1]} : vector<8x384xbf16> to vector<8x128xbf16>
    %482 = vector.extract_strided_slice %471 {offsets = [0, 128], sizes = [8, 128], strides = [1, 1]} : vector<8x384xf32> to vector<8x128xf32>
    %483 = arith.extf %481 : vector<8x128xbf16> to vector<8x128xf32>
    %484 = arith.addf %483, %482 : vector<8x128xf32>
    %485 = arith.negf %484 : vector<8x128xf32>
    %486 = math.exp %485 : vector<8x128xf32>
    %cst_175 = arith.constant 1.000000e+00 : f32
    %487 = vector.broadcast %cst_175 : f32 to vector<8x128xf32>
    %488 = arith.addf %487, %486 : vector<8x128xf32>
    %489 = arith.divf %487, %488 : vector<8x128xf32>
    %490 = vector.extract_strided_slice %469 {offsets = [0, 256], sizes = [8, 128], strides = [1, 1]} : vector<8x384xbf16> to vector<8x128xbf16>
    %491 = vector.extract_strided_slice %471 {offsets = [0, 256], sizes = [8, 128], strides = [1, 1]} : vector<8x384xf32> to vector<8x128xf32>
    %492 = arith.addf %491, %380 : vector<8x128xf32>
    %493 = arith.mulf %480, %492 : vector<8x128xf32>
    %494 = arith.extf %490 : vector<8x128xbf16> to vector<8x128xf32>
    %495 = arith.addf %494, %493 : vector<8x128xf32>
    %496 = math.tanh %495 : vector<8x128xf32>
    %497 = arith.subf %466, %496 : vector<8x128xf32>
    %498 = arith.mulf %489, %497 : vector<8x128xf32>
    %499 = arith.addf %496, %498 : vector<8x128xf32>
    %c1_176 = arith.constant 1 : index
    %c0_177 = arith.constant 0 : index
    %c0_178 = arith.constant 0 : index
    %500 = vector.load %arg12[%c1_176, %c0_177, %c0_178] : memref<2x8x128xf32, #tpu.memory_space<vmem>>, vector<1x8x128xf32>
    %501 = vector.shape_cast %500 : vector<1x8x128xf32> to vector<8x128xf32>
    %502 = vector.shape_cast %499 : vector<8x128xf32> to vector<1x8x128xf32>
    tpu.vector_store %arg12[%c1_176, %c0_177, %c0_178], %502 {strides = array<i32>} : memref<2x8x128xf32, #tpu.memory_space<vmem>>, vector<1x8x128xf32>,
    %503 = arith.index_cast %c2_i32_167 : i32 to index
    %c0_179 = arith.constant 0 : index
    %c0_180 = arith.constant 0 : index
    %504 = vector.load %arg10[%503, %c0_179, %c0_180] : memref<8x8x128xf32, #tpu.memory_space<vmem>>, vector<1x8x128xf32>
    %505 = vector.shape_cast %504 : vector<1x8x128xf32> to vector<8x128xf32>
    %506 = vector.shape_cast %499 : vector<8x128xf32> to vector<1x8x128xf32>
    tpu.vector_store %arg10[%503, %c0_179, %c0_180], %506 {strides = array<i32>} : memref<8x8x128xf32, #tpu.memory_space<vmem>>, vector<1x8x128xf32>,
    %c3_i32_181 = arith.constant 3 : i32
    %c1_182 = arith.constant 1 : index
    %c0_183 = arith.constant 0 : index
    %c0_184 = arith.constant 0 : index
    %507 = vector.load %arg12[%c1_182, %c0_183, %c0_184] : memref<2x8x128xf32, #tpu.memory_space<vmem>>, vector<1x8x128xf32>
    %508 = vector.shape_cast %507 : vector<1x8x128xf32> to vector<8x128xf32>
    %509 = arith.index_cast %c3_i32_181 : i32 to index
    %c0_185 = arith.constant 0 : index
    %c0_186 = arith.constant 0 : index
    %510 = vector.load %arg14[%509, %c0_185, %c0_186] : memref<8x8x384xbf16, #tpu.memory_space<vmem>>, vector<1x8x384xbf16>
    %511 = vector.shape_cast %510 : vector<1x8x384xbf16> to vector<8x384xbf16>
    %512 = arith.truncf %508 : vector<8x128xf32> to vector<8x128xbf16>
    %cst_187 = arith.constant dense<0.000000e+00> : vector<8x384xf32>
    %513 = tpu.matmul %512, %376, %cst_187 {dimension_numbers = #tpu.dot_dimension_numbers<[1], [0], [0], [1], [0, 0, 1, 1], [], []>} : vector<8x128xbf16>, vector<128x384xbf16>, vector<8x384xf32> -> vector<8x384xf32>
    %514 = vector.extract_strided_slice %511 {offsets = [0, 0], sizes = [8, 128], strides = [1, 1]} : vector<8x384xbf16> to vector<8x128xbf16>
    %515 = vector.extract_strided_slice %513 {offsets = [0, 0], sizes = [8, 128], strides = [1, 1]} : vector<8x384xf32> to vector<8x128xf32>
    %516 = arith.extf %514 : vector<8x128xbf16> to vector<8x128xf32>
    %517 = arith.addf %516, %515 : vector<8x128xf32>
    %518 = arith.negf %517 : vector<8x128xf32>
    %519 = math.exp %518 : vector<8x128xf32>
    %cst_188 = arith.constant 1.000000e+00 : f32
    %520 = vector.broadcast %cst_188 : f32 to vector<8x128xf32>
    %521 = arith.addf %520, %519 : vector<8x128xf32>
    %522 = arith.divf %520, %521 : vector<8x128xf32>
    %523 = vector.extract_strided_slice %511 {offsets = [0, 128], sizes = [8, 128], strides = [1, 1]} : vector<8x384xbf16> to vector<8x128xbf16>
    %524 = vector.extract_strided_slice %513 {offsets = [0, 128], sizes = [8, 128], strides = [1, 1]} : vector<8x384xf32> to vector<8x128xf32>
    %525 = arith.extf %523 : vector<8x128xbf16> to vector<8x128xf32>
    %526 = arith.addf %525, %524 : vector<8x128xf32>
    %527 = arith.negf %526 : vector<8x128xf32>
    %528 = math.exp %527 : vector<8x128xf32>
    %cst_189 = arith.constant 1.000000e+00 : f32
    %529 = vector.broadcast %cst_189 : f32 to vector<8x128xf32>
    %530 = arith.addf %529, %528 : vector<8x128xf32>
    %531 = arith.divf %529, %530 : vector<8x128xf32>
    %532 = vector.extract_strided_slice %511 {offsets = [0, 256], sizes = [8, 128], strides = [1, 1]} : vector<8x384xbf16> to vector<8x128xbf16>
    %533 = vector.extract_strided_slice %513 {offsets = [0, 256], sizes = [8, 128], strides = [1, 1]} : vector<8x384xf32> to vector<8x128xf32>
    %534 = arith.addf %533, %380 : vector<8x128xf32>
    %535 = arith.mulf %522, %534 : vector<8x128xf32>
    %536 = arith.extf %532 : vector<8x128xbf16> to vector<8x128xf32>
    %537 = arith.addf %536, %535 : vector<8x128xf32>
    %538 = math.tanh %537 : vector<8x128xf32>
    %539 = arith.subf %508, %538 : vector<8x128xf32>
    %540 = arith.mulf %531, %539 : vector<8x128xf32>
    %541 = arith.addf %538, %540 : vector<8x128xf32>
    %c1_190 = arith.constant 1 : index
    %c0_191 = arith.constant 0 : index
    %c0_192 = arith.constant 0 : index
    %542 = vector.load %arg12[%c1_190, %c0_191, %c0_192] : memref<2x8x128xf32, #tpu.memory_space<vmem>>, vector<1x8x128xf32>
    %543 = vector.shape_cast %542 : vector<1x8x128xf32> to vector<8x128xf32>
    %544 = vector.shape_cast %541 : vector<8x128xf32> to vector<1x8x128xf32>
    tpu.vector_store %arg12[%c1_190, %c0_191, %c0_192], %544 {strides = array<i32>} : memref<2x8x128xf32, #tpu.memory_space<vmem>>, vector<1x8x128xf32>,
    %545 = arith.index_cast %c3_i32_181 : i32 to index
    %c0_193 = arith.constant 0 : index
    %c0_194 = arith.constant 0 : index
    %546 = vector.load %arg10[%545, %c0_193, %c0_194] : memref<8x8x128xf32, #tpu.memory_space<vmem>>, vector<1x8x128xf32>
    %547 = vector.shape_cast %546 : vector<1x8x128xf32> to vector<8x128xf32>
    %548 = vector.shape_cast %541 : vector<8x128xf32> to vector<1x8x128xf32>
    tpu.vector_store %arg10[%545, %c0_193, %c0_194], %548 {strides = array<i32>} : memref<8x8x128xf32, #tpu.memory_space<vmem>>, vector<1x8x128xf32>,
    %c4_i32_195 = arith.constant 4 : i32
    %c1_196 = arith.constant 1 : index
    %c0_197 = arith.constant 0 : index
    %c0_198 = arith.constant 0 : index
    %549 = vector.load %arg12[%c1_196, %c0_197, %c0_198] : memref<2x8x128xf32, #tpu.memory_space<vmem>>, vector<1x8x128xf32>
    %550 = vector.shape_cast %549 : vector<1x8x128xf32> to vector<8x128xf32>
    %551 = arith.index_cast %c4_i32_195 : i32 to index
    %c0_199 = arith.constant 0 : index
    %c0_200 = arith.constant 0 : index
    %552 = vector.load %arg14[%551, %c0_199, %c0_200] : memref<8x8x384xbf16, #tpu.memory_space<vmem>>, vector<1x8x384xbf16>
    %553 = vector.shape_cast %552 : vector<1x8x384xbf16> to vector<8x384xbf16>
    %554 = arith.truncf %550 : vector<8x128xf32> to vector<8x128xbf16>
    %cst_201 = arith.constant dense<0.000000e+00> : vector<8x384xf32>
    %555 = tpu.matmul %554, %376, %cst_201 {dimension_numbers = #tpu.dot_dimension_numbers<[1], [0], [0], [1], [0, 0, 1, 1], [], []>} : vector<8x128xbf16>, vector<128x384xbf16>, vector<8x384xf32> -> vector<8x384xf32>
    %556 = vector.extract_strided_slice %553 {offsets = [0, 0], sizes = [8, 128], strides = [1, 1]} : vector<8x384xbf16> to vector<8x128xbf16>
    %557 = vector.extract_strided_slice %555 {offsets = [0, 0], sizes = [8, 128], strides = [1, 1]} : vector<8x384xf32> to vector<8x128xf32>
    %558 = arith.extf %556 : vector<8x128xbf16> to vector<8x128xf32>
    %559 = arith.addf %558, %557 : vector<8x128xf32>
    %560 = arith.negf %559 : vector<8x128xf32>
    %561 = math.exp %560 : vector<8x128xf32>
    %cst_202 = arith.constant 1.000000e+00 : f32
    %562 = vector.broadcast %cst_202 : f32 to vector<8x128xf32>
    %563 = arith.addf %562, %561 : vector<8x128xf32>
    %564 = arith.divf %562, %563 : vector<8x128xf32>
    %565 = vector.extract_strided_slice %553 {offsets = [0, 128], sizes = [8, 128], strides = [1, 1]} : vector<8x384xbf16> to vector<8x128xbf16>
    %566 = vector.extract_strided_slice %555 {offsets = [0, 128], sizes = [8, 128], strides = [1, 1]} : vector<8x384xf32> to vector<8x128xf32>
    %567 = arith.extf %565 : vector<8x128xbf16> to vector<8x128xf32>
    %568 = arith.addf %567, %566 : vector<8x128xf32>
    %569 = arith.negf %568 : vector<8x128xf32>
    %570 = math.exp %569 : vector<8x128xf32>
    %cst_203 = arith.constant 1.000000e+00 : f32
    %571 = vector.broadcast %cst_203 : f32 to vector<8x128xf32>
    %572 = arith.addf %571, %570 : vector<8x128xf32>
    %573 = arith.divf %571, %572 : vector<8x128xf32>
    %574 = vector.extract_strided_slice %553 {offsets = [0, 256], sizes = [8, 128], strides = [1, 1]} : vector<8x384xbf16> to vector<8x128xbf16>
    %575 = vector.extract_strided_slice %555 {offsets = [0, 256], sizes = [8, 128], strides = [1, 1]} : vector<8x384xf32> to vector<8x128xf32>
    %576 = arith.addf %575, %380 : vector<8x128xf32>
    %577 = arith.mulf %564, %576 : vector<8x128xf32>
    %578 = arith.extf %574 : vector<8x128xbf16> to vector<8x128xf32>
    %579 = arith.addf %578, %577 : vector<8x128xf32>
    %580 = math.tanh %579 : vector<8x128xf32>
    %581 = arith.subf %550, %580 : vector<8x128xf32>
    %582 = arith.mulf %573, %581 : vector<8x128xf32>
    %583 = arith.addf %580, %582 : vector<8x128xf32>
    %c1_204 = arith.constant 1 : index
    %c0_205 = arith.constant 0 : index
    %c0_206 = arith.constant 0 : index
    %584 = vector.load %arg12[%c1_204, %c0_205, %c0_206] : memref<2x8x128xf32, #tpu.memory_space<vmem>>, vector<1x8x128xf32>
    %585 = vector.shape_cast %584 : vector<1x8x128xf32> to vector<8x128xf32>
    %586 = vector.shape_cast %583 : vector<8x128xf32> to vector<1x8x128xf32>
    tpu.vector_store %arg12[%c1_204, %c0_205, %c0_206], %586 {strides = array<i32>} : memref<2x8x128xf32, #tpu.memory_space<vmem>>, vector<1x8x128xf32>,
    %587 = arith.index_cast %c4_i32_195 : i32 to index
    %c0_207 = arith.constant 0 : index
    %c0_208 = arith.constant 0 : index
    %588 = vector.load %arg10[%587, %c0_207, %c0_208] : memref<8x8x128xf32, #tpu.memory_space<vmem>>, vector<1x8x128xf32>
    %589 = vector.shape_cast %588 : vector<1x8x128xf32> to vector<8x128xf32>
    %590 = vector.shape_cast %583 : vector<8x128xf32> to vector<1x8x128xf32>
    tpu.vector_store %arg10[%587, %c0_207, %c0_208], %590 {strides = array<i32>} : memref<8x8x128xf32, #tpu.memory_space<vmem>>, vector<1x8x128xf32>,
    %c5_i32_209 = arith.constant 5 : i32
    %c1_210 = arith.constant 1 : index
    %c0_211 = arith.constant 0 : index
    %c0_212 = arith.constant 0 : index
    %591 = vector.load %arg12[%c1_210, %c0_211, %c0_212] : memref<2x8x128xf32, #tpu.memory_space<vmem>>, vector<1x8x128xf32>
    %592 = vector.shape_cast %591 : vector<1x8x128xf32> to vector<8x128xf32>
    %593 = arith.index_cast %c5_i32_209 : i32 to index
    %c0_213 = arith.constant 0 : index
    %c0_214 = arith.constant 0 : index
    %594 = vector.load %arg14[%593, %c0_213, %c0_214] : memref<8x8x384xbf16, #tpu.memory_space<vmem>>, vector<1x8x384xbf16>
    %595 = vector.shape_cast %594 : vector<1x8x384xbf16> to vector<8x384xbf16>
    %596 = arith.truncf %592 : vector<8x128xf32> to vector<8x128xbf16>
    %cst_215 = arith.constant dense<0.000000e+00> : vector<8x384xf32>
    %597 = tpu.matmul %596, %376, %cst_215 {dimension_numbers = #tpu.dot_dimension_numbers<[1], [0], [0], [1], [0, 0, 1, 1], [], []>} : vector<8x128xbf16>, vector<128x384xbf16>, vector<8x384xf32> -> vector<8x384xf32>
    %598 = vector.extract_strided_slice %595 {offsets = [0, 0], sizes = [8, 128], strides = [1, 1]} : vector<8x384xbf16> to vector<8x128xbf16>
    %599 = vector.extract_strided_slice %597 {offsets = [0, 0], sizes = [8, 128], strides = [1, 1]} : vector<8x384xf32> to vector<8x128xf32>
    %600 = arith.extf %598 : vector<8x128xbf16> to vector<8x128xf32>
    %601 = arith.addf %600, %599 : vector<8x128xf32>
    %602 = arith.negf %601 : vector<8x128xf32>
    %603 = math.exp %602 : vector<8x128xf32>
    %cst_216 = arith.constant 1.000000e+00 : f32
    %604 = vector.broadcast %cst_216 : f32 to vector<8x128xf32>
    %605 = arith.addf %604, %603 : vector<8x128xf32>
    %606 = arith.divf %604, %605 : vector<8x128xf32>
    %607 = vector.extract_strided_slice %595 {offsets = [0, 128], sizes = [8, 128], strides = [1, 1]} : vector<8x384xbf16> to vector<8x128xbf16>
    %608 = vector.extract_strided_slice %597 {offsets = [0, 128], sizes = [8, 128], strides = [1, 1]} : vector<8x384xf32> to vector<8x128xf32>
    %609 = arith.extf %607 : vector<8x128xbf16> to vector<8x128xf32>
    %610 = arith.addf %609, %608 : vector<8x128xf32>
    %611 = arith.negf %610 : vector<8x128xf32>
    %612 = math.exp %611 : vector<8x128xf32>
    %cst_217 = arith.constant 1.000000e+00 : f32
    %613 = vector.broadcast %cst_217 : f32 to vector<8x128xf32>
    %614 = arith.addf %613, %612 : vector<8x128xf32>
    %615 = arith.divf %613, %614 : vector<8x128xf32>
    %616 = vector.extract_strided_slice %595 {offsets = [0, 256], sizes = [8, 128], strides = [1, 1]} : vector<8x384xbf16> to vector<8x128xbf16>
    %617 = vector.extract_strided_slice %597 {offsets = [0, 256], sizes = [8, 128], strides = [1, 1]} : vector<8x384xf32> to vector<8x128xf32>
    %618 = arith.addf %617, %380 : vector<8x128xf32>
    %619 = arith.mulf %606, %618 : vector<8x128xf32>
    %620 = arith.extf %616 : vector<8x128xbf16> to vector<8x128xf32>
    %621 = arith.addf %620, %619 : vector<8x128xf32>
    %622 = math.tanh %621 : vector<8x128xf32>
    %623 = arith.subf %592, %622 : vector<8x128xf32>
    %624 = arith.mulf %615, %623 : vector<8x128xf32>
    %625 = arith.addf %622, %624 : vector<8x128xf32>
    %c1_218 = arith.constant 1 : index
    %c0_219 = arith.constant 0 : index
    %c0_220 = arith.constant 0 : index
    %626 = vector.load %arg12[%c1_218, %c0_219, %c0_220] : memref<2x8x128xf32, #tpu.memory_space<vmem>>, vector<1x8x128xf32>
    %627 = vector.shape_cast %626 : vector<1x8x128xf32> to vector<8x128xf32>
    %628 = vector.shape_cast %625 : vector<8x128xf32> to vector<1x8x128xf32>
    tpu.vector_store %arg12[%c1_218, %c0_219, %c0_220], %628 {strides = array<i32>} : memref<2x8x128xf32, #tpu.memory_space<vmem>>, vector<1x8x128xf32>,
    %629 = arith.index_cast %c5_i32_209 : i32 to index
    %c0_221 = arith.constant 0 : index
    %c0_222 = arith.constant 0 : index
    %630 = vector.load %arg10[%629, %c0_221, %c0_222] : memref<8x8x128xf32, #tpu.memory_space<vmem>>, vector<1x8x128xf32>
    %631 = vector.shape_cast %630 : vector<1x8x128xf32> to vector<8x128xf32>
    %632 = vector.shape_cast %625 : vector<8x128xf32> to vector<1x8x128xf32>
    tpu.vector_store %arg10[%629, %c0_221, %c0_222], %632 {strides = array<i32>} : memref<8x8x128xf32, #tpu.memory_space<vmem>>, vector<1x8x128xf32>,
    %c6_i32_223 = arith.constant 6 : i32
    %c1_224 = arith.constant 1 : index
    %c0_225 = arith.constant 0 : index
    %c0_226 = arith.constant 0 : index
    %633 = vector.load %arg12[%c1_224, %c0_225, %c0_226] : memref<2x8x128xf32, #tpu.memory_space<vmem>>, vector<1x8x128xf32>
    %634 = vector.shape_cast %633 : vector<1x8x128xf32> to vector<8x128xf32>
    %635 = arith.index_cast %c6_i32_223 : i32 to index
    %c0_227 = arith.constant 0 : index
    %c0_228 = arith.constant 0 : index
    %636 = vector.load %arg14[%635, %c0_227, %c0_228] : memref<8x8x384xbf16, #tpu.memory_space<vmem>>, vector<1x8x384xbf16>
    %637 = vector.shape_cast %636 : vector<1x8x384xbf16> to vector<8x384xbf16>
    %638 = arith.truncf %634 : vector<8x128xf32> to vector<8x128xbf16>
    %cst_229 = arith.constant dense<0.000000e+00> : vector<8x384xf32>
    %639 = tpu.matmul %638, %376, %cst_229 {dimension_numbers = #tpu.dot_dimension_numbers<[1], [0], [0], [1], [0, 0, 1, 1], [], []>} : vector<8x128xbf16>, vector<128x384xbf16>, vector<8x384xf32> -> vector<8x384xf32>
    %640 = vector.extract_strided_slice %637 {offsets = [0, 0], sizes = [8, 128], strides = [1, 1]} : vector<8x384xbf16> to vector<8x128xbf16>
    %641 = vector.extract_strided_slice %639 {offsets = [0, 0], sizes = [8, 128], strides = [1, 1]} : vector<8x384xf32> to vector<8x128xf32>
    %642 = arith.extf %640 : vector<8x128xbf16> to vector<8x128xf32>
    %643 = arith.addf %642, %641 : vector<8x128xf32>
    %644 = arith.negf %643 : vector<8x128xf32>
    %645 = math.exp %644 : vector<8x128xf32>
    %cst_230 = arith.constant 1.000000e+00 : f32
    %646 = vector.broadcast %cst_230 : f32 to vector<8x128xf32>
    %647 = arith.addf %646, %645 : vector<8x128xf32>
    %648 = arith.divf %646, %647 : vector<8x128xf32>
    %649 = vector.extract_strided_slice %637 {offsets = [0, 128], sizes = [8, 128], strides = [1, 1]} : vector<8x384xbf16> to vector<8x128xbf16>
    %650 = vector.extract_strided_slice %639 {offsets = [0, 128], sizes = [8, 128], strides = [1, 1]} : vector<8x384xf32> to vector<8x128xf32>
    %651 = arith.extf %649 : vector<8x128xbf16> to vector<8x128xf32>
    %652 = arith.addf %651, %650 : vector<8x128xf32>
    %653 = arith.negf %652 : vector<8x128xf32>
    %654 = math.exp %653 : vector<8x128xf32>
    %cst_231 = arith.constant 1.000000e+00 : f32
    %655 = vector.broadcast %cst_231 : f32 to vector<8x128xf32>
    %656 = arith.addf %655, %654 : vector<8x128xf32>
    %657 = arith.divf %655, %656 : vector<8x128xf32>
    %658 = vector.extract_strided_slice %637 {offsets = [0, 256], sizes = [8, 128], strides = [1, 1]} : vector<8x384xbf16> to vector<8x128xbf16>
    %659 = vector.extract_strided_slice %639 {offsets = [0, 256], sizes = [8, 128], strides = [1, 1]} : vector<8x384xf32> to vector<8x128xf32>
    %660 = arith.addf %659, %380 : vector<8x128xf32>
    %661 = arith.mulf %648, %660 : vector<8x128xf32>
    %662 = arith.extf %658 : vector<8x128xbf16> to vector<8x128xf32>
    %663 = arith.addf %662, %661 : vector<8x128xf32>
    %664 = math.tanh %663 : vector<8x128xf32>
    %665 = arith.subf %634, %664 : vector<8x128xf32>
    %666 = arith.mulf %657, %665 : vector<8x128xf32>
    %667 = arith.addf %664, %666 : vector<8x128xf32>
    %c1_232 = arith.constant 1 : index
    %c0_233 = arith.constant 0 : index
    %c0_234 = arith.constant 0 : index
    %668 = vector.load %arg12[%c1_232, %c0_233, %c0_234] : memref<2x8x128xf32, #tpu.memory_space<vmem>>, vector<1x8x128xf32>
    %669 = vector.shape_cast %668 : vector<1x8x128xf32> to vector<8x128xf32>
    %670 = vector.shape_cast %667 : vector<8x128xf32> to vector<1x8x128xf32>
    tpu.vector_store %arg12[%c1_232, %c0_233, %c0_234], %670 {strides = array<i32>} : memref<2x8x128xf32, #tpu.memory_space<vmem>>, vector<1x8x128xf32>,
    %671 = arith.index_cast %c6_i32_223 : i32 to index
    %c0_235 = arith.constant 0 : index
    %c0_236 = arith.constant 0 : index
    %672 = vector.load %arg10[%671, %c0_235, %c0_236] : memref<8x8x128xf32, #tpu.memory_space<vmem>>, vector<1x8x128xf32>
    %673 = vector.shape_cast %672 : vector<1x8x128xf32> to vector<8x128xf32>
    %674 = vector.shape_cast %667 : vector<8x128xf32> to vector<1x8x128xf32>
    tpu.vector_store %arg10[%671, %c0_235, %c0_236], %674 {strides = array<i32>} : memref<8x8x128xf32, #tpu.memory_space<vmem>>, vector<1x8x128xf32>,
    %c7_i32_237 = arith.constant 7 : i32
    %c1_238 = arith.constant 1 : index
    %c0_239 = arith.constant 0 : index
    %c0_240 = arith.constant 0 : index
    %675 = vector.load %arg12[%c1_238, %c0_239, %c0_240] : memref<2x8x128xf32, #tpu.memory_space<vmem>>, vector<1x8x128xf32>
    %676 = vector.shape_cast %675 : vector<1x8x128xf32> to vector<8x128xf32>
    %677 = arith.index_cast %c7_i32_237 : i32 to index
    %c0_241 = arith.constant 0 : index
    %c0_242 = arith.constant 0 : index
    %678 = vector.load %arg14[%677, %c0_241, %c0_242] : memref<8x8x384xbf16, #tpu.memory_space<vmem>>, vector<1x8x384xbf16>
    %679 = vector.shape_cast %678 : vector<1x8x384xbf16> to vector<8x384xbf16>
    %680 = arith.truncf %676 : vector<8x128xf32> to vector<8x128xbf16>
    %cst_243 = arith.constant dense<0.000000e+00> : vector<8x384xf32>
    %681 = tpu.matmul %680, %376, %cst_243 {dimension_numbers = #tpu.dot_dimension_numbers<[1], [0], [0], [1], [0, 0, 1, 1], [], []>} : vector<8x128xbf16>, vector<128x384xbf16>, vector<8x384xf32> -> vector<8x384xf32>
    %682 = vector.extract_strided_slice %679 {offsets = [0, 0], sizes = [8, 128], strides = [1, 1]} : vector<8x384xbf16> to vector<8x128xbf16>
    %683 = vector.extract_strided_slice %681 {offsets = [0, 0], sizes = [8, 128], strides = [1, 1]} : vector<8x384xf32> to vector<8x128xf32>
    %684 = arith.extf %682 : vector<8x128xbf16> to vector<8x128xf32>
    %685 = arith.addf %684, %683 : vector<8x128xf32>
    %686 = arith.negf %685 : vector<8x128xf32>
    %687 = math.exp %686 : vector<8x128xf32>
    %cst_244 = arith.constant 1.000000e+00 : f32
    %688 = vector.broadcast %cst_244 : f32 to vector<8x128xf32>
    %689 = arith.addf %688, %687 : vector<8x128xf32>
    %690 = arith.divf %688, %689 : vector<8x128xf32>
    %691 = vector.extract_strided_slice %679 {offsets = [0, 128], sizes = [8, 128], strides = [1, 1]} : vector<8x384xbf16> to vector<8x128xbf16>
    %692 = vector.extract_strided_slice %681 {offsets = [0, 128], sizes = [8, 128], strides = [1, 1]} : vector<8x384xf32> to vector<8x128xf32>
    %693 = arith.extf %691 : vector<8x128xbf16> to vector<8x128xf32>
    %694 = arith.addf %693, %692 : vector<8x128xf32>
    %695 = arith.negf %694 : vector<8x128xf32>
    %696 = math.exp %695 : vector<8x128xf32>
    %cst_245 = arith.constant 1.000000e+00 : f32
    %697 = vector.broadcast %cst_245 : f32 to vector<8x128xf32>
    %698 = arith.addf %697, %696 : vector<8x128xf32>
    %699 = arith.divf %697, %698 : vector<8x128xf32>
    %700 = vector.extract_strided_slice %679 {offsets = [0, 256], sizes = [8, 128], strides = [1, 1]} : vector<8x384xbf16> to vector<8x128xbf16>
    %701 = vector.extract_strided_slice %681 {offsets = [0, 256], sizes = [8, 128], strides = [1, 1]} : vector<8x384xf32> to vector<8x128xf32>
    %702 = arith.addf %701, %380 : vector<8x128xf32>
    %703 = arith.mulf %690, %702 : vector<8x128xf32>
    %704 = arith.extf %700 : vector<8x128xbf16> to vector<8x128xf32>
    %705 = arith.addf %704, %703 : vector<8x128xf32>
    %706 = math.tanh %705 : vector<8x128xf32>
    %707 = arith.subf %676, %706 : vector<8x128xf32>
    %708 = arith.mulf %699, %707 : vector<8x128xf32>
    %709 = arith.addf %706, %708 : vector<8x128xf32>
    %c1_246 = arith.constant 1 : index
    %c0_247 = arith.constant 0 : index
    %c0_248 = arith.constant 0 : index
    %710 = vector.load %arg12[%c1_246, %c0_247, %c0_248] : memref<2x8x128xf32, #tpu.memory_space<vmem>>, vector<1x8x128xf32>
    %711 = vector.shape_cast %710 : vector<1x8x128xf32> to vector<8x128xf32>
    %712 = vector.shape_cast %709 : vector<8x128xf32> to vector<1x8x128xf32>
    tpu.vector_store %arg12[%c1_246, %c0_247, %c0_248], %712 {strides = array<i32>} : memref<2x8x128xf32, #tpu.memory_space<vmem>>, vector<1x8x128xf32>,
    %713 = arith.index_cast %c7_i32_237 : i32 to index
    %c0_249 = arith.constant 0 : index
    %c0_250 = arith.constant 0 : index
    %714 = vector.load %arg10[%713, %c0_249, %c0_250] : memref<8x8x128xf32, #tpu.memory_space<vmem>>, vector<1x8x128xf32>
    %715 = vector.shape_cast %714 : vector<1x8x128xf32> to vector<8x128xf32>
    %716 = vector.shape_cast %709 : vector<8x128xf32> to vector<1x8x128xf32>
    tpu.vector_store %arg10[%713, %c0_249, %c0_250], %716 {strides = array<i32>} : memref<8x8x128xf32, #tpu.memory_space<vmem>>, vector<1x8x128xf32>,
    %c8_i32_251 = arith.constant 8 : i32
    %c0_i32_252 = arith.constant 0 : i32
    %717 = arith.cmpi eq, %arg1, %c0_i32_252 : i32
    %718 = arith.extui %717 : i1 to i32
    %c0_i32_253 = arith.constant 0 : i32
    %719 = arith.cmpi ne, %718, %c0_i32_253 : i32
    scf.if %719 {
      %c0_254 = arith.constant 0 : index
      %c0_255 = arith.constant 0 : index
      %c0_256 = arith.constant 0 : index
      %720 = vector.load %arg12[%c0_254, %c0_255, %c0_256] : memref<2x8x128xf32, #tpu.memory_space<vmem>>, vector<2x8x128xf32>
      %c0_257 = arith.constant 0 : index
      %c0_258 = arith.constant 0 : index
      %c0_259 = arith.constant 0 : index
      %721 = vector.load %arg11[%c0_257, %c0_258, %c0_259] : memref<2x8x128xf32, #tpu.memory_space<vmem>>, vector<2x8x128xf32>
      tpu.vector_store %arg11[%c0_257, %c0_258, %c0_259], %720 {strides = array<i32>} : memref<2x8x128xf32, #tpu.memory_space<vmem>>, vector<2x8x128xf32>,
    } else {
    }
    return
  }
  func.func @transform_0(%arg0: i32, %arg1: i32) -> (i32, i32, i32) {
    %c0_i32 = arith.constant 0 : i32
    %c0_i32_0 = arith.constant 0 : i32
    return %arg1, %arg0, %c0_i32 : i32, i32, i32
  }
  func.func @transform_1(%arg0: i32, %arg1: i32) -> (i32, i32) {
    %c0_i32 = arith.constant 0 : i32
    %c0_i32_0 = arith.constant 0 : i32
    %c0_i32_1 = arith.constant 0 : i32
    return %c0_i32, %c0_i32_0 : i32, i32
  }
  func.func @transform_2(%arg0: i32, %arg1: i32) -> (i32, i32) {
    %c0_i32 = arith.constant 0 : i32
    %c0_i32_0 = arith.constant 0 : i32
    %c0_i32_1 = arith.constant 0 : i32
    return %c0_i32, %c0_i32_0 : i32, i32
  }
  func.func @transform_3(%arg0: i32, %arg1: i32) -> (i32, i32, i32) {
    %c0_i32 = arith.constant 0 : i32
    %c0_i32_0 = arith.constant 0 : i32
    %c0_i32_1 = arith.constant 0 : i32
    %c0_i32_2 = arith.constant 0 : i32
    return %c0_i32, %c0_i32_0, %c0_i32_1 : i32, i32, i32
  }
  func.func @transform_4(%arg0: i32, %arg1: i32) -> (i32, i32, i32) {
    %c0_i32 = arith.constant 0 : i32
    %c0_i32_0 = arith.constant 0 : i32
    %c0_i32_1 = arith.constant 0 : i32
    %c0_i32_2 = arith.constant 0 : i32
    return %c0_i32, %c0_i32_0, %c0_i32_1 : i32, i32, i32
  }
  func.func @transform_5(%arg0: i32, %arg1: i32) -> (i32, i32, i32) {
    %c0_i32 = arith.constant 0 : i32
    %c0_i32_0 = arith.constant 0 : i32
    %c0_i32_1 = arith.constant 0 : i32
    %c0_i32_2 = arith.constant 0 : i32
    return %c0_i32, %c0_i32_0, %c0_i32_1 : i32, i32, i32
  }
  func.func @transform_6(%arg0: i32, %arg1: i32) -> (i32, i32, i32) {
    %c0_i32 = arith.constant 0 : i32
    %c0_i32_0 = arith.constant 0 : i32
    %c0_i32_1 = arith.constant 0 : i32
    %c0_i32_2 = arith.constant 0 : i32
    return %c0_i32, %c0_i32_0, %c0_i32_1 : i32, i32, i32
  }
  func.func @transform_7(%arg0: i32, %arg1: i32) -> (i32, i32, i32) {
    %c0_i32 = arith.constant 0 : i32
    %c0_i32_0 = arith.constant 0 : i32
    %c0_i32_1 = arith.constant 0 : i32
    return %c0_i32, %arg0, %c0_i32_0 : i32, i32, i32
  }
  func.func @transform_8(%arg0: i32, %arg1: i32) -> (i32, i32, i32) {
    %c0_i32 = arith.constant 0 : i32
    %c0_i32_0 = arith.constant 0 : i32
    return %arg1, %arg0, %c0_i32 : i32, i32, i32
  }
  func.func @transform_9(%arg0: i32, %arg1: i32) -> (i32, i32, i32) {
    %c0_i32 = arith.constant 0 : i32
    %c0_i32_0 = arith.constant 0 : i32
    %c0_i32_1 = arith.constant 0 : i32
    return %c0_i32, %arg0, %c0_i32_0 : i32, i32, i32
  }
}

</mosaic_0001>

<bundles_post_ra>
// kernel: encoder_forward.1
= control target key start
LH: loop header
LB: loop body
LE: loop exit
PB: predicated region body
PF: predicated region fallthrough
CT: control target
= control target key end

     0   :  { %v4305_v1 = vmov 0   ;;  %v4306_v36 = vmov 0.0   ;;  %vm4307_vm0 = vmmov 0   ;;  %v82_v56 = vlaneseq  ;;  %s5841_s1 = inlined_call_operand.vmem [shape: bf16[128,384], index: 1, kind: input, shape index: {}]   ;;  %s5842_s0 = inlined_call_operand.vmem [shape: bf16[8,8,128], index: 0, kind: input, shape index: {}]   ;;  %s5843_s5 = inlined_call_operand.vmem [shape: bf16[2,128,384], index: 5, kind: input, shape index: {}]   ;;  %s5844_s7 = inlined_call_operand.vmem [shape: f32[2,8,128], index: 7, kind: input, shape index: {}]   ;;  %s5845_s2 = inlined_call_operand.vmem [shape: f32[1,384], index: 2, kind: input, shape index: {}]   ;;  %s5846_s6 = inlined_call_operand.vmem [shape: f32[2,1,128], index: 6, kind: input, shape index: {}]   ;;  %s5847_s3 = inlined_call_operand.vmem [shape: bf16[1,128,384], index: 3, kind: input, shape index: {}]   ;;  %s5848_s4 = inlined_call_operand.vmem [shape: f32[1,1,384], index: 4, kind: input, shape index: {}]   ;;  %s5849_s9 = inlined_call_operand.vmem [shape: f32[2,8,128], index: 9, kind: output, shape index: {1}]   ;;  %s5850_s8 = inlined_call_operand.vmem [shape: f32[8,8,128], index: 8, kind: output, shape index: {0}]  }
   0x1   :  { %v3960_v0 = vld [vmem:[%s5841_s1 + $0x4] ss:$12 sps:$4 sm:$0xff]   ;;  %281 = vmatprep.mubr.bf16.mxu0 %v4305_v1  ;;  %v3962_v2 = vld [vmem:[%s5841_s1] ss:$12 sps:$4 sm:$0xff]   ;;  %v3963_v3 = vld [vmem:[%s5841_s1 + $0x1c] ss:$12 sps:$4 sm:$0xff]  }
   0x2   :  { %249 = vmatprep.subr.bf16.mxu0 %v3960_v0  ;;  %v3965_v4 = vld [vmem:[%s5841_s1 + $0x18] ss:$12 sps:$4 sm:$0xff]   ;;  %v3966_v5 = vld [vmem:[%s5841_s1 + $0x34] ss:$12 sps:$4 sm:$0xff]   ;;  %v3968_v6 = vld [vmem:[%s5841_s1 + $0x30] ss:$12 sps:$4 sm:$0xff]  }
   0x3   :  { %250 = vmatpush1.bf16.msra.mxu0 %v3962_v2  ;;  %v3969_v7 = vld [vmem:[%s5841_s1 + $0x4c] ss:$12 sps:$4 sm:$0xff]   ;;  %v3980_v8 = vld [vmem:[%s5841_s1 + $0x8] ss:$12 sps:$4 sm:$0xff]   ;;  %v3972_v10 = vld [vmem:[%s5841_s1 + $0x64] ss:$12 sps:$4 sm:$0xff]  }
   0x4   :  { %251 = vmatprep.subr.bf16.mxu0 %v3963_v3  ;;  %v3971_v9 = vld [vmem:[%s5841_s1 + $0x48] ss:$12 sps:$4 sm:$0xff]   ;;  %3589 = vmatprep.subr.bf16.mxu1 %v3980_v8  ;;  %v3984_v11 = vld [vmem:[%s5841_s1 + $0x20] ss:$12 sps:$4 sm:$0xff]   ;;  %v3987_v13 = vld [vmem:[%s5841_s1 + $0x38] ss:$12 sps:$4 sm:$0xff]  }
   0x5   :  { %3590 = vmatpush3.bf16.msra.mxu1 %v3980_v8  ;;  %v3986_v12 = vld [vmem:[%s5842_s0] sm:$0xff]   ;;  %v3975_v15 = vld [vmem:[%s5841_s1 + $0x7c] ss:$12 sps:$4 sm:$0xff]   ;;  %v3982_v21 = vld [vmem:[%s5841_s1 + $0xac] ss:$12 sps:$4 sm:$0xff]   ;;  %v4645_v57 = vshrl.u32 %v82_v56, 7 }
   0x6   :  { %3591 = vmatprep.subr.bf16.mxu1 %v3984_v11  ;;  %v3974_v14 = vld [vmem:[%s5841_s1 + $0x60] ss:$12 sps:$4 sm:$0xff]   ;;  %3605 = vmatprep.mubr.bf16.mxu1 %v3986_v12  ;;  %v3991_v16 = vld [vmem:[%s5841_s1 + $0x50] ss:$12 sps:$4 sm:$0xff]   ;;  %v3977_v17 = vld [vmem:[%s5841_s1 + $0x78] ss:$12 sps:$4 sm:$0xff]  }
   0x7   :  { %252 = vmatpush1.bf16.msra.mxu0 %v3965_v4  ;;  %v3978_v18 = vld [vmem:[%s5841_s1 + $0x94] ss:$12 sps:$4 sm:$0xff]   ;;  %v3981_v20 = vld [vmem:[%s5841_s1 + $0x90] ss:$12 sps:$4 sm:$0xff]   ;;  %v4005_v25 = vld [vmem:[%s5841_s1 + $0x98] ss:$12 sps:$4 sm:$0xff]  }
   0x8   :  { %253 = vmatprep.subr.bf16.mxu0 %v3966_v5  ;;  %v3996_v19 = vld [vmem:[%s5841_s1 + $0x68] ss:$12 sps:$4 sm:$0xff]   ;;  %v4000_v22 = vld [vmem:[%s5841_s1 + $0x80] ss:$12 sps:$4 sm:$0xff]   ;;  %v4431_v24 = vld [vmem:[%s5843_s5 + $0x4] ss:$12 sps:$4 sm:$0xff]  }
   0x9   :  { %3592 = vmatpush3.bf16.msra.mxu1 %v3984_v11  ;;  %v3985_v23 = vld [vmem:[%s5841_s1 + $0xa8] ss:$12 sps:$4 sm:$0xff]   ;;  %v4439_v26 = vld [vmem:[%s5843_s5] ss:$12 sps:$4 sm:$0xff]   ;;  %v4009_v28 = vld [vmem:[%s5841_s1 + $0xb0] ss:$12 sps:$4 sm:$0xff]  }
   0xa   :  { %3593 = vmatprep.subr.bf16.mxu1 %v3987_v13  ;;  %v4445_v27 = vld [vmem:[%s5843_s5 + $0x1c] ss:$12 sps:$4 sm:$0xff]   ;;  %v4454_v29 = vld [vmem:[%s5843_s5 + $0x18] ss:$12 sps:$4 sm:$0xff]   ;;  %v4461_v30 = vld [vmem:[%s5843_s5 + $0x34] ss:$12 sps:$4 sm:$0xff]  }
   0xb   :  { %254 = vmatpush1.bf16.msra.mxu0 %v3968_v6  ;;  %v3995_v31 = vld [vmem:[%s5842_s0 + $0x8] sm:$0xff]   ;;  %v4470_v32 = vld [vmem:[%s5843_s5 + $0x30] ss:$12 sps:$4 sm:$0xff]   ;;  %v4521_v42 = vld [vmem:[%s5843_s5 + $0x38] ss:$12 sps:$4 sm:$0xff]   ;;  %v84_v58 = vsub.s32 0, %v4645_v57 }
   0xc   :  { %255 = vmatprep.subr.bf16.mxu0 %v3969_v7  ;;  %v4476_v33 = vld [vmem:[%s5843_s5 + $0x4c] ss:$12 sps:$4 sm:$0xff]   ;;  %v4481_v34 = vld [vmem:[%s5843_s5 + $0x48] ss:$12 sps:$4 sm:$0xff]   ;;  %v4495_v38 = vld [vmem:[%s5843_s5 + $0x64] ss:$12 sps:$4 sm:$0xff]  }
   0xd   :  { %3594 = vmatpush3.bf16.msra.mxu1 %v3987_v13  ;;  %v4004_v35 = vld [vmem:[%s5842_s0 + $0x10] sm:$0xff]   ;;  %v4502_v39 = vld [vmem:[%s5843_s5 + $0x20] ss:$12 sps:$4 sm:$0xff]   ;;  %v4514_v41 = vld [vmem:[%s5843_s5 + $0x7c] ss:$12 sps:$4 sm:$0xff]   ;;  %v88_v60 = vsub.s32 1, %v4645_v57 }
   0xe   :  { %3595 = vmatprep.subr.bf16.mxu1 %v3991_v16  ;;  %v4490_v37 = vld [vmem:[%s5843_s5 + $0x8] ss:$12 sps:$4 sm:$0xff]   ;;  %v4508_v40 = vld [vmem:[%s5843_s5 + $0x60] ss:$12 sps:$4 sm:$0xff]   ;;  %v4013_v43 = vld [vmem:[%s5842_s0 + $0x18] sm:$0xff]   ;;  %v92_v7 = vsub.s32 2, %v4645_v57 }
   0xf   :  { %256 = vmatpush1.bf16.msra.mxu0 %v3971_v9  ;;  %v4530_v44 = vld [vmem:[%s5843_s5 + $0x78] ss:$12 sps:$4 sm:$0xff]   ;;  %v4540_v45 = vld [vmem:[%s5843_s5 + $0x94] ss:$12 sps:$4 sm:$0xff]   ;;  %v4546_v46 = vld [vmem:[%s5843_s5 + $0x50] ss:$12 sps:$4 sm:$0xff]  }
  0x10   :  { %257 = vmatprep.subr.bf16.mxu0 %v3972_v10  ;;  %v4555_v47 = vld [vmem:[%s5843_s5 + $0x90] ss:$12 sps:$4 sm:$0xff]   ;;  %v4561_v48 = vld [vmem:[%s5843_s5 + $0xac] ss:$12 sps:$4 sm:$0xff]   ;;  %v4567_v49 = vld [vmem:[%s5843_s5 + $0x68] ss:$12 sps:$4 sm:$0xff]  }
  0x11   :  { %3596 = vmatpush3.bf16.msra.mxu1 %v3991_v16  ;;  %v4574_v50 = vld [vmem:[%s5843_s5 + $0xa8] ss:$12 sps:$4 sm:$0xff]   ;;  %v4580_v51 = vld [vmem:[%s5844_s7] sm:$0xff]  ;;  %v4608_v55 = vld [vmem:[%s5843_s5 + $0xb0] ss:$12 sps:$4 sm:$0xff]  }
  0x12   :  { %3597 = vmatprep.subr.bf16.mxu1 %v3996_v19  ;;  %v4587_v52 = vld [vmem:[%s5843_s5 + $0x80] ss:$12 sps:$4 sm:$0xff]   ;;  %v549_v53 = vpack.c.bf16 %v4580_v51, %v4580_v51  ;;  %v4598_v54 = vld [vmem:[%s5843_s5 + $0x98] ss:$12 sps:$4 sm:$0xff]  }
  0x13   :  { %258 = vmatpush1.bf16.msra.mxu0 %v3974_v14  ;;  %v80_v59 = vld [vmem:[%s5845_s2] sm:$0x7] }
  0x14   :  { %259 = vmatprep.subr.bf16.mxu0 %v3975_v15  ;;  %v4654_v61 = vrot.slane %v80_v59, %v84_v58  ;;  %v4658_v62 = vrot.slane %v80_v59, %v88_v60  ;;  %v93_v11 = vrot.slane %v80_v59, %v92_v7 }
  0x15   :  { %3598 = vmatpush3.bf16.msra.mxu1 %v3996_v19 }
  0x16   :  { %3599 = vmatprep.subr.bf16.mxu1 %v4000_v22 }
  0x17   :  { %260 = vmatpush1.bf16.msra.mxu0 %v3977_v17 }
  0x18   :  { %261 = vmatprep.subr.bf16.mxu0 %v3978_v18 }
  0x19   :  { %3600 = vmatpush3.bf16.msra.mxu1 %v4000_v22 }
  0x1a   :  { %3601 = vmatprep.subr.bf16.mxu1 %v4005_v25 }
  0x1b   :  { %262 = vmatpush1.bf16.msra.mxu0 %v3981_v20 }
  0x1c   :  { %263 = vmatprep.subr.bf16.mxu0 %v3982_v21 }
  0x1d   :  { %3602 = vmatpush3.bf16.msra.mxu1 %v4005_v25 }
  0x1e   :  { %3603 = vmatprep.subr.bf16.mxu1 %v4009_v28 }
  0x1f   :  { %264 = vmatpush1.bf16.msra.mxu0 %v3985_v23 }
  0x20   :  { %678 = vmatprep.subr.bf16.mxu0 %v4431_v24 }
  0x21   :  { %3604 = vmatpush3.bf16.msra.mxu1 %v4009_v28 }
  0x22   :  { %282 = vmatmul.mubr.bf16.vlgmr.msra.gmra.mrb[0].mxu0 %v3986_v12  ;;  %3613 = vmatprep.subr.bf16.mxu1 %v4306_v36 }
  0x23   :  { %679 = vmatpush1.bf16.msra.mxu0 %v4439_v26  ;;  %291 = vmatprep.mubr.bf16.mxu0 %v4305_v1 }
  0x24   :  { %680 = vmatprep.subr.bf16.mxu0 %v4445_v27  ;;  %3606 = vmatmul.mubr.bf16.vlgmr.msra.gmra.mrb[0].mxu1 %v3995_v31 }
  0x25   :  { %3614 = vmatpush3.bf16.msra.mxu1 %v4490_v37  ;;  %3609 = vmatprep.mubr.bf16.mxu1 %v4004_v35 }
  0x26   :  { %3615 = vmatprep.subr.bf16.mxu1 %v4306_v36 }
  0x27   :  { %681 = vmatpush1.bf16.msra.mxu0 %v4454_v29 }
  0x28   :  { %682 = vmatprep.subr.bf16.mxu0 %v4461_v30 }
  0x29   :  { %3616 = vmatpush3.bf16.msra.mxu1 %v4502_v39 }
  0x2a   :  { %292 = vmatmul.mubr.bf16.gmra.mrb[4].mxu0 %v3995_v31  ;;  %3617 = vmatprep.subr.bf16.mxu1 %v4306_v36 }
  0x2b   :  { %683 = vmatpush1.bf16.msra.mxu0 %v4470_v32  ;;  %301 = vmatprep.mubr.bf16.mxu0 %v4305_v1 }
  0x2c   :  { %684 = vmatprep.subr.bf16.mxu0 %v4476_v33  ;;  %3610 = vmatmul.mubr.bf16.gmra.mrb[4].mxu1 %v4013_v43 }
  0x2d   :  { %3618 = vmatpush3.bf16.msra.mxu1 %v4521_v42  ;;  %3629 = vmatprep.mubr.msk.bf16.mxu1 %vm4307_vm0, %v4306_v36 }
  0x2e   :  { %3619 = vmatprep.subr.bf16.mxu1 %v4306_v36 }
  0x2f   :  { %685 = vmatpush1.bf16.msra.mxu0 %v4481_v34 }
  0x30   :  { %686 = vmatprep.subr.bf16.mxu0 %v4495_v38 }
  0x31   :  { %3620 = vmatpush3.bf16.msra.mxu1 %v4546_v46 }
  0x32   :  { %302 = vmatmul.mubr.bf16.gmra.mrb[8].mxu0 %v4004_v35  ;;  %3621 = vmatprep.subr.bf16.mxu1 %v4306_v36 }
  0x33   :  { %687 = vmatpush1.bf16.msra.mxu0 %v4508_v40  ;;  %311 = vmatprep.mubr.bf16.mxu0 %v4305_v1 }
  0x34   :  { %688 = vmatprep.subr.bf16.mxu0 %v4514_v41 }
  0x35   :  { %3622 = vmatpush3.bf16.msra.mxu1 %v4567_v49 }
  0x36   :  { %3623 = vmatprep.subr.bf16.mxu1 %v4306_v36 }
  0x37   :  { %689 = vmatpush1.bf16.msra.mxu0 %v4530_v44 }
  0x38   :  { %690 = vmatprep.subr.bf16.mxu0 %v4540_v45 }
  0x39   :  { %3624 = vmatpush3.bf16.msra.mxu1 %v4587_v52 }
  0x3a   :  { %312 = vmatmul.mubr.bf16.gmra.mrb[12].mxu0 %v4013_v43  ;;  %3625 = vmatprep.subr.bf16.mxu1 %v4306_v36 }
  0x3b   :  { %691 = vmatpush1.bf16.msra.mxu0 %v4555_v47  ;;  %710 = vmatprep.mubr.bf16.mxu0 %v4305_v1 }
  0x3c   :  { %692 = vmatprep.subr.bf16.mxu0 %v4561_v48 }
  0x3d   :  { %3626 = vmatpush3.bf16.msra.mxu1 %v4598_v54 }
  0x3e   :  { %3627 = vmatprep.subr.bf16.mxu1 %v4306_v36 }
  0x3f   :  { %693 = vmatpush1.bf16.msra.mxu0 %v4574_v50 }
  0x40   :  { %794 = vmatprep.subr.bf16.mxu0 %v4431_v24 }
  0x41   :  { %3628 = vmatpush3.bf16.msra.mxu1 %v4608_v55 }
  0x42   :  { %711 = vmatmul.mubr.bf16.vlgmr.msra.gmra.mrb[16].mxu0 %v549_v53  ;;  %3633 = vmatprep.subr.bf16.mxu1 %v4306_v36 }
  0x43   :  { %795 = vmatpush1.bf16.msra.mxu0 %v4439_v26  ;;  %826 = vmatprep.mubr.bf16.mxu0 %v4305_v1 }
  0x44   :  { %796 = vmatprep.subr.bf16.mxu0 %v4445_v27  ;;  %3630 = vmatmul.mubr.bf16.vlgmr.msra.gmra.mrb[8].mxu1 %v549_v53 }
  0x45   :  { %3634 = vmatpush3.bf16.msra.mxu1 %v4490_v37  ;;  %3649 = vmatprep.mubr.msk.bf16.mxu1 %vm4307_vm0, %v4306_v36 }
  0x46   :  { %3635 = vmatprep.subr.bf16.mxu1 %v4306_v36 }
  0x47   :  { %797 = vmatpush1.bf16.msra.mxu0 %v4454_v29 }
  0x48   :  { %798 = vmatprep.subr.bf16.mxu0 %v4461_v30 }
  0x49   :  { %3636 = vmatpush3.bf16.msra.mxu1 %v4502_v39 }
  0x4a   :  { %3637 = vmatprep.subr.bf16.mxu1 %v4306_v36 }
  0x4b   :  { %799 = vmatpush1.bf16.msra.mxu0 %v4470_v32 }
  0x4c   :  { %800 = vmatprep.subr.bf16.mxu0 %v4476_v33 }
  0x4d   :  { %3638 = vmatpush3.bf16.msra.mxu1 %v4521_v42 }
  0x4e   :  { %3639 = vmatprep.subr.bf16.mxu1 %v4306_v36 }
  0x4f   :  { %801 = vmatpush1.bf16.msra.mxu0 %v4481_v34 }
  0x50   :  { %802 = vmatprep.subr.bf16.mxu0 %v4495_v38 }
  0x51   :  { %3640 = vmatpush3.bf16.msra.mxu1 %v4546_v46 }
  0x52   :  { %3641 = vmatprep.subr.bf16.mxu1 %v4306_v36 }
  0x53   :  { %803 = vmatpush1.bf16.msra.mxu0 %v4508_v40 }
  0x54   :  { %804 = vmatprep.subr.bf16.mxu0 %v4514_v41 }
  0x55   :  { %3642 = vmatpush3.bf16.msra.mxu1 %v4567_v49 }
  0x56   :  { %3643 = vmatprep.subr.bf16.mxu1 %v4306_v36 }
  0x57   :  { %805 = vmatpush1.bf16.msra.mxu0 %v4530_v44 }
  0x58   :  { %806 = vmatprep.subr.bf16.mxu0 %v4540_v45 }
  0x59   :  { %3644 = vmatpush3.bf16.msra.mxu1 %v4587_v52 }
  0x5a   :  { %3645 = vmatprep.subr.bf16.mxu1 %v4306_v36 }
  0x5b   :  { %807 = vmatpush1.bf16.msra.mxu0 %v4555_v47 }
  0x5c   :  { %808 = vmatprep.subr.bf16.mxu0 %v4561_v48 }
  0x5d   :  { %3646 = vmatpush3.bf16.msra.mxu1 %v4598_v54 }
  0x5e   :  { %3647 = vmatprep.subr.bf16.mxu1 %v4306_v36 }
  0x5f   :  { %809 = vmatpush1.bf16.msra.mxu0 %v4574_v50 }
  0x60   :  { %911 = vmatprep.subr.bf16.mxu0 %v4431_v24 }
  0x61   :  { %3648 = vmatpush3.bf16.msra.mxu1 %v4608_v55 }
  0x62   :  { %3653 = vmatprep.subr.bf16.mxu1 %v4306_v36 }
  0xf5   :  { %v283_v63 = vpop.f32.mrb[0].mxu0 }
  0xf6   :  { %v284_v0 = vadd.f32 %v283_v63, %v4654_v61  ;;  %v285_v2 = vpop.f32.mrb[1].mxu0 }
  0xf7   :  { %v286_v3 = vadd.f32 %v285_v2, %v4658_v62  ;;  %v287_v4 = vpop.f32.mrb[2].mxu0  ;;  %v3607_v17 = vpop.f32.mrb[0].mxu1 }
  0xf8   :  { %v288_v5 = vadd.f32 %v287_v4, %v4654_v61  ;;  %v289_v6 = vpop.f32.mrb[3].mxu0  ;;  %v365_v20 = vadd.f32 %v3607_v17, %v93_v11  ;;  %v356_v21 = vpop.f32.mrb[1].mxu1 }
  0xf9   :  { %v4664_v8 = vpack.c.bf16 %v286_v3, %v284_v0  ;;  %v290_v9 = vadd.f32 %v289_v6, %v4658_v62  ;;  %v357_v25 = vadd.f32 %v356_v21, %v93_v11  ;;  %v3608_v28 = vpop.f32.mrb[2].mxu1 }
  0xfa   :  { %v3394_v31 = vpack.c.bf16 %v365_v20, %v365_v20  ;;  %v368_v35 = vadd.f32 %v3608_v28, %v93_v11  ;;  %v359_v43 = vpop.f32.mrb[3].mxu1 }
  0xfb   :  { %v4667_v10 = vpack.c.bf16 %v290_v9, %v288_v5  ;;  %v3390_v56 = vpack.c.bf16 %v357_v25, %v357_v25  ;;  %v360_v59 = vadd.f32 %v359_v43, %v93_v11 }
  0xfc   :  { %496 = vst [vmem:[#allocation4 + $0x20] sm:$0xf] %v3394_v31  ;;  %v3396_v63 = vpack.c.bf16 %v368_v35, %v368_v35 }
  0xfd   :  { %v293_v12 = vpop.f32.mrb[4].mxu0  ;;  %492 = vst [vmem:[#allocation4 + $0x8] sm:$0xf] %v3390_v56  ;;  %v3392_v2 = vpack.c.bf16 %v360_v59, %v360_v59 }
  0xfe   :  { %v294_v13 = vadd.f32 %v293_v12, %v4654_v61  ;;  %v295_v14 = vpop.f32.mrb[5].mxu0  ;;  %498 = vst [vmem:[#allocation4 + $0x2c] sm:$0xf] %v3396_v63 }
  0xff   :  { %v296_v15 = vadd.f32 %v295_v14, %v4658_v62  ;;  %v297_v16 = vpop.f32.mrb[6].mxu0  ;;  %494 = vst [vmem:[#allocation4 + $0x14] sm:$0xf] %v3392_v2  ;;  %v3611_v9 = vpop.f32.mrb[4].mxu1 }
 0x100   :  { %v298_v18 = vadd.f32 %v297_v16, %v4654_v61  ;;  %v299_v19 = vpop.f32.mrb[7].mxu0  ;;  %v381_v14 = vadd.f32 %v3611_v9, %v93_v11 }
 0x101   :  { %v4674_v22 = vpack.c.bf16 %v296_v15, %v294_v13  ;;  %v300_v23 = vadd.f32 %v299_v19, %v4658_v62  ;;  %v372_v15 = vpop.f32.mrb[5].mxu1 }
 0x102   :  { %v3612_v19 = vpop.f32.mrb[6].mxu1  ;;  %v3402_v20 = vpack.c.bf16 %v381_v14, %v381_v14 }
 0x103   :  { %v4677_v53 = vpack.c.bf16 %v300_v23, %v298_v18  ;;  %v373_v18 = vadd.f32 %v372_v15, %v93_v11  ;;  %v384_v21 = vadd.f32 %v3612_v19, %v93_v11  ;;  %v375_v23 = vpop.f32.mrb[7].mxu1 }
 0x104   :  { %v376_v31 = vadd.f32 %v375_v23, %v93_v11  ;;  %504 = vst [vmem:[#allocation4 + $0x50] sm:$0xf] %v3402_v20 }
 0x105   :  { %v303_v0 = vpop.f32.mrb[8].mxu0  ;;  %v3398_v28 = vpack.c.bf16 %v373_v18, %v373_v18  ;;  %v3404_v35 = vpack.c.bf16 %v384_v21, %v384_v21 }
 0x106   :  { %v304_v3 = vadd.f32 %v303_v0, %v4654_v61  ;;  %v305_v4 = vpop.f32.mrb[9].mxu0  ;;  %v3400_v56 = vpack.c.bf16 %v376_v31, %v376_v31 }
 0x107   :  { %v306_v5 = vadd.f32 %v305_v4, %v4658_v62  ;;  %v307_v6 = vpop.f32.mrb[10].mxu0  ;;  %500 = vst [vmem:[#allocation4 + $0x38] sm:$0xf] %v3398_v28  ;;  %506 = vst [vmem:[#allocation4 + $0x5c] sm:$0xf] %v3404_v35 }
 0x108   :  { %v308_v12 = vadd.f32 %v307_v6, %v4654_v61  ;;  %v309_v13 = vpop.f32.mrb[11].mxu0  ;;  %502 = vst [vmem:[#allocation4 + $0x44] sm:$0xf] %v3400_v56  ;;  %v768_v6 = vrot.slane %v4664_v8, 4 }
 0x109   :  { %v4682_v16 = vpack.c.bf16 %v306_v5, %v304_v3  ;;  %v310_v17 = vadd.f32 %v309_v13, %v4658_v62 }
 0x10a   :  { %v770_v14 = vunpack.c.l.bf16 %v768_v6 }
 0x10b   :  { %v4685_v25 = vpack.c.bf16 %v310_v17, %v308_v12  ;;  %v759_v12 = vunpack.c.l.bf16 %v4664_v8  ;;  %v4698_v8 = vld [vmem:[%s5846_s6] ss:$0 sm:$0xff] }
 0x10d   :  { %v313_v43 = vpop.f32.mrb[12].mxu0 }
 0x10e   :  { %v314_v59 = vadd.f32 %v313_v43, %v4654_v61  ;;  %v315_v63 = vpop.f32.mrb[13].mxu0 }
 0x10f   :  { %v316_v0 = vadd.f32 %v315_v63, %v4658_v62  ;;  %v317_v2 = vpop.f32.mrb[14].mxu0 }
 0x110   :  { %v318_v3 = vadd.f32 %v317_v2, %v4654_v61  ;;  %v319_v4 = vpop.f32.mrb[15].mxu0 }
 0x111   :  { %v4690_v5 = vpack.c.bf16 %v316_v0, %v314_v59  ;;  %v320_v11 = vadd.f32 %v319_v4, %v4658_v62  ;;  %v4701_v59 = vld [vmem:[#allocation4 + $0x8] ss:$12 sps:$4 sm:$0xff]  }
 0x113   :  { %v3403_v9 = vpack.c.bf16 %v320_v11, %v318_v3  ;;  %v780_v3 = vunpack.c.l.bf16 %v4701_v59 }
 0x115   :  { %505 = vst [vmem:[#allocation4 + $0x54] sm:$0xff] %v3403_v9  ;;  %v712_v13 = vpop.f32.mrb[16].mxu0 }
 0x116   :  { %v760_v15 = vadd.f32 %v759_v12, %v712_v13  ;;  %v714_v17 = vpop.f32.mrb[17].mxu0 }
 0x117   :  { %v771_v18 = vadd.f32 %v770_v14, %v714_v17  ;;  %v716_v19 = vpop.f32.mrb[18].mxu0  ;;  %v753_v61 = vpop.f32.mrb[8].mxu1  ;;  %v875_v17 = vunpack.c.l.bf16 %v4667_v10 }
 0x118   :  { %v3248_v20 = vmul.f32 -1.442695, %v760_v15  ;;  %v717_v21 = vpop.f32.mrb[19].mxu0  ;;  %v3631_v23 = vpop.f32.mrb[9].mxu1  ;;  %v778_v56 = vadd.f32 %v4698_v8, %v753_v61 }
 0x119   :  { %v756_v28 = vpop.f32.mrb[10].mxu1  ;;  %v3249_v31 = vmul.f32 -1.442695, %v771_v18 }
 0x11a   :  { %4096 = vpow2.f32 %v3248_v20  ;;  %v3632_v62 = vpop.f32.mrb[11].mxu1 }
 0x11b   :  { %4098 = vpow2.f32 %v3249_v31 }
 0x124   :  { %v4097_v35 = vpop.eup %4096 }
 0x125   :  { %v764_v43 = vadd.f32 1.0, %v4097_v35  ;;  %v4099_v63 = vpop.eup %4098 }
 0x126   :  { %v775_v4 = vadd.f32 1.0, %v4099_v63 }
 0x127   :  { %4100 = vrcp.f32 %v764_v43 }
 0x131   :  { %v4101_v0 = vpop.eup %4100 }
 0x132   :  { %v779_v2 = vmul.f32 %v4101_v0, %v778_v56 }
 0x134   :  { %v781_v11 = vadd.f32 %v780_v3, %v779_v2 }
 0x136   :  { %4102 = vtanh.f32 %v781_v11 }
 0x137   :  { %4104 = vrcp.f32 %v775_v4 }
 0x140   :  { %v4103_v6 = vpop.eup %4102 }
 0x141   :  { %v783_v9 = vsub.f32 %v4580_v51, %v4103_v6  ;;  %v4105_v12 = vpop.eup %4104  ;;  %v884_v51 = vrot.slane %v4667_v10, 4 }
 0x143   :  { %v784_v13 = vmul.f32 %v4105_v12, %v783_v9  ;;  %v886_v20 = vunpack.c.l.bf16 %v884_v51 }
 0x145   :  { %v4705_v14 = vadd.f32 %v4103_v6, %v784_v13  ;;  %v896_v6 = vunpack.c.h.bf16 %v4701_v59  ;;  %v1001_v59 = vrot.slane %v4674_v22, 4 }
 0x147   :  { %v787_v15 = vpack.c.bf16 %v4705_v14, %v4705_v14 }
 0x149   :  { %788 = vst [vmem:[#allocation3] sm:$0xf] %v787_v15  ;;  %827 = vmatmul.mubr.bf16.vlgmr.msra.gmra.mrb[20].mxu0 %v787_v15  ;;  %3650 = vmatmul.mubr.bf16.vlgmr.msra.gmra.mrb[12].mxu1 %v787_v15 }
 0x14a   :  { %912 = vmatpush1.bf16.msra.mxu0 %v4439_v26  ;;  %3654 = vmatpush3.bf16.msra.mxu1 %v4490_v37 }
 0x14b   :  { %913 = vmatprep.subr.bf16.mxu0 %v4445_v27  ;;  %3655 = vmatprep.subr.bf16.mxu1 %v4306_v36 }
 0x14c   :  { %943 = vmatprep.mubr.bf16.mxu0 %v4305_v1  ;;  %3669 = vmatprep.mubr.msk.bf16.mxu1 %vm4307_vm0, %v4306_v36 }
 0x14e   :  { %914 = vmatpush1.bf16.msra.mxu0 %v4454_v29  ;;  %3656 = vmatpush3.bf16.msra.mxu1 %v4502_v39 }
 0x14f   :  { %915 = vmatprep.subr.bf16.mxu0 %v4461_v30  ;;  %3657 = vmatprep.subr.bf16.mxu1 %v4306_v36 }
 0x152   :  { %916 = vmatpush1.bf16.msra.mxu0 %v4470_v32  ;;  %3658 = vmatpush3.bf16.msra.mxu1 %v4521_v42 }
 0x153   :  { %917 = vmatprep.subr.bf16.mxu0 %v4476_v33  ;;  %3659 = vmatprep.subr.bf16.mxu1 %v4306_v36 }
 0x156   :  { %918 = vmatpush1.bf16.msra.mxu0 %v4481_v34  ;;  %3660 = vmatpush3.bf16.msra.mxu1 %v4546_v46 }
 0x157   :  { %919 = vmatprep.subr.bf16.mxu0 %v4495_v38  ;;  %3661 = vmatprep.subr.bf16.mxu1 %v4306_v36 }
 0x15a   :  { %920 = vmatpush1.bf16.msra.mxu0 %v4508_v40  ;;  %3662 = vmatpush3.bf16.msra.mxu1 %v4567_v49 }
 0x15b   :  { %921 = vmatprep.subr.bf16.mxu0 %v4514_v41  ;;  %3663 = vmatprep.subr.bf16.mxu1 %v4306_v36 }
 0x15e   :  { %922 = vmatpush1.bf16.msra.mxu0 %v4530_v44  ;;  %3664 = vmatpush3.bf16.msra.mxu1 %v4587_v52 }
 0x15f   :  { %923 = vmatprep.subr.bf16.mxu0 %v4540_v45  ;;  %3665 = vmatprep.subr.bf16.mxu1 %v4306_v36 }
 0x162   :  { %924 = vmatpush1.bf16.msra.mxu0 %v4555_v47  ;;  %3666 = vmatpush3.bf16.msra.mxu1 %v4598_v54 }
 0x163   :  { %925 = vmatprep.subr.bf16.mxu0 %v4561_v48  ;;  %3667 = vmatprep.subr.bf16.mxu1 %v4306_v36 }
 0x166   :  { %926 = vmatpush1.bf16.msra.mxu0 %v4574_v50  ;;  %3668 = vmatpush3.bf16.msra.mxu1 %v4608_v55 }
 0x167   :  { %1028 = vmatprep.subr.bf16.mxu0 %v4431_v24  ;;  %3673 = vmatprep.subr.bf16.mxu1 %v4306_v36 }
 0x21c   :  { %v828_v18 = vpop.f32.mrb[20].mxu0  ;;  %v869_v19 = vpop.f32.mrb[12].mxu1 }
 0x21d   :  { %v876_v21 = vadd.f32 %v875_v17, %v828_v18  ;;  %v830_v61 = vpop.f32.mrb[21].mxu0  ;;  %v3651_v23 = vpop.f32.mrb[13].mxu1  ;;  %v894_v10 = vadd.f32 %v4698_v8, %v869_v19 }
 0x21e   :  { %v887_v28 = vadd.f32 %v886_v20, %v830_v61  ;;  %v832_v31 = vpop.f32.mrb[22].mxu0  ;;  %v872_v62 = vpop.f32.mrb[14].mxu1  ;;  %v1003_v61 = vunpack.c.l.bf16 %v1001_v59 }
 0x21f   :  { %v3250_v35 = vmul.f32 -1.442695, %v876_v21  ;;  %v833_v43 = vpop.f32.mrb[23].mxu0  ;;  %v3652_v56 = vpop.f32.mrb[15].mxu1 }
 0x220   :  { %v3251_v63 = vmul.f32 -1.442695, %v887_v28 }
 0x221   :  { %4106 = vpow2.f32 %v3250_v35 }
 0x222   :  { %4108 = vpow2.f32 %v3251_v63 }
 0x22b   :  { %v4107_v0 = vpop.eup %4106 }
 0x22c   :  { %v880_v2 = vadd.f32 1.0, %v4107_v0  ;;  %v4109_v3 = vpop.eup %4108 }
 0x22d   :  { %v891_v12 = vadd.f32 1.0, %v4109_v3 }
 0x22e   :  { %4110 = vrcp.f32 %v880_v2 }
 0x238   :  { %v4111_v4 = vpop.eup %4110 }
 0x239   :  { %v895_v11 = vmul.f32 %v4111_v4, %v894_v10  ;;  %v4790_v4 = vld [vmem:[#allocation4 + $0x20] ss:$12 sps:$4 sm:$0xff]  }
 0x23b   :  { %v897_v9 = vadd.f32 %v896_v6, %v895_v11 }
 0x23d   :  { %4112 = vtanh.f32 %v897_v9 }
 0x23e   :  { %4114 = vrcp.f32 %v891_v12  ;;  %v1013_v12 = vunpack.c.l.bf16 %v4790_v4 }
 0x247   :  { %v4113_v13 = vpop.eup %4112 }
 0x248   :  { %v899_v15 = vsub.f32 %v4705_v14, %v4113_v13  ;;  %v4115_v51 = vpop.eup %4114  ;;  %v992_v14 = vunpack.c.l.bf16 %v4674_v22 }
 0x24a   :  { %v900_v17 = vmul.f32 %v4115_v51, %v899_v15 }
 0x24c   :  { %v4749_v18 = vadd.f32 %v4113_v13, %v900_v17 }
 0x24e   :  { %v903_v20 = vpack.c.bf16 %v4749_v18, %v4749_v18 }
 0x250   :  { %905 = vst [vmem:[#allocation3 + $0x4] sm:$0xf] %v903_v20  ;;  %944 = vmatmul.mubr.bf16.vlgmr.msra.gmra.mrb[24].mxu0 %v903_v20  ;;  %3670 = vmatmul.mubr.bf16.vlgmr.msra.gmra.mrb[16].mxu1 %v903_v20 }
 0x251   :  { %1029 = vmatpush1.bf16.msra.mxu0 %v4439_v26  ;;  %3674 = vmatpush3.bf16.msra.mxu1 %v4490_v37 }
 0x252   :  { %1030 = vmatprep.subr.bf16.mxu0 %v4445_v27  ;;  %3675 = vmatprep.subr.bf16.mxu1 %v4306_v36 }
 0x253   :  { %1060 = vmatprep.mubr.bf16.mxu0 %v4305_v1  ;;  %3689 = vmatprep.mubr.msk.bf16.mxu1 %vm4307_vm0, %v4306_v36 }
 0x255   :  { %1031 = vmatpush1.bf16.msra.mxu0 %v4454_v29  ;;  %3676 = vmatpush3.bf16.msra.mxu1 %v4502_v39 }
 0x256   :  { %1032 = vmatprep.subr.bf16.mxu0 %v4461_v30  ;;  %3677 = vmatprep.subr.bf16.mxu1 %v4306_v36 }
 0x259   :  { %1033 = vmatpush1.bf16.msra.mxu0 %v4470_v32  ;;  %3678 = vmatpush3.bf16.msra.mxu1 %v4521_v42 }
 0x25a   :  { %1034 = vmatprep.subr.bf16.mxu0 %v4476_v33  ;;  %3679 = vmatprep.subr.bf16.mxu1 %v4306_v36 }
 0x25d   :  { %1035 = vmatpush1.bf16.msra.mxu0 %v4481_v34  ;;  %3680 = vmatpush3.bf16.msra.mxu1 %v4546_v46 }
 0x25e   :  { %1036 = vmatprep.subr.bf16.mxu0 %v4495_v38  ;;  %3681 = vmatprep.subr.bf16.mxu1 %v4306_v36 }
 0x261   :  { %1037 = vmatpush1.bf16.msra.mxu0 %v4508_v40  ;;  %3682 = vmatpush3.bf16.msra.mxu1 %v4567_v49 }
 0x262   :  { %1038 = vmatprep.subr.bf16.mxu0 %v4514_v41  ;;  %3683 = vmatprep.subr.bf16.mxu1 %v4306_v36 }
 0x265   :  { %1039 = vmatpush1.bf16.msra.mxu0 %v4530_v44  ;;  %3684 = vmatpush3.bf16.msra.mxu1 %v4587_v52 }
 0x266   :  { %1040 = vmatprep.subr.bf16.mxu0 %v4540_v45  ;;  %3685 = vmatprep.subr.bf16.mxu1 %v4306_v36 }
 0x269   :  { %1041 = vmatpush1.bf16.msra.mxu0 %v4555_v47  ;;  %3686 = vmatpush3.bf16.msra.mxu1 %v4598_v54 }
 0x26a   :  { %1042 = vmatprep.subr.bf16.mxu0 %v4561_v48  ;;  %3687 = vmatprep.subr.bf16.mxu1 %v4306_v36 }
 0x26d   :  { %1043 = vmatpush1.bf16.msra.mxu0 %v4574_v50  ;;  %3688 = vmatpush3.bf16.msra.mxu1 %v4608_v55 }
 0x26e   :  { %1145 = vmatprep.subr.bf16.mxu0 %v4431_v24  ;;  %3693 = vmatprep.subr.bf16.mxu1 %v4306_v36 }
 0x323   :  { %v945_v19 = vpop.f32.mrb[24].mxu0  ;;  %v986_v21 = vpop.f32.mrb[16].mxu1 }
 0x324   :  { %v993_v23 = vadd.f32 %v992_v14, %v945_v19  ;;  %v947_v28 = vpop.f32.mrb[25].mxu0  ;;  %v3671_v31 = vpop.f32.mrb[17].mxu1  ;;  %v1011_v11 = vadd.f32 %v4698_v8, %v986_v21 }
 0x325   :  { %v1004_v62 = vadd.f32 %v1003_v61, %v947_v28  ;;  %v949_v35 = vpop.f32.mrb[26].mxu0  ;;  %v989_v43 = vpop.f32.mrb[18].mxu1 }
 0x326   :  { %v3252_v56 = vmul.f32 -1.442695, %v993_v23  ;;  %v950_v63 = vpop.f32.mrb[27].mxu0  ;;  %v3672_v0 = vpop.f32.mrb[19].mxu1 }
 0x327   :  { %v3253_v2 = vmul.f32 -1.442695, %v1004_v62 }
 0x328   :  { %4116 = vpow2.f32 %v3252_v56 }
 0x329   :  { %4118 = vpow2.f32 %v3253_v2 }
 0x332   :  { %v4117_v3 = vpop.eup %4116 }
 0x333   :  { %v997_v10 = vadd.f32 1.0, %v4117_v3  ;;  %v4119_v22 = vpop.eup %4118 }
 0x334   :  { %v1008_v15 = vadd.f32 1.0, %v4119_v22 }
 0x335   :  { %4120 = vrcp.f32 %v997_v10 }
 0x33f   :  { %v4121_v6 = vpop.eup %4120 }
 0x340   :  { %v1012_v9 = vmul.f32 %v4121_v6, %v1011_v11  ;;  %v1130_v6 = vunpack.c.h.bf16 %v4790_v4  ;;  %v4846_v4 = vld [vmem:[%s5843_s5] ss:$12 sps:$4 sm:$0xff]  }
 0x342   :  { %v1014_v13 = vadd.f32 %v1013_v12, %v1012_v9 }
 0x344   :  { %4122 = vtanh.f32 %v1014_v13 }
 0x345   :  { %4124 = vrcp.f32 %v1008_v15 }
 0x34e   :  { %v4123_v51 = vpop.eup %4122 }
 0x34f   :  { %v1016_v17 = vsub.f32 %v4749_v18, %v4123_v51  ;;  %v4125_v20 = vpop.eup %4124 }
 0x351   :  { %v1017_v59 = vmul.f32 %v4125_v20, %v1016_v17 }
 0x353   :  { %v4795_v14 = vadd.f32 %v4123_v51, %v1017_v59 }
 0x355   :  { %v1020_v19 = vpack.c.bf16 %v4795_v14, %v4795_v14 }
 0x357   :  { %1022 = vst [vmem:[#allocation3 + $0x8] sm:$0xf] %v1020_v19  ;;  %1061 = vmatmul.mubr.bf16.vlgmr.msra.gmra.mrb[28].mxu0 %v1020_v19  ;;  %3690 = vmatmul.mubr.bf16.vlgmr.msra.gmra.mrb[20].mxu1 %v1020_v19 }
 0x358   :  { %1146 = vmatpush1.bf16.msra.mxu0 %v4439_v26  ;;  %3694 = vmatpush3.bf16.msra.mxu1 %v4490_v37  ;;  %v1118_v26 = vrot.slane %v4677_v53, 4 }
 0x359   :  { %1147 = vmatprep.subr.bf16.mxu0 %v4445_v27  ;;  %3695 = vmatprep.subr.bf16.mxu1 %v4306_v36  ;;  %v1109_v27 = vunpack.c.l.bf16 %v4677_v53 }
 0x35a   :  { %1177 = vmatprep.mubr.bf16.mxu0 %v4305_v1  ;;  %3709 = vmatprep.mubr.msk.bf16.mxu1 %vm4307_vm0, %v4306_v36  ;;  %v1120_v61 = vunpack.c.l.bf16 %v1118_v26 }
 0x35c   :  { %1148 = vmatpush1.bf16.msra.mxu0 %v4454_v29  ;;  %3696 = vmatpush3.bf16.msra.mxu1 %v4502_v39 }
 0x35d   :  { %1149 = vmatprep.subr.bf16.mxu0 %v4461_v30  ;;  %3697 = vmatprep.subr.bf16.mxu1 %v4306_v36 }
 0x360   :  { %1150 = vmatpush1.bf16.msra.mxu0 %v4470_v32  ;;  %3698 = vmatpush3.bf16.msra.mxu1 %v4521_v42 }
 0x361   :  { %1151 = vmatprep.subr.bf16.mxu0 %v4476_v33  ;;  %3699 = vmatprep.subr.bf16.mxu1 %v4306_v36 }
 0x364   :  { %1152 = vmatpush1.bf16.msra.mxu0 %v4481_v34  ;;  %3700 = vmatpush3.bf16.msra.mxu1 %v4546_v46 }
 0x365   :  { %1153 = vmatprep.subr.bf16.mxu0 %v4495_v38  ;;  %3701 = vmatprep.subr.bf16.mxu1 %v4306_v36 }
 0x368   :  { %1154 = vmatpush1.bf16.msra.mxu0 %v4508_v40  ;;  %3702 = vmatpush3.bf16.msra.mxu1 %v4567_v49 }
 0x369   :  { %1155 = vmatprep.subr.bf16.mxu0 %v4514_v41  ;;  %3703 = vmatprep.subr.bf16.mxu1 %v4306_v36 }
 0x36c   :  { %1156 = vmatpush1.bf16.msra.mxu0 %v4530_v44  ;;  %3704 = vmatpush3.bf16.msra.mxu1 %v4587_v52 }
 0x36d   :  { %1157 = vmatprep.subr.bf16.mxu0 %v4540_v45  ;;  %3705 = vmatprep.subr.bf16.mxu1 %v4306_v36 }
 0x370   :  { %1158 = vmatpush1.bf16.msra.mxu0 %v4555_v47  ;;  %3706 = vmatpush3.bf16.msra.mxu1 %v4598_v54 }
 0x371   :  { %1159 = vmatprep.subr.bf16.mxu0 %v4561_v48  ;;  %3707 = vmatprep.subr.bf16.mxu1 %v4306_v36 }
 0x374   :  { %1160 = vmatpush1.bf16.msra.mxu0 %v4574_v50  ;;  %3708 = vmatpush3.bf16.msra.mxu1 %v4608_v55 }
 0x375   :  { %1262 = vmatprep.subr.bf16.mxu0 %v4431_v24  ;;  %3713 = vmatprep.subr.bf16.mxu1 %v4306_v36 }
 0x42a   :  { %v1062_v18 = vpop.f32.mrb[28].mxu0  ;;  %v1103_v21 = vpop.f32.mrb[20].mxu1 }
 0x42b   :  { %v1110_v23 = vadd.f32 %v1109_v27, %v1062_v18  ;;  %v1064_v28 = vpop.f32.mrb[29].mxu0  ;;  %v3691_v31 = vpop.f32.mrb[21].mxu1  ;;  %v1128_v53 = vadd.f32 %v4698_v8, %v1103_v21 }
 0x42c   :  { %v1121_v62 = vadd.f32 %v1120_v61, %v1064_v28  ;;  %v1066_v35 = vpop.f32.mrb[30].mxu0  ;;  %v1106_v43 = vpop.f32.mrb[22].mxu1  ;;  %v4895_v61 = vld [vmem:[#allocation4 + $0x38] ss:$12 sps:$4 sm:$0xff]  }
 0x42d   :  { %v3254_v56 = vmul.f32 -1.442695, %v1110_v23  ;;  %v1067_v63 = vpop.f32.mrb[31].mxu0  ;;  %v3692_v0 = vpop.f32.mrb[23].mxu1 }
 0x42e   :  { %v3255_v24 = vmul.f32 -1.442695, %v1121_v62  ;;  %v1247_v62 = vunpack.c.l.bf16 %v4895_v61 }
 0x42f   :  { %4126 = vpow2.f32 %v3254_v56 }
 0x430   :  { %4128 = vpow2.f32 %v3255_v24 }
 0x439   :  { %v4127_v2 = vpop.eup %4126 }
 0x43a   :  { %v1114_v3 = vadd.f32 1.0, %v4127_v2  ;;  %v4129_v10 = vpop.eup %4128 }
 0x43b   :  { %v1125_v12 = vadd.f32 1.0, %v4129_v10  ;;  %v4908_v10 = vld [vmem:[%s5843_s5 + $0x8] ss:$12 sps:$4 sm:$0xff]  }
 0x43c   :  { %4130 = vrcp.f32 %v1114_v3 }
 0x446   :  { %v4131_v22 = vpop.eup %4130 }
 0x447   :  { %v1129_v11 = vmul.f32 %v4131_v22, %v1128_v53  ;;  %v4919_v53 = vld [vmem:[%s5843_s5 + $0x18] ss:$12 sps:$4 sm:$0xff]   ;;  %v4925_v22 = vld [vmem:[%s5843_s5 + $0x20] ss:$12 sps:$4 sm:$0xff]  }
 0x449   :  { %v1131_v9 = vadd.f32 %v1130_v6, %v1129_v11  ;;  %v4931_v11 = vld [vmem:[%s5843_s5 + $0x34] ss:$12 sps:$4 sm:$0xff]   ;;  %v4938_v6 = vld [vmem:[%s5843_s5 + $0x30] ss:$12 sps:$4 sm:$0xff]  }
 0x44b   :  { %4132 = vtanh.f32 %v1131_v9  ;;  %v4944_v9 = vld [vmem:[%s5843_s5 + $0x38] ss:$12 sps:$4 sm:$0xff]  }
 0x44c   :  { %4134 = vrcp.f32 %v1125_v12  ;;  %v4950_v12 = vld [vmem:[%s5843_s5 + $0x4c] ss:$12 sps:$4 sm:$0xff]  }
 0x455   :  { %v4133_v13 = vpop.eup %4132 }
 0x456   :  { %v1133_v15 = vsub.f32 %v4795_v14, %v4133_v13  ;;  %v4135_v51 = vpop.eup %4134  ;;  %v4853_v14 = vld [vmem:[%s5843_s5 + $0x1c] ss:$12 sps:$4 sm:$0xff]  }
 0x458   :  { %v1134_v17 = vmul.f32 %v4135_v51, %v1133_v15  ;;  %v4964_v15 = vld [vmem:[%s5843_s5 + $0x64] ss:$12 sps:$4 sm:$0xff]   ;;  %v4971_v51 = vld [vmem:[%s5843_s5 + $0x60] ss:$12 sps:$4 sm:$0xff]  }
 0x45a   :  { %v4839_v20 = vadd.f32 %v4133_v13, %v1134_v17  ;;  %v4957_v13 = vld [vmem:[%s5843_s5 + $0x48] ss:$12 sps:$4 sm:$0xff]   ;;  %v4985_v17 = vld [vmem:[%s5843_s5 + $0x78] ss:$12 sps:$4 sm:$0xff]  }
 0x45c   :  { %v1137_v59 = vpack.c.bf16 %v4839_v20, %v4839_v20 }
 0x45e   :  { %1139 = vst [vmem:[#allocation3 + $0xc] sm:$0xf] %v1137_v59  ;;  %1178 = vmatmul.mubr.bf16.vlgmr.msra.gmra.mrb[32].mxu0 %v1137_v59  ;;  %3710 = vmatmul.mubr.bf16.vlgmr.msra.gmra.mrb[24].mxu1 %v1137_v59 }
 0x45f   :  { %1263 = vmatpush1.bf16.msra.mxu0 %v4846_v4  ;;  %3714 = vmatpush3.bf16.msra.mxu1 %v4490_v37 }
 0x460   :  { %1264 = vmatprep.subr.bf16.mxu0 %v4853_v14  ;;  %3715 = vmatprep.subr.bf16.mxu1 %v4306_v36 }
 0x461   :  { %1294 = vmatprep.mubr.bf16.mxu0 %v4305_v1  ;;  %3729 = vmatprep.mubr.msk.bf16.mxu1 %vm4307_vm0, %v4306_v36 }
 0x463   :  { %1265 = vmatpush1.bf16.msra.mxu0 %v4454_v29  ;;  %3716 = vmatpush3.bf16.msra.mxu1 %v4502_v39  ;;  %v4889_v29 = vld [vmem:[%s5843_s5 + $0x4] ss:$12 sps:$4 sm:$0xff]  }
 0x464   :  { %1266 = vmatprep.subr.bf16.mxu0 %v4461_v30  ;;  %3717 = vmatprep.subr.bf16.mxu1 %v4306_v36  ;;  %v1235_v30 = vrot.slane %v4682_v16, 4 }
 0x466   :  { %v1237_v37 = vunpack.c.l.bf16 %v1235_v30 }
 0x467   :  { %1267 = vmatpush1.bf16.msra.mxu0 %v4470_v32  ;;  %3718 = vmatpush3.bf16.msra.mxu1 %v4521_v42  ;;  %v1226_v32 = vunpack.c.l.bf16 %v4682_v16 }
 0x468   :  { %1268 = vmatprep.subr.bf16.mxu0 %v4476_v33  ;;  %3719 = vmatprep.subr.bf16.mxu1 %v4306_v36 }
 0x46b   :  { %1269 = vmatpush1.bf16.msra.mxu0 %v4481_v34  ;;  %3720 = vmatpush3.bf16.msra.mxu1 %v4546_v46 }
 0x46c   :  { %1270 = vmatprep.subr.bf16.mxu0 %v4495_v38  ;;  %3721 = vmatprep.subr.bf16.mxu1 %v4306_v36 }
 0x46f   :  { %1271 = vmatpush1.bf16.msra.mxu0 %v4508_v40  ;;  %3722 = vmatpush3.bf16.msra.mxu1 %v4567_v49 }
 0x470   :  { %1272 = vmatprep.subr.bf16.mxu0 %v4514_v41  ;;  %3723 = vmatprep.subr.bf16.mxu1 %v4306_v36 }
 0x473   :  { %1273 = vmatpush1.bf16.msra.mxu0 %v4530_v44  ;;  %3724 = vmatpush3.bf16.msra.mxu1 %v4587_v52 }
 0x474   :  { %1274 = vmatprep.subr.bf16.mxu0 %v4540_v45  ;;  %3725 = vmatprep.subr.bf16.mxu1 %v4306_v36 }
 0x477   :  { %1275 = vmatpush1.bf16.msra.mxu0 %v4555_v47  ;;  %3726 = vmatpush3.bf16.msra.mxu1 %v4598_v54 }
 0x478   :  { %1276 = vmatprep.subr.bf16.mxu0 %v4561_v48  ;;  %3727 = vmatprep.subr.bf16.mxu1 %v4306_v36 }
 0x47b   :  { %1277 = vmatpush1.bf16.msra.mxu0 %v4574_v50  ;;  %3728 = vmatpush3.bf16.msra.mxu1 %v4608_v55 }
 0x47c   :  { %1379 = vmatprep.subr.bf16.mxu0 %v4889_v29  ;;  %3733 = vmatprep.subr.bf16.mxu1 %v4306_v36 }
 0x531   :  { %v1179_v33 = vpop.f32.mrb[32].mxu0  ;;  %v1220_v34 = vpop.f32.mrb[24].mxu1 }
 0x532   :  { %v1227_v38 = vadd.f32 %v1226_v32, %v1179_v33  ;;  %v1181_v39 = vpop.f32.mrb[33].mxu0  ;;  %v3711_v40 = vpop.f32.mrb[25].mxu1  ;;  %v1245_v23 = vadd.f32 %v4698_v8, %v1220_v34 }
 0x533   :  { %v1238_v41 = vadd.f32 %v1237_v37, %v1181_v39  ;;  %v1183_v42 = vpop.f32.mrb[34].mxu0  ;;  %v1223_v44 = vpop.f32.mrb[26].mxu1 }
 0x534   :  { %v3256_v45 = vmul.f32 -1.442695, %v1227_v38  ;;  %v1184_v19 = vpop.f32.mrb[35].mxu0  ;;  %v3712_v26 = vpop.f32.mrb[27].mxu1 }
 0x535   :  { %v3257_v27 = vmul.f32 -1.442695, %v1238_v41 }
 0x536   :  { %4136 = vpow2.f32 %v3256_v45  ;;  %v1364_v45 = vunpack.c.h.bf16 %v4895_v61  ;;  %v4274_v61 = vld [vmem:[%s5843_s5 + $0x80] ss:$12 sps:$4 sm:$0xff]  }
 0x537   :  { %4138 = vpow2.f32 %v3257_v27 }
 0x540   :  { %v4137_v18 = vpop.eup %4136 }
 0x541   :  { %v1231_v21 = vadd.f32 1.0, %v4137_v18  ;;  %v4139_v16 = vpop.eup %4138 }
 0x542   :  { %v1242_v43 = vadd.f32 1.0, %v4139_v16 }
 0x543   :  { %4140 = vrcp.f32 %v1231_v21 }
 0x54d   :  { %v4141_v28 = vpop.eup %4140 }
 0x54e   :  { %v1246_v31 = vmul.f32 %v4141_v28, %v1245_v23 }
 0x550   :  { %v1248_v35 = vadd.f32 %v1247_v62, %v1246_v31  ;;  %v4275_v31 = vld [vmem:[%s5843_s5 + $0x90] ss:$12 sps:$4 sm:$0xff]   ;;  %v4276_v62 = vld [vmem:[%s5843_s5 + $0x98] ss:$12 sps:$4 sm:$0xff]  }
 0x552   :  { %4142 = vtanh.f32 %v1248_v35  ;;  %v4277_v35 = vld [vmem:[%s5843_s5 + $0xac] ss:$12 sps:$4 sm:$0xff]  }
 0x553   :  { %4144 = vrcp.f32 %v1242_v43  ;;  %v4278_v43 = vld [vmem:[%s5843_s5 + $0xa8] ss:$12 sps:$4 sm:$0xff]  }
 0x55c   :  { %v4143_v56 = vpop.eup %4142 }
 0x55d   :  { %v1250_v63 = vsub.f32 %v4839_v20, %v4143_v56  ;;  %v4145_v0 = vpop.eup %4144  ;;  %v1343_v20 = vunpack.c.l.bf16 %v4685_v25 }
 0x55f   :  { %v1251_v24 = vmul.f32 %v4145_v0, %v1250_v63  ;;  %v4030_v63 = vld [vmem:[%s5847_s3 + $0x4] ss:$12 sps:$4 sm:$0xff]   ;;  %v4031_v0 = vld [vmem:[%s5847_s3 + $0x8] ss:$12 sps:$4 sm:$0xff]  }
 0x561   :  { %v4900_v2 = vadd.f32 %v4143_v56, %v1251_v24  ;;  %v4279_v56 = vld [vmem:[%s5843_s5 + $0xb0] ss:$12 sps:$4 sm:$0xff]   ;;  %v1469_v24 = vrot.slane %v4690_v5, 4 }
 0x563   :  { %v1254_v3 = vpack.c.bf16 %v4900_v2, %v4900_v2 }
 0x565   :  { %1256 = vst [vmem:[#allocation3 + $0x10] sm:$0xf] %v1254_v3  ;;  %1295 = vmatmul.mubr.bf16.vlgmr.msra.gmra.mrb[36].mxu0 %v1254_v3  ;;  %3730 = vmatmul.mubr.bf16.vlgmr.msra.gmra.mrb[28].mxu1 %v1254_v3 }
 0x566   :  { %1380 = vmatpush1.bf16.msra.mxu0 %v4846_v4  ;;  %3734 = vmatpush3.bf16.msra.mxu1 %v4908_v10 }
 0x567   :  { %1381 = vmatprep.subr.bf16.mxu0 %v4853_v14  ;;  %3735 = vmatprep.subr.bf16.mxu1 %v4306_v36 }
 0x568   :  { %1411 = vmatprep.mubr.bf16.mxu0 %v4305_v1  ;;  %3749 = vmatprep.mubr.msk.bf16.mxu1 %vm4307_vm0, %v4306_v36 }
 0x56a   :  { %1382 = vmatpush1.bf16.msra.mxu0 %v4919_v53  ;;  %3736 = vmatpush3.bf16.msra.mxu1 %v4925_v22 }
 0x56b   :  { %1383 = vmatprep.subr.bf16.mxu0 %v4931_v11  ;;  %3737 = vmatprep.subr.bf16.mxu1 %v4306_v36 }
 0x56e   :  { %1384 = vmatpush1.bf16.msra.mxu0 %v4938_v6  ;;  %3738 = vmatpush3.bf16.msra.mxu1 %v4944_v9 }
 0x56f   :  { %1385 = vmatprep.subr.bf16.mxu0 %v4950_v12  ;;  %3739 = vmatprep.subr.bf16.mxu1 %v4306_v36 }
 0x572   :  { %1386 = vmatpush1.bf16.msra.mxu0 %v4957_v13  ;;  %3740 = vmatpush3.bf16.msra.mxu1 %v4546_v46  ;;  %v4978_v46 = vld [vmem:[%s5843_s5 + $0x7c] ss:$12 sps:$4 sm:$0xff]  }
 0x573   :  { %1387 = vmatprep.subr.bf16.mxu0 %v4964_v15  ;;  %3741 = vmatprep.subr.bf16.mxu1 %v4306_v36 }
 0x576   :  { %1388 = vmatpush1.bf16.msra.mxu0 %v4971_v51  ;;  %3742 = vmatpush3.bf16.msra.mxu1 %v4567_v49  ;;  %v4992_v49 = vld [vmem:[%s5843_s5 + $0x94] ss:$12 sps:$4 sm:$0xff]  }
 0x577   :  { %1389 = vmatprep.subr.bf16.mxu0 %v4978_v46  ;;  %3743 = vmatprep.subr.bf16.mxu1 %v4306_v36 }
 0x57a   :  { %1390 = vmatpush1.bf16.msra.mxu0 %v4985_v17  ;;  %3744 = vmatpush3.bf16.msra.mxu1 %v4587_v52  ;;  %v1352_v52 = vrot.slane %v4685_v25, 4 }
 0x57b   :  { %1391 = vmatprep.subr.bf16.mxu0 %v4992_v49  ;;  %3745 = vmatprep.subr.bf16.mxu1 %v4306_v36 }
 0x57c   :  { %v1354_v30 = vunpack.c.l.bf16 %v1352_v52 }
 0x57e   :  { %1392 = vmatpush1.bf16.msra.mxu0 %v4555_v47  ;;  %3746 = vmatpush3.bf16.msra.mxu1 %v4598_v54 }
 0x57f   :  { %1393 = vmatprep.subr.bf16.mxu0 %v4561_v48  ;;  %3747 = vmatprep.subr.bf16.mxu1 %v4306_v36 }
 0x582   :  { %1394 = vmatpush1.bf16.msra.mxu0 %v4574_v50  ;;  %3748 = vmatpush3.bf16.msra.mxu1 %v4608_v55 }
 0x583   :  { %1496 = vmatprep.subr.bf16.mxu0 %v4889_v29  ;;  %3753 = vmatprep.subr.bf16.mxu1 %v4306_v36 }
 0x638   :  { %v1296_v59 = vpop.f32.mrb[36].mxu0  ;;  %v1337_v47 = vpop.f32.mrb[28].mxu1 }
 0x639   :  { %v1344_v54 = vadd.f32 %v1343_v20, %v1296_v59  ;;  %v1298_v32 = vpop.f32.mrb[37].mxu0  ;;  %v3731_v48 = vpop.f32.mrb[29].mxu1  ;;  %v1362_v25 = vadd.f32 %v4698_v8, %v1337_v47  ;;  %v1377_v20 = vld [vmem:[#allocation4 + $0x50] sm:$0xf] }
 0x63a   :  { %v1355_v33 = vadd.f32 %v1354_v30, %v1298_v32  ;;  %v1300_v34 = vpop.f32.mrb[38].mxu0  ;;  %v1340_v37 = vpop.f32.mrb[30].mxu1 }
 0x63b   :  { %v3258_v50 = vmul.f32 -1.442695, %v1344_v54  ;;  %v1301_v38 = vpop.f32.mrb[39].mxu0  ;;  %v3732_v55 = vpop.f32.mrb[31].mxu1  ;;  %v1481_v54 = vunpack.c.l.bf16 %v1377_v20  ;;  %v5267_v20 = vld [vmem:[%s5843_s5 + $0x110] ss:$12 sps:$4 sm:$0xff]  }
 0x63c   :  { %v3259_v29 = vmul.f32 -1.442695, %v1355_v33  ;;  %v4028_v55 = vld [vmem:[%s5847_s3] ss:$12 sps:$4 sm:$0xff]  }
 0x63d   :  { %4146 = vpow2.f32 %v3258_v50 }
 0x63e   :  { %4148 = vpow2.f32 %v3259_v29  ;;  %v4035_v29 = vld [vmem:[%s5847_s3 + $0x1c] ss:$12 sps:$4 sm:$0xff]  }
 0x647   :  { %v4147_v39 = vpop.eup %4146 }
 0x648   :  { %v1348_v40 = vadd.f32 1.0, %v4147_v39  ;;  %v4149_v41 = vpop.eup %4148  ;;  %v4036_v39 = vld [vmem:[%s5847_s3 + $0x20] ss:$12 sps:$4 sm:$0xff]  }
 0x649   :  { %v1359_v26 = vadd.f32 1.0, %v4149_v41  ;;  %v4033_v41 = vld [vmem:[%s5847_s3 + $0x18] ss:$12 sps:$4 sm:$0xff]  }
 0x64a   :  { %4150 = vrcp.f32 %v1348_v40  ;;  %v4032_v40 = vld [vmem:[#allocation3] sm:$0xff]  }
 0x654   :  { %v4151_v42 = vpop.eup %4150 }
 0x655   :  { %v1363_v44 = vmul.f32 %v4151_v42, %v1362_v25  ;;  %v4039_v25 = vld [vmem:[%s5847_s3 + $0x34] ss:$12 sps:$4 sm:$0xff]   ;;  %v4040_v42 = vld [vmem:[%s5847_s3 + $0x38] ss:$12 sps:$4 sm:$0xff]  }
 0x657   :  { %v1365_v19 = vadd.f32 %v1364_v45, %v1363_v44  ;;  %v4037_v44 = vld [vmem:[%s5847_s3 + $0x30] ss:$12 sps:$4 sm:$0xff]   ;;  %v4043_v45 = vld [vmem:[%s5847_s3 + $0x4c] ss:$12 sps:$4 sm:$0xff]  }
 0x659   :  { %4152 = vtanh.f32 %v1365_v19  ;;  %v4044_v19 = vld [vmem:[%s5847_s3 + $0x50] ss:$12 sps:$4 sm:$0xff]  }
 0x65a   :  { %4154 = vrcp.f32 %v1359_v26  ;;  %v4041_v26 = vld [vmem:[%s5847_s3 + $0x48] ss:$12 sps:$4 sm:$0xff]  }
 0x663   :  { %v4153_v27 = vpop.eup %4152 }
 0x664   :  { %v1367_v18 = vsub.f32 %v4900_v2, %v4153_v27  ;;  %v4155_v21 = vpop.eup %4154  ;;  %v1460_v2 = vunpack.c.l.bf16 %v4690_v5 }
 0x666   :  { %v1368_v16 = vmul.f32 %v4155_v21, %v1367_v18  ;;  %v4048_v18 = vld [vmem:[%s5847_s3 + $0x68] ss:$12 sps:$4 sm:$0xff]   ;;  %v4045_v21 = vld [vmem:[%s5847_s3 + $0x60] ss:$12 sps:$4 sm:$0xff]  }
 0x668   :  { %v5009_v23 = vadd.f32 %v4153_v27, %v1368_v16  ;;  %v4047_v27 = vld [vmem:[%s5847_s3 + $0x64] ss:$12 sps:$4 sm:$0xff]   ;;  %v4051_v16 = vld [vmem:[%s5847_s3 + $0x7c] ss:$12 sps:$4 sm:$0xff]  }
 0x66a   :  { %v1371_v28 = vpack.c.bf16 %v5009_v23, %v5009_v23 }
 0x66c   :  { %1373 = vst [vmem:[#allocation3 + $0x14] sm:$0xf] %v1371_v28  ;;  %1412 = vmatmul.mubr.bf16.vlgmr.msra.gmra.mrb[40].mxu0 %v1371_v28  ;;  %3750 = vmatmul.mubr.bf16.vlgmr.msra.gmra.mrb[32].mxu1 %v1371_v28  ;;  %v4049_v28 = vld [vmem:[%s5847_s3 + $0x78] ss:$12 sps:$4 sm:$0xff]  }
 0x66d   :  { %1497 = vmatpush1.bf16.msra.mxu0 %v4846_v4  ;;  %3754 = vmatpush3.bf16.msra.mxu1 %v4908_v10  ;;  %v4272_v4 = vld [vmem:[%s5843_s5 + $0x50] ss:$12 sps:$4 sm:$0xff]  }
 0x66e   :  { %1498 = vmatprep.subr.bf16.mxu0 %v4853_v14  ;;  %3755 = vmatprep.subr.bf16.mxu1 %v4306_v36  ;;  %v4273_v14 = vld [vmem:[%s5843_s5 + $0x68] ss:$12 sps:$4 sm:$0xff]  }
 0x66f   :  { %1528 = vmatprep.mubr.bf16.mxu0 %v4305_v1  ;;  %3769 = vmatprep.mubr.msk.bf16.mxu1 %vm4307_vm0, %v4306_v36 }
 0x671   :  { %1499 = vmatpush1.bf16.msra.mxu0 %v4919_v53  ;;  %3756 = vmatpush3.bf16.msra.mxu1 %v4925_v22  ;;  %v1471_v53 = vunpack.c.l.bf16 %v1469_v24  ;;  %v5162_v24 = vld [vmem:[%s5843_s5 + $0xdc] ss:$12 sps:$4 sm:$0xff]  }
 0x672   :  { %1500 = vmatprep.subr.bf16.mxu0 %v4931_v11  ;;  %3757 = vmatprep.subr.bf16.mxu1 %v4306_v36 }
 0x675   :  { %1501 = vmatpush1.bf16.msra.mxu0 %v4938_v6  ;;  %3758 = vmatpush3.bf16.msra.mxu1 %v4944_v9 }
 0x676   :  { %1502 = vmatprep.subr.bf16.mxu0 %v4950_v12  ;;  %3759 = vmatprep.subr.bf16.mxu1 %v4306_v36 }
 0x679   :  { %1503 = vmatpush1.bf16.msra.mxu0 %v4957_v13  ;;  %3760 = vmatpush3.bf16.msra.mxu1 %v4272_v4  ;;  %v4055_v4 = vld [vmem:[%s5847_s3 + $0x94] ss:$12 sps:$4 sm:$0xff]  }
 0x67a   :  { %1504 = vmatprep.subr.bf16.mxu0 %v4964_v15  ;;  %3761 = vmatprep.subr.bf16.mxu1 %v4306_v36 }
 0x67d   :  { %1505 = vmatpush1.bf16.msra.mxu0 %v4971_v51  ;;  %3762 = vmatpush3.bf16.msra.mxu1 %v4273_v14  ;;  %v4056_v14 = vld [vmem:[%s5847_s3 + $0x98] ss:$12 sps:$4 sm:$0xff]  }
 0x67e   :  { %1506 = vmatprep.subr.bf16.mxu0 %v4978_v46  ;;  %3763 = vmatprep.subr.bf16.mxu1 %v4306_v36 }
 0x681   :  { %1507 = vmatpush1.bf16.msra.mxu0 %v4985_v17  ;;  %3764 = vmatpush3.bf16.msra.mxu1 %v4274_v61  ;;  %v4053_v61 = vld [vmem:[%s5847_s3 + $0x90] ss:$12 sps:$4 sm:$0xff]  }
 0x682   :  { %1508 = vmatprep.subr.bf16.mxu0 %v4992_v49  ;;  %3765 = vmatprep.subr.bf16.mxu1 %v4306_v36 }
 0x685   :  { %1509 = vmatpush1.bf16.msra.mxu0 %v4275_v31  ;;  %3766 = vmatpush3.bf16.msra.mxu1 %v4276_v62  ;;  %v4059_v31 = vld [vmem:[%s5847_s3 + $0xac] ss:$12 sps:$4 sm:$0xff]   ;;  %v4060_v62 = vld [vmem:[%s5847_s3 + $0xb0] ss:$12 sps:$4 sm:$0xff]  }
 0x686   :  { %1510 = vmatprep.subr.bf16.mxu0 %v4277_v35  ;;  %3767 = vmatprep.subr.bf16.mxu1 %v4306_v36  ;;  %v4057_v35 = vld [vmem:[%s5847_s3 + $0xa8] ss:$12 sps:$4 sm:$0xff]  }
 0x689   :  { %1511 = vmatpush1.bf16.msra.mxu0 %v4278_v43  ;;  %3768 = vmatpush3.bf16.msra.mxu1 %v4279_v56  ;;  %v4061_v43 = vld [vmem:[#allocation3 + $0x8] sm:$0xff]   ;;  %v4062_v56 = vld [vmem:[#allocation3 + $0x10] sm:$0xff]  }
 0x68a   :  { %1817 = vmatprep.subr.bf16.mxu0 %v4030_v63  ;;  %3773 = vmatprep.subr.bf16.mxu1 %v4031_v0  ;;  %v5150_v63 = vld [vmem:[%s5843_s5 + $0xc4] ss:$12 sps:$4 sm:$0xff]  }
 0x73f   :  { %v1413_v3 = vpop.f32.mrb[40].mxu0  ;;  %v1454_v10 = vpop.f32.mrb[32].mxu1 }
 0x740   :  { %v1461_v22 = vadd.f32 %v1460_v2, %v1413_v3  ;;  %v1415_v11 = vpop.f32.mrb[41].mxu0  ;;  %v3751_v6 = vpop.f32.mrb[33].mxu1  ;;  %v1479_v59 = vadd.f32 %v4698_v8, %v1454_v10  ;;  %v5167_v2 = vld [vmem:[%s5843_s5 + $0xd8] ss:$12 sps:$4 sm:$0xff]   ;;  %v5174_v3 = vld [vmem:[%s5843_s5 + $0xf4] ss:$12 sps:$4 sm:$0xff]  }
 0x741   :  { %v1472_v9 = vadd.f32 %v1471_v53, %v1415_v11  ;;  %v1417_v12 = vpop.f32.mrb[42].mxu0  ;;  %v1457_v13 = vpop.f32.mrb[34].mxu1  ;;  %v5179_v10 = vld [vmem:[%s5843_s5 + $0xf0] ss:$12 sps:$4 sm:$0xff]   ;;  %v5186_v53 = vld [vmem:[%s5843_s5 + $0x10c] ss:$12 sps:$4 sm:$0xff]  }
 0x742   :  { %v3260_v15 = vmul.f32 -1.442695, %v1461_v22  ;;  %v1418_v51 = vpop.f32.mrb[43].mxu0  ;;  %v3752_v46 = vpop.f32.mrb[35].mxu1  ;;  %v5191_v22 = vld [vmem:[%s5843_s5 + $0x108] ss:$12 sps:$4 sm:$0xff]  }
 0x743   :  { %v3261_v17 = vmul.f32 -1.442695, %v1472_v9  ;;  %v5198_v11 = vld [vmem:[%s5843_s5 + $0x124] ss:$12 sps:$4 sm:$0xff]   ;;  %v5203_v6 = vld [vmem:[%s5843_s5 + $0x120] ss:$12 sps:$4 sm:$0xff]  }
 0x744   :  { %4156 = vpow2.f32 %v3260_v15  ;;  %v5210_v9 = vld [vmem:[%s5843_s5 + $0x13c] ss:$12 sps:$4 sm:$0xff]   ;;  %v5215_v12 = vld [vmem:[%s5843_s5 + $0x138] ss:$12 sps:$4 sm:$0xff]   ;;  %v5222_v13 = vld [vmem:[%s5843_s5 + $0x154] ss:$12 sps:$4 sm:$0xff]  }
 0x745   :  { %4158 = vpow2.f32 %v3261_v17  ;;  %v5227_v15 = vld [vmem:[%s5843_s5 + $0xc8] ss:$12 sps:$4 sm:$0xff]   ;;  %v5232_v51 = vld [vmem:[%s5843_s5 + $0x150] ss:$12 sps:$4 sm:$0xff]   ;;  %v5237_v46 = vld [vmem:[%s5843_s5 + $0x16c] ss:$12 sps:$4 sm:$0xff]  }
 0x746   :  { %v5244_v17 = vld [vmem:[%s5843_s5 + $0xe0] ss:$12 sps:$4 sm:$0xff]  }
 0x74e   :  { %v4157_v49 = vpop.eup %4156 }
 0x74f   :  { %v1465_v52 = vadd.f32 1.0, %v4157_v49  ;;  %v4159_v5 = vpop.eup %4158  ;;  %v5251_v49 = vld [vmem:[%s5843_s5 + $0x168] ss:$12 sps:$4 sm:$0xff]  }
 0x750   :  { %v1476_v48 = vadd.f32 1.0, %v4159_v5  ;;  %v5274_v5 = vld [vmem:[%s5843_s5 + $0x128] ss:$12 sps:$4 sm:$0xff]  }
 0x751   :  { %4160 = vrcp.f32 %v1465_v52  ;;  %v5260_v52 = vld [vmem:[%s5843_s5 + $0xf8] ss:$12 sps:$4 sm:$0xff]  }
 0x75b   :  { %v4161_v47 = vpop.eup %4160 }
 0x75c   :  { %v1480_v30 = vmul.f32 %v4161_v47, %v1479_v59  ;;  %v5281_v59 = vld [vmem:[%s5843_s5 + $0x140] ss:$12 sps:$4 sm:$0xff]   ;;  %v5288_v47 = vld [vmem:[%s5843_s5 + $0x158] ss:$12 sps:$4 sm:$0xff]  }
 0x75e   :  { %v1482_v32 = vadd.f32 %v1481_v54, %v1480_v30  ;;  %v5295_v30 = vld [vmem:[%s5843_s5 + $0x170] ss:$12 sps:$4 sm:$0xff]   ;;  %v1493_v54 = vld [vmem:[#allocation4 + $0x54] sm:$0xff] }
 0x760   :  { %4162 = vtanh.f32 %v1482_v32  ;;  %v1577_v32 = vunpack.c.l.bf16 %v1493_v54 }
 0x761   :  { %4164 = vrcp.f32 %v1476_v48 }
 0x76a   :  { %v4163_v33 = vpop.eup %4162 }
 0x76b   :  { %v1484_v34 = vsub.f32 %v5009_v23, %v4163_v33  ;;  %v4165_v37 = vpop.eup %4164  ;;  %v4052_v23 = vld [vmem:[%s5847_s3 + $0x80] ss:$12 sps:$4 sm:$0xff]  }
 0x76d   :  { %v1485_v50 = vmul.f32 %v4165_v37, %v1484_v34 }
 0x76f   :  { %v5072_v38 = vadd.f32 %v4163_v33, %v1485_v50 }
 0x771   :  { %v1488_v8 = vpack.c.bf16 %v5072_v38, %v5072_v38 }
 0x773   :  { %1490 = vst [vmem:[#allocation3 + $0x18] sm:$0xf] %v1488_v8  ;;  %1529 = vmatmul.mubr.bf16.vlgmr.msra.gmra.mrb[44].mxu0 %v1488_v8  ;;  %3770 = vmatmul.mubr.bf16.vlgmr.msra.gmra.mrb[36].mxu1 %v1488_v8 }
 0x774   :  { %1818 = vmatpush1.bf16.msra.mxu0 %v4028_v55  ;;  %3774 = vmatpush3.bf16.msra.mxu1 %v4031_v0  ;;  %v5155_v0 = vld [vmem:[%s5843_s5 + $0xc0] ss:$12 sps:$4 sm:$0xff]  }
 0x775   :  { %3789 = vmatprep.mubr.bf16.mxu1 %v4032_v40  ;;  %1819 = vmatprep.subr.bf16.mxu0 %v4035_v29 }
 0x776   :  { %3775 = vmatprep.subr.bf16.mxu1 %v4036_v39  ;;  %1849 = vmatprep.mubr.bf16.mxu0 %v4305_v1 }
 0x778   :  { %1820 = vmatpush1.bf16.msra.mxu0 %v4033_v41  ;;  %3776 = vmatpush3.bf16.msra.mxu1 %v4036_v39  ;;  %v1586_v39 = vrot.slane %v1493_v54, 4 }
 0x779   :  { %1821 = vmatprep.subr.bf16.mxu0 %v4039_v25  ;;  %3777 = vmatprep.subr.bf16.mxu1 %v4040_v42 }
 0x77a   :  { %v1588_v25 = vunpack.c.l.bf16 %v1586_v39 }
 0x77c   :  { %1822 = vmatpush1.bf16.msra.mxu0 %v4037_v44  ;;  %3778 = vmatpush3.bf16.msra.mxu1 %v4040_v42 }
 0x77d   :  { %1823 = vmatprep.subr.bf16.mxu0 %v4043_v45  ;;  %3779 = vmatprep.subr.bf16.mxu1 %v4044_v19 }
 0x780   :  { %1824 = vmatpush1.bf16.msra.mxu0 %v4041_v26  ;;  %3780 = vmatpush3.bf16.msra.mxu1 %v4044_v19  ;;  %v1494_v26 = vld [vmem:[#allocation4 + $0x5c] sm:$0xf] }
 0x781   :  { %1825 = vmatprep.subr.bf16.mxu0 %v4047_v27  ;;  %3781 = vmatprep.subr.bf16.mxu1 %v4048_v18  ;;  %v1648_v27 = vld [vmem:[%s5848_s4] sm:$0x7] }
 0x784   :  { %1826 = vmatpush1.bf16.msra.mxu0 %v4045_v21  ;;  %3782 = vmatpush3.bf16.msra.mxu1 %v4048_v18  ;;  %v4280_v21 = vld [vmem:[%s5846_s6] ss:$0 sm:$0xff] }
 0x785   :  { %1827 = vmatprep.subr.bf16.mxu0 %v4051_v16  ;;  %3783 = vmatprep.subr.bf16.mxu1 %v4052_v23 }
 0x788   :  { %1828 = vmatpush1.bf16.msra.mxu0 %v4049_v28  ;;  %3784 = vmatpush3.bf16.msra.mxu1 %v4052_v23 }
 0x789   :  { %1829 = vmatprep.subr.bf16.mxu0 %v4055_v4  ;;  %3785 = vmatprep.subr.bf16.mxu1 %v4056_v14  ;;  %v1598_v4 = vunpack.c.l.bf16 %v1494_v26 }
 0x78c   :  { %1830 = vmatpush1.bf16.msra.mxu0 %v4053_v61  ;;  %3786 = vmatpush3.bf16.msra.mxu1 %v4056_v14  ;;  %v5308_v14 = vrot.slane %v1648_v27, %v84_v58  ;;  %v5312_v61 = vrot.slane %v1648_v27, %v92_v7 }
 0x78d   :  { %1831 = vmatprep.subr.bf16.mxu0 %v4059_v31  ;;  %3787 = vmatprep.subr.bf16.mxu1 %v4060_v62  ;;  %v5316_v31 = vrot.slane %v1648_v27, %v88_v60 }
 0x790   :  { %1832 = vmatpush1.bf16.msra.mxu0 %v4057_v35  ;;  %3788 = vmatpush3.bf16.msra.mxu1 %v4060_v62 }
 0x791   :  { %3797 = vmatprep.subr.bf16.mxu1 %v4306_v36  ;;  %2249 = vmatprep.subr.bf16.mxu0 %v5150_v63 }
 0x793   :  { %1850 = vmatmul.mubr.bf16.vlgmr.msra.gmra.mrb[48].mxu0 %v4032_v40  ;;  %3790 = vmatmul.mubr.bf16.vlgmr.msra.gmra.mrb[40].mxu1 %v4061_v43 }
 0x794   :  { %3793 = vmatprep.mubr.bf16.mxu1 %v4062_v56  ;;  %1859 = vmatprep.mubr.bf16.mxu0 %v4305_v1 }
 0x795   :  { %2250 = vmatpush1.bf16.msra.mxu0 %v5155_v0  ;;  %3798 = vmatpush3.bf16.msra.mxu1 %v5227_v15 }
 0x796   :  { %2251 = vmatprep.subr.bf16.mxu0 %v5162_v24  ;;  %3799 = vmatprep.subr.bf16.mxu1 %v4306_v36 }
 0x799   :  { %2252 = vmatpush1.bf16.msra.mxu0 %v5167_v2  ;;  %3800 = vmatpush3.bf16.msra.mxu1 %v5244_v17 }
 0x79a   :  { %2253 = vmatprep.subr.bf16.mxu0 %v5174_v3  ;;  %3801 = vmatprep.subr.bf16.mxu1 %v4306_v36 }
 0x79b   :  { %1860 = vmatmul.mubr.bf16.gmra.mrb[52].mxu0 %v4061_v43 }
 0x79c   :  { %1869 = vmatprep.mubr.bf16.mxu0 %v4305_v1 }
 0x79d   :  { %2254 = vmatpush1.bf16.msra.mxu0 %v5179_v10  ;;  %3802 = vmatpush3.bf16.msra.mxu1 %v5260_v52 }
 0x79e   :  { %2255 = vmatprep.subr.bf16.mxu0 %v5186_v53  ;;  %3803 = vmatprep.subr.bf16.mxu1 %v4306_v36 }
 0x7a1   :  { %2256 = vmatpush1.bf16.msra.mxu0 %v5191_v22  ;;  %3804 = vmatpush3.bf16.msra.mxu1 %v5267_v20 }
 0x7a2   :  { %2257 = vmatprep.subr.bf16.mxu0 %v5198_v11  ;;  %3805 = vmatprep.subr.bf16.mxu1 %v4306_v36 }
 0x7a3   :  { %1870 = vmatmul.mubr.bf16.gmra.mrb[56].mxu0 %v4062_v56 }
 0x7a4   :  { %1879 = vmatprep.mubr.bf16.mxu0 %v4305_v1 }
 0x7a5   :  { %2258 = vmatpush1.bf16.msra.mxu0 %v5203_v6  ;;  %3806 = vmatpush3.bf16.msra.mxu1 %v5274_v5 }
 0x7a6   :  { %2259 = vmatprep.subr.bf16.mxu0 %v5210_v9  ;;  %3807 = vmatprep.subr.bf16.mxu1 %v4306_v36 }
 0x7a9   :  { %2260 = vmatpush1.bf16.msra.mxu0 %v5215_v12  ;;  %3808 = vmatpush3.bf16.msra.mxu1 %v5281_v59 }
 0x7aa   :  { %2261 = vmatprep.subr.bf16.mxu0 %v5222_v13  ;;  %3809 = vmatprep.subr.bf16.mxu1 %v4306_v36 }
 0x7ad   :  { %2262 = vmatpush1.bf16.msra.mxu0 %v5232_v51  ;;  %3810 = vmatpush3.bf16.msra.mxu1 %v5288_v47 }
 0x7ae   :  { %2263 = vmatprep.subr.bf16.mxu0 %v5237_v46  ;;  %3811 = vmatprep.subr.bf16.mxu1 %v4306_v36 }
 0x7b1   :  { %2264 = vmatpush1.bf16.msra.mxu0 %v5251_v49  ;;  %3812 = vmatpush3.bf16.msra.mxu1 %v5295_v30 }
 0x7b2   :  { %2363 = vmatprep.subr.bf16.mxu0 %v5150_v63  ;;  %3817 = vmatprep.subr.bf16.mxu1 %v4306_v36 }
 0x846   :  { %v1530_v48 = vpop.f32.mrb[44].mxu0  ;;  %v1571_v33 = vpop.f32.mrb[36].mxu1 }
 0x847   :  { %v1578_v34 = vadd.f32 %v1577_v32, %v1530_v48  ;;  %v1532_v37 = vpop.f32.mrb[45].mxu0  ;;  %v3771_v50 = vpop.f32.mrb[37].mxu1  ;;  %v1596_v16 = vadd.f32 %v4280_v21, %v1571_v33 }
 0x848   :  { %v1534_v55 = vpop.f32.mrb[46].mxu0  ;;  %v1574_v8 = vpop.f32.mrb[38].mxu1  ;;  %v1589_v42 = vadd.f32 %v1588_v25, %v1532_v37 }
 0x849   :  { %v3262_v29 = vmul.f32 -1.442695, %v1578_v34  ;;  %v1535_v40 = vpop.f32.mrb[47].mxu0  ;;  %v3772_v41 = vpop.f32.mrb[39].mxu1 }
 0x84a   :  { %v3263_v44 = vmul.f32 -1.442695, %v1589_v42 }
 0x84b   :  { %4166 = vpow2.f32 %v3262_v29 }
 0x84c   :  { %4168 = vpow2.f32 %v3263_v44 }
 0x855   :  { %v4167_v45 = vpop.eup %4166 }
 0x856   :  { %v1582_v19 = vadd.f32 1.0, %v4167_v45  ;;  %v4169_v18 = vpop.eup %4168 }
 0x857   :  { %v1593_v35 = vadd.f32 1.0, %v4169_v18 }
 0x858   :  { %4170 = vrcp.f32 %v1582_v19 }
 0x862   :  { %v4171_v23 = vpop.eup %4170 }
 0x863   :  { %v1597_v28 = vmul.f32 %v4171_v23, %v1596_v16 }
 0x865   :  { %v1599_v62 = vadd.f32 %v1598_v4, %v1597_v28 }
 0x866   :  { %v1851_v43 = vpop.f32.mrb[48].mxu0  ;;  %v3791_v56 = vpop.f32.mrb[40].mxu1 }
 0x867   :  { %4172 = vtanh.f32 %v1599_v62  ;;  %v1852_v54 = vadd.f32 %v1851_v43, %v5308_v14  ;;  %v1933_v32 = vadd.f32 %v3791_v56, %v5312_v61  ;;  %v1853_v48 = vpop.f32.mrb[49].mxu0  ;;  %v1924_v58 = vpop.f32.mrb[41].mxu1 }
 0x868   :  { %v1854_v33 = vadd.f32 %v1853_v48, %v5316_v31  ;;  %v1925_v7 = vadd.f32 %v1924_v58, %v5312_v61  ;;  %v1855_v34 = vpop.f32.mrb[50].mxu0  ;;  %v3792_v37 = vpop.f32.mrb[42].mxu1  ;;  %4174 = vrcp.f32 %v1593_v35 }
 0x869   :  { %v3410_v57 = vpack.c.bf16 %v1933_v32, %v1933_v32  ;;  %v1856_v60 = vadd.f32 %v1855_v34, %v5308_v14  ;;  %v1936_v50 = vadd.f32 %v3792_v37, %v5312_v61  ;;  %v1857_v55 = vpop.f32.mrb[51].mxu0  ;;  %v1927_v8 = vpop.f32.mrb[43].mxu1 }
 0x86a   :  { %v5324_v29 = vpack.c.bf16 %v1854_v33, %v1852_v54  ;;  %v3406_v39 = vpack.c.bf16 %v1925_v7, %v1925_v7  ;;  %v1858_v40 = vadd.f32 %v1857_v55, %v5316_v31  ;;  %v1928_v41 = vadd.f32 %v1927_v8, %v5312_v61  ;;  %v5354_v8 = vld [vmem:[%s5844_s7 + $0x8] sm:$0xff] }
 0x86b   :  { %2064 = vst [vmem:[#allocation4 + $0x20] sm:$0xf] %v3410_v57  ;;  %v3412_v25 = vpack.c.bf16 %v1936_v50, %v1936_v50 }
 0x86c   :  { %2060 = vst [vmem:[#allocation4 + $0x8] sm:$0xf] %v3406_v39  ;;  %v5328_v42 = vpack.c.bf16 %v1858_v40, %v1856_v60  ;;  %v3408_v44 = vpack.c.bf16 %v1928_v41, %v1928_v41  ;;  %v2120_v39 = vpack.c.bf16 %v5354_v8, %v5354_v8 }
 0x86d   :  { %2066 = vst [vmem:[#allocation4 + $0x2c] sm:$0xf] %v3412_v25 }
 0x86e   :  { %2062 = vst [vmem:[#allocation4 + $0x14] sm:$0xf] %v3408_v44  ;;  %v1861_v45 = vpop.f32.mrb[52].mxu0 }
 0x86f   :  { %v1862_v19 = vadd.f32 %v1861_v45, %v5308_v14  ;;  %v1863_v26 = vpop.f32.mrb[53].mxu0 }
 0x870   :  { %v1864_v27 = vadd.f32 %v1863_v26, %v5316_v31  ;;  %v1865_v18 = vpop.f32.mrb[54].mxu0 }
 0x871   :  { %v4173_v21 = vpop.eup %4172  ;;  %v1866_v16 = vadd.f32 %v1865_v18, %v5308_v14  ;;  %v1867_v23 = vpop.f32.mrb[55].mxu0 }
 0x872   :  { %v1601_v28 = vsub.f32 %v5072_v38, %v4173_v21  ;;  %v5334_v4 = vpack.c.bf16 %v1864_v27, %v1862_v19  ;;  %v1868_v62 = vadd.f32 %v1867_v23, %v5316_v31  ;;  %v4175_v35 = vpop.eup %4174 }
 0x874   :  { %v1602_v43 = vmul.f32 %v4175_v35, %v1601_v28  ;;  %v5337_v56 = vpack.c.bf16 %v1868_v62, %v1866_v16 }
 0x876   :  { %v1603_v54 = vadd.f32 %v4173_v21, %v1602_v43  ;;  %v1871_v32 = vpop.f32.mrb[56].mxu0  ;;  %v2339_v43 = vrot.slane %v5324_v29, 4 }
 0x877   :  { %v1872_v48 = vadd.f32 %v1871_v32, %v5308_v14  ;;  %v1873_v58 = vpop.f32.mrb[57].mxu0 }
 0x878   :  { %v1605_v33 = vpack.c.bf16 %v1603_v54, %v1603_v54  ;;  %3169 = vst [vmem:[%s5849_s9] sm:$0xff] %v1603_v54  ;;  %v1874_v38 = vadd.f32 %v1873_v58, %v5316_v31  ;;  %v1875_v7 = vpop.f32.mrb[58].mxu0 }
 0x879   :  { %v1876_v34 = vadd.f32 %v1875_v7, %v5308_v14  ;;  %v1877_v37 = vpop.f32.mrb[59].mxu0 }
 0x87a   :  { %1607 = vst [vmem:[#allocation3 + $0x1c] sm:$0xf] %v1605_v33  ;;  %v5345_v57 = vpack.c.bf16 %v1874_v38, %v1872_v48  ;;  %v1878_v60 = vadd.f32 %v1877_v37, %v5316_v31  ;;  %v2341_v37 = vunpack.c.l.bf16 %v2339_v43 }
 0x87c   :  { %v5348_v50 = vpack.c.bf16 %v1878_v60, %v1876_v34 }
 0x881   :  { %v4081_v55 = vld [vmem:[#allocation3 + $0x18] sm:$0xff]  }
 0x882   :  { %1880 = vmatmul.mubr.bf16.gmra.mrb[60].mxu0 %v4081_v55  ;;  %3794 = vmatmul.mubr.bf16.gmra.mrb[44].mxu1 %v4081_v55 }
 0x883   :  { %2281 = vmatprep.mubr.bf16.mxu0 %v4305_v1  ;;  %3813 = vmatprep.mubr.msk.bf16.mxu1 %vm4307_vm0, %v4306_v36 }
 0x88a   :  { %2282 = vmatmul.mubr.bf16.vlgmr.msra.gmra.mrb[64].mxu0 %v2120_v39  ;;  %3814 = vmatmul.mubr.bf16.vlgmr.msra.gmra.mrb[48].mxu1 %v2120_v39 }
 0x88b   :  { %2364 = vmatpush1.bf16.msra.mxu0 %v5155_v0  ;;  %3818 = vmatpush3.bf16.msra.mxu1 %v5227_v15 }
 0x88c   :  { %2365 = vmatprep.subr.bf16.mxu0 %v5162_v24  ;;  %3819 = vmatprep.subr.bf16.mxu1 %v4306_v36 }
 0x88d   :  { %2395 = vmatprep.mubr.bf16.mxu0 %v4305_v1  ;;  %3833 = vmatprep.mubr.msk.bf16.mxu1 %vm4307_vm0, %v4306_v36 }
 0x88f   :  { %2366 = vmatpush1.bf16.msra.mxu0 %v5167_v2  ;;  %3820 = vmatpush3.bf16.msra.mxu1 %v5244_v17 }
 0x890   :  { %2367 = vmatprep.subr.bf16.mxu0 %v5174_v3  ;;  %3821 = vmatprep.subr.bf16.mxu1 %v4306_v36 }
 0x893   :  { %2368 = vmatpush1.bf16.msra.mxu0 %v5179_v10  ;;  %3822 = vmatpush3.bf16.msra.mxu1 %v5260_v52 }
 0x894   :  { %2369 = vmatprep.subr.bf16.mxu0 %v5186_v53  ;;  %3823 = vmatprep.subr.bf16.mxu1 %v4306_v36 }
 0x897   :  { %2370 = vmatpush1.bf16.msra.mxu0 %v5191_v22  ;;  %3824 = vmatpush3.bf16.msra.mxu1 %v5267_v20 }
 0x898   :  { %2371 = vmatprep.subr.bf16.mxu0 %v5198_v11  ;;  %3825 = vmatprep.subr.bf16.mxu1 %v4306_v36 }
 0x89b   :  { %2372 = vmatpush1.bf16.msra.mxu0 %v5203_v6  ;;  %3826 = vmatpush3.bf16.msra.mxu1 %v5274_v5 }
 0x89c   :  { %2373 = vmatprep.subr.bf16.mxu0 %v5210_v9  ;;  %3827 = vmatprep.subr.bf16.mxu1 %v4306_v36 }
 0x89f   :  { %2374 = vmatpush1.bf16.msra.mxu0 %v5215_v12  ;;  %3828 = vmatpush3.bf16.msra.mxu1 %v5281_v59 }
 0x8a0   :  { %2375 = vmatprep.subr.bf16.mxu0 %v5222_v13  ;;  %3829 = vmatprep.subr.bf16.mxu1 %v4306_v36 }
 0x8a3   :  { %2376 = vmatpush1.bf16.msra.mxu0 %v5232_v51  ;;  %3830 = vmatpush3.bf16.msra.mxu1 %v5288_v47 }
 0x8a4   :  { %2377 = vmatprep.subr.bf16.mxu0 %v5237_v46  ;;  %3831 = vmatprep.subr.bf16.mxu1 %v4306_v36 }
 0x8a7   :  { %2378 = vmatpush1.bf16.msra.mxu0 %v5251_v49  ;;  %3832 = vmatpush3.bf16.msra.mxu1 %v5295_v30 }
 0x8a8   :  { %2478 = vmatprep.subr.bf16.mxu0 %v5150_v63  ;;  %3837 = vmatprep.subr.bf16.mxu1 %v4306_v36 }
 0x955   :  { %v1881_v40 = vpop.f32.mrb[60].mxu0  ;;  %v3795_v41 = vpop.f32.mrb[44].mxu1 }
 0x956   :  { %v1882_v25 = vadd.f32 %v1881_v40, %v5308_v14  ;;  %v1949_v44 = vadd.f32 %v3795_v41, %v5312_v61  ;;  %v1883_v45 = vpop.f32.mrb[61].mxu0  ;;  %v1940_v19 = vpop.f32.mrb[45].mxu1 }
 0x957   :  { %v1884_v26 = vadd.f32 %v1883_v45, %v5316_v31  ;;  %v1941_v27 = vadd.f32 %v1940_v19, %v5312_v61  ;;  %v1885_v18 = vpop.f32.mrb[62].mxu0  ;;  %v3796_v21 = vpop.f32.mrb[46].mxu1 }
 0x958   :  { %v3418_v16 = vpack.c.bf16 %v1949_v44, %v1949_v44  ;;  %v1886_v23 = vadd.f32 %v1885_v18, %v5308_v14  ;;  %v1952_v28 = vadd.f32 %v3796_v21, %v5312_v61  ;;  %v1887_v62 = vpop.f32.mrb[63].mxu0  ;;  %v1943_v35 = vpop.f32.mrb[47].mxu1  ;;  %v2330_v14 = vunpack.c.l.bf16 %v5324_v29  ;;  %v5413_v29 = vld [vmem:[%s5846_s6 + $0x1] ss:$0 sm:$0xff]  ;;  %v2119_v21 = vld [vmem:[#allocation4 + $0x8] sm:$0xf] }
 0x959   :  { %v5402_v54 = vpack.c.bf16 %v1884_v26, %v1882_v25  ;;  %v3414_v32 = vpack.c.bf16 %v1941_v27, %v1941_v27  ;;  %v1888_v48 = vadd.f32 %v1887_v62, %v5316_v31  ;;  %v1944_v58 = vadd.f32 %v1943_v35, %v5312_v61 }
 0x95a   :  { %2072 = vst [vmem:[#allocation4 + $0x50] sm:$0xf] %v3418_v16  ;;  %v3420_v33 = vpack.c.bf16 %v1952_v28, %v1952_v28  ;;  %v2351_v62 = vunpack.c.l.bf16 %v2119_v21  ;;  %v5462_v21 = vld [vmem:[#allocation4 + $0x14] ss:$12 sps:$4 sm:$0xff]  }
 0x95b   :  { %2068 = vst [vmem:[#allocation4 + $0x38] sm:$0xf] %v3414_v32  ;;  %v5406_v38 = vpack.c.bf16 %v1888_v48, %v1886_v23  ;;  %v3416_v7 = vpack.c.bf16 %v1944_v58, %v1944_v58 }
 0x95c   :  { %2074 = vst [vmem:[#allocation4 + $0x5c] sm:$0xf] %v3420_v33 }
 0x95d   :  { %2073 = vst [vmem:[#allocation4 + $0x54] sm:$0xff] %v5406_v38  ;;  %2070 = vst [vmem:[#allocation4 + $0x44] sm:$0xf] %v3416_v7  ;;  %v2283_v34 = vpop.f32.mrb[64].mxu0  ;;  %v2324_v60 = vpop.f32.mrb[48].mxu1 }
 0x95e   :  { %v2331_v55 = vadd.f32 %v2330_v14, %v2283_v34  ;;  %v2285_v39 = vpop.f32.mrb[65].mxu0  ;;  %v3815_v31 = vpop.f32.mrb[49].mxu1  ;;  %v2349_v18 = vadd.f32 %v5413_v29, %v2324_v60  ;;  %v2444_v34 = vunpack.c.l.bf16 %v5328_v42 }
 0x95f   :  { %v2342_v40 = vadd.f32 %v2341_v37, %v2285_v39  ;;  %v2287_v61 = vpop.f32.mrb[66].mxu0  ;;  %v2327_v41 = vpop.f32.mrb[50].mxu1 }
 0x960   :  { %v3366_v25 = vmul.f32 -1.442695, %v2331_v55  ;;  %v2288_v44 = vpop.f32.mrb[67].mxu0  ;;  %v3816_v45 = vpop.f32.mrb[51].mxu1 }
 0x961   :  { %v3367_v19 = vmul.f32 -1.442695, %v2342_v40 }
 0x962   :  { %4176 = vpow2.f32 %v3366_v25 }
 0x963   :  { %4178 = vpow2.f32 %v3367_v19 }
 0x96c   :  { %v4177_v26 = vpop.eup %4176 }
 0x96d   :  { %v2335_v27 = vadd.f32 1.0, %v4177_v26  ;;  %v4179_v16 = vpop.eup %4178 }
 0x96e   :  { %v2346_v35 = vadd.f32 1.0, %v4179_v16 }
 0x96f   :  { %4180 = vrcp.f32 %v2335_v27 }
 0x979   :  { %v4181_v23 = vpop.eup %4180 }
 0x97a   :  { %v2350_v28 = vmul.f32 %v4181_v23, %v2349_v18 }
 0x97c   :  { %v2352_v43 = vadd.f32 %v2351_v62, %v2350_v28  ;;  %v2465_v62 = vunpack.c.l.bf16 %v5462_v21 }
 0x97e   :  { %4182 = vtanh.f32 %v2352_v43 }
 0x97f   :  { %4184 = vrcp.f32 %v2346_v35 }
 0x988   :  { %v4183_v32 = vpop.eup %4182 }
 0x989   :  { %v2354_v48 = vsub.f32 %v5354_v8, %v4183_v32  ;;  %v4185_v58 = vpop.eup %4184  ;;  %v2453_v8 = vrot.slane %v5328_v42, 4 }
 0x98b   :  { %v2355_v33 = vmul.f32 %v4185_v58, %v2354_v48  ;;  %v2455_v55 = vunpack.c.l.bf16 %v2453_v8 }
 0x98d   :  { %v5417_v7 = vadd.f32 %v4183_v32, %v2355_v33 }
 0x98f   :  { %2358 = vst [vmem:[%s5850_s8] sm:$0xff] %v5417_v7  ;;  %v2362_v14 = vpack.c.bf16 %v5417_v7, %v5417_v7 }
 0x991   :  { %2396 = vmatmul.mubr.bf16.vlgmr.msra.gmra.mrb[68].mxu0 %v2362_v14  ;;  %3834 = vmatmul.mubr.bf16.vlgmr.msra.gmra.mrb[52].mxu1 %v2362_v14 }
 0x992   :  { %2479 = vmatpush1.bf16.msra.mxu0 %v5155_v0  ;;  %3838 = vmatpush3.bf16.msra.mxu1 %v5227_v15 }
 0x993   :  { %2480 = vmatprep.subr.bf16.mxu0 %v5162_v24  ;;  %3839 = vmatprep.subr.bf16.mxu1 %v4306_v36 }
 0x994   :  { %2510 = vmatprep.mubr.bf16.mxu0 %v4305_v1  ;;  %3853 = vmatprep.mubr.msk.bf16.mxu1 %vm4307_vm0, %v4306_v36 }
 0x996   :  { %2481 = vmatpush1.bf16.msra.mxu0 %v5167_v2  ;;  %3840 = vmatpush3.bf16.msra.mxu1 %v5244_v17 }
 0x997   :  { %2482 = vmatprep.subr.bf16.mxu0 %v5174_v3  ;;  %3841 = vmatprep.subr.bf16.mxu1 %v4306_v36 }
 0x99a   :  { %2483 = vmatpush1.bf16.msra.mxu0 %v5179_v10  ;;  %3842 = vmatpush3.bf16.msra.mxu1 %v5260_v52 }
 0x99b   :  { %2484 = vmatprep.subr.bf16.mxu0 %v5186_v53  ;;  %3843 = vmatprep.subr.bf16.mxu1 %v4306_v36 }
 0x99e   :  { %2485 = vmatpush1.bf16.msra.mxu0 %v5191_v22  ;;  %3844 = vmatpush3.bf16.msra.mxu1 %v5267_v20 }
 0x99f   :  { %2486 = vmatprep.subr.bf16.mxu0 %v5198_v11  ;;  %3845 = vmatprep.subr.bf16.mxu1 %v4306_v36 }
 0x9a2   :  { %2487 = vmatpush1.bf16.msra.mxu0 %v5203_v6  ;;  %3846 = vmatpush3.bf16.msra.mxu1 %v5274_v5 }
 0x9a3   :  { %2488 = vmatprep.subr.bf16.mxu0 %v5210_v9  ;;  %3847 = vmatprep.subr.bf16.mxu1 %v4306_v36 }
 0x9a6   :  { %2489 = vmatpush1.bf16.msra.mxu0 %v5215_v12  ;;  %3848 = vmatpush3.bf16.msra.mxu1 %v5281_v59 }
 0x9a7   :  { %2490 = vmatprep.subr.bf16.mxu0 %v5222_v13  ;;  %3849 = vmatprep.subr.bf16.mxu1 %v4306_v36 }
 0x9aa   :  { %2491 = vmatpush1.bf16.msra.mxu0 %v5232_v51  ;;  %3850 = vmatpush3.bf16.msra.mxu1 %v5288_v47 }
 0x9ab   :  { %2492 = vmatprep.subr.bf16.mxu0 %v5237_v46  ;;  %3851 = vmatprep.subr.bf16.mxu1 %v4306_v36 }
 0x9ae   :  { %2493 = vmatpush1.bf16.msra.mxu0 %v5251_v49  ;;  %3852 = vmatpush3.bf16.msra.mxu1 %v5295_v30 }
 0x9af   :  { %2593 = vmatprep.subr.bf16.mxu0 %v5150_v63  ;;  %3857 = vmatprep.subr.bf16.mxu1 %v4306_v36 }
 0xa64   :  { %v2397_v37 = vpop.f32.mrb[68].mxu0  ;;  %v2438_v60 = vpop.f32.mrb[52].mxu1 }
 0xa65   :  { %v2445_v39 = vadd.f32 %v2444_v34, %v2397_v37  ;;  %v2399_v31 = vpop.f32.mrb[69].mxu0  ;;  %v3835_v40 = vpop.f32.mrb[53].mxu1  ;;  %v2463_v16 = vadd.f32 %v5413_v29, %v2438_v60  ;;  %v2559_v34 = vunpack.c.l.bf16 %v5334_v4 }
 0xa66   :  { %v2456_v61 = vadd.f32 %v2455_v55, %v2399_v31  ;;  %v2401_v41 = vpop.f32.mrb[70].mxu0  ;;  %v2441_v25 = vpop.f32.mrb[54].mxu1 }
 0xa67   :  { %v3368_v44 = vmul.f32 -1.442695, %v2445_v39  ;;  %v2402_v45 = vpop.f32.mrb[71].mxu0  ;;  %v3836_v19 = vpop.f32.mrb[55].mxu1 }
 0xa68   :  { %v3369_v26 = vmul.f32 -1.442695, %v2456_v61 }
 0xa69   :  { %4186 = vpow2.f32 %v3368_v44 }
 0xa6a   :  { %4188 = vpow2.f32 %v3369_v26 }
 0xa73   :  { %v4187_v27 = vpop.eup %4186 }
 0xa74   :  { %v2449_v18 = vadd.f32 1.0, %v4187_v27  ;;  %v4189_v42 = vpop.eup %4188 }
 0xa75   :  { %v2460_v43 = vadd.f32 1.0, %v4189_v42 }
 0xa76   :  { %4190 = vrcp.f32 %v2449_v18 }
 0xa80   :  { %v4191_v23 = vpop.eup %4190 }
 0xa81   :  { %v2464_v28 = vmul.f32 %v4191_v23, %v2463_v16 }
 0xa83   :  { %v2466_v35 = vadd.f32 %v2465_v62, %v2464_v28  ;;  %v2580_v28 = vunpack.c.h.bf16 %v5462_v21  ;;  %v2683_v21 = vrot.slane %v5337_v56, 4 }
 0xa85   :  { %4192 = vtanh.f32 %v2466_v35 }
 0xa86   :  { %4194 = vrcp.f32 %v2460_v43 }
 0xa8f   :  { %v4193_v32 = vpop.eup %4192 }
 0xa90   :  { %v2468_v48 = vsub.f32 %v5417_v7, %v4193_v32  ;;  %v4195_v58 = vpop.eup %4194  ;;  %v2568_v7 = vrot.slane %v5334_v4, 4 }
 0xa92   :  { %v2469_v33 = vmul.f32 %v4195_v58, %v2468_v48  ;;  %v2570_v55 = vunpack.c.l.bf16 %v2568_v7 }
 0xa94   :  { %v5467_v14 = vadd.f32 %v4193_v32, %v2469_v33 }
 0xa96   :  { %3370 = vst [vmem:[%s5850_s8 + $0x8] sm:$0xff] %v5467_v14  ;;  %v2477_v8 = vpack.c.bf16 %v5467_v14, %v5467_v14 }
 0xa98   :  { %2511 = vmatmul.mubr.bf16.vlgmr.msra.gmra.mrb[72].mxu0 %v2477_v8  ;;  %3854 = vmatmul.mubr.bf16.vlgmr.msra.gmra.mrb[56].mxu1 %v2477_v8 }
 0xa99   :  { %2594 = vmatpush1.bf16.msra.mxu0 %v5155_v0  ;;  %3858 = vmatpush3.bf16.msra.mxu1 %v5227_v15 }
 0xa9a   :  { %2595 = vmatprep.subr.bf16.mxu0 %v5162_v24  ;;  %3859 = vmatprep.subr.bf16.mxu1 %v4306_v36 }
 0xa9b   :  { %2625 = vmatprep.mubr.bf16.mxu0 %v4305_v1  ;;  %3873 = vmatprep.mubr.msk.bf16.mxu1 %vm4307_vm0, %v4306_v36 }
 0xa9d   :  { %2596 = vmatpush1.bf16.msra.mxu0 %v5167_v2  ;;  %3860 = vmatpush3.bf16.msra.mxu1 %v5244_v17 }
 0xa9e   :  { %2597 = vmatprep.subr.bf16.mxu0 %v5174_v3  ;;  %3861 = vmatprep.subr.bf16.mxu1 %v4306_v36 }
 0xaa1   :  { %2598 = vmatpush1.bf16.msra.mxu0 %v5179_v10  ;;  %3862 = vmatpush3.bf16.msra.mxu1 %v5260_v52 }
 0xaa2   :  { %2599 = vmatprep.subr.bf16.mxu0 %v5186_v53  ;;  %3863 = vmatprep.subr.bf16.mxu1 %v4306_v36 }
 0xaa5   :  { %2600 = vmatpush1.bf16.msra.mxu0 %v5191_v22  ;;  %3864 = vmatpush3.bf16.msra.mxu1 %v5267_v20 }
 0xaa6   :  { %2601 = vmatprep.subr.bf16.mxu0 %v5198_v11  ;;  %3865 = vmatprep.subr.bf16.mxu1 %v4306_v36 }
 0xaa9   :  { %2602 = vmatpush1.bf16.msra.mxu0 %v5203_v6  ;;  %3866 = vmatpush3.bf16.msra.mxu1 %v5274_v5 }
 0xaaa   :  { %2603 = vmatprep.subr.bf16.mxu0 %v5210_v9  ;;  %3867 = vmatprep.subr.bf16.mxu1 %v4306_v36 }
 0xaad   :  { %2604 = vmatpush1.bf16.msra.mxu0 %v5215_v12  ;;  %3868 = vmatpush3.bf16.msra.mxu1 %v5281_v59 }
 0xaae   :  { %2605 = vmatprep.subr.bf16.mxu0 %v5222_v13  ;;  %3869 = vmatprep.subr.bf16.mxu1 %v4306_v36 }
 0xab1   :  { %2606 = vmatpush1.bf16.msra.mxu0 %v5232_v51  ;;  %3870 = vmatpush3.bf16.msra.mxu1 %v5288_v47 }
 0xab2   :  { %2607 = vmatprep.subr.bf16.mxu0 %v5237_v46  ;;  %3871 = vmatprep.subr.bf16.mxu1 %v4306_v36 }
 0xab5   :  { %2608 = vmatpush1.bf16.msra.mxu0 %v5251_v49  ;;  %3872 = vmatpush3.bf16.msra.mxu1 %v5295_v30 }
 0xab6   :  { %2708 = vmatprep.subr.bf16.mxu0 %v5150_v63  ;;  %3877 = vmatprep.subr.bf16.mxu1 %v4306_v36 }
 0xb6b   :  { %v2512_v37 = vpop.f32.mrb[72].mxu0  ;;  %v2553_v60 = vpop.f32.mrb[56].mxu1 }
 0xb6c   :  { %v2560_v39 = vadd.f32 %v2559_v34, %v2512_v37  ;;  %v2514_v31 = vpop.f32.mrb[73].mxu0  ;;  %v3855_v40 = vpop.f32.mrb[57].mxu1  ;;  %v2578_v4 = vadd.f32 %v5413_v29, %v2553_v60  ;;  %v2685_v37 = vunpack.c.l.bf16 %v2683_v21 }
 0xb6d   :  { %v2571_v61 = vadd.f32 %v2570_v55, %v2514_v31  ;;  %v2516_v41 = vpop.f32.mrb[74].mxu0  ;;  %v2556_v25 = vpop.f32.mrb[58].mxu1 }
 0xb6e   :  { %v3371_v44 = vmul.f32 -1.442695, %v2560_v39  ;;  %v2517_v45 = vpop.f32.mrb[75].mxu0  ;;  %v3856_v19 = vpop.f32.mrb[59].mxu1 }
 0xb6f   :  { %v3372_v26 = vmul.f32 -1.442695, %v2571_v61 }
 0xb70   :  { %4196 = vpow2.f32 %v3371_v44 }
 0xb71   :  { %4198 = vpow2.f32 %v3372_v26  ;;  %v5560_v26 = vld [vmem:[#allocation4 + $0x2c] ss:$12 sps:$4 sm:$0xff]  }
 0xb7a   :  { %v4197_v27 = vpop.eup %4196 }
 0xb7b   :  { %v2564_v18 = vadd.f32 1.0, %v4197_v27  ;;  %v4199_v42 = vpop.eup %4198 }
 0xb7c   :  { %v2575_v35 = vadd.f32 1.0, %v4199_v42 }
 0xb7d   :  { %4200 = vrcp.f32 %v2564_v18 }
 0xb87   :  { %v4201_v16 = vpop.eup %4200 }
 0xb88   :  { %v2579_v23 = vmul.f32 %v4201_v16, %v2578_v4  ;;  %v2695_v4 = vunpack.c.l.bf16 %v5560_v26 }
 0xb8a   :  { %v2581_v62 = vadd.f32 %v2580_v28, %v2579_v23 }
 0xb8c   :  { %4202 = vtanh.f32 %v2581_v62 }
 0xb8d   :  { %4204 = vrcp.f32 %v2575_v35 }
 0xb96   :  { %v4203_v43 = vpop.eup %4202 }
 0xb97   :  { %v2583_v32 = vsub.f32 %v5467_v14, %v4203_v43  ;;  %v4205_v48 = vpop.eup %4204  ;;  %v2674_v14 = vunpack.c.l.bf16 %v5337_v56 }
 0xb99   :  { %v2584_v58 = vmul.f32 %v4205_v48, %v2583_v32 }
 0xb9b   :  { %v5515_v33 = vadd.f32 %v4203_v43, %v2584_v58 }
 0xb9d   :  { %3373 = vst [vmem:[%s5850_s8 + $0x10] sm:$0xff] %v5515_v33  ;;  %v2592_v8 = vpack.c.bf16 %v5515_v33, %v5515_v33 }
 0xb9f   :  { %2626 = vmatmul.mubr.bf16.vlgmr.msra.gmra.mrb[76].mxu0 %v2592_v8  ;;  %3874 = vmatmul.mubr.bf16.vlgmr.msra.gmra.mrb[60].mxu1 %v2592_v8 }
 0xba0   :  { %2709 = vmatpush1.bf16.msra.mxu0 %v5155_v0  ;;  %3878 = vmatpush3.bf16.msra.mxu1 %v5227_v15 }
 0xba1   :  { %2710 = vmatprep.subr.bf16.mxu0 %v5162_v24  ;;  %3879 = vmatprep.subr.bf16.mxu1 %v4306_v36 }
 0xba2   :  { %2740 = vmatprep.mubr.bf16.mxu0 %v4305_v1  ;;  %3893 = vmatprep.mubr.msk.bf16.mxu1 %vm4307_vm0, %v4306_v36 }
 0xba4   :  { %2711 = vmatpush1.bf16.msra.mxu0 %v5167_v2  ;;  %3880 = vmatpush3.bf16.msra.mxu1 %v5244_v17 }
 0xba5   :  { %2712 = vmatprep.subr.bf16.mxu0 %v5174_v3  ;;  %3881 = vmatprep.subr.bf16.mxu1 %v4306_v36 }
 0xba8   :  { %2713 = vmatpush1.bf16.msra.mxu0 %v5179_v10  ;;  %3882 = vmatpush3.bf16.msra.mxu1 %v5260_v52 }
 0xba9   :  { %2714 = vmatprep.subr.bf16.mxu0 %v5186_v53  ;;  %3883 = vmatprep.subr.bf16.mxu1 %v4306_v36 }
 0xbac   :  { %2715 = vmatpush1.bf16.msra.mxu0 %v5191_v22  ;;  %3884 = vmatpush3.bf16.msra.mxu1 %v5267_v20 }
 0xbad   :  { %2716 = vmatprep.subr.bf16.mxu0 %v5198_v11  ;;  %3885 = vmatprep.subr.bf16.mxu1 %v4306_v36 }
 0xbb0   :  { %2717 = vmatpush1.bf16.msra.mxu0 %v5203_v6  ;;  %3886 = vmatpush3.bf16.msra.mxu1 %v5274_v5 }
 0xbb1   :  { %2718 = vmatprep.subr.bf16.mxu0 %v5210_v9  ;;  %3887 = vmatprep.subr.bf16.mxu1 %v4306_v36 }
 0xbb4   :  { %2719 = vmatpush1.bf16.msra.mxu0 %v5215_v12  ;;  %3888 = vmatpush3.bf16.msra.mxu1 %v5281_v59 }
 0xbb5   :  { %2720 = vmatprep.subr.bf16.mxu0 %v5222_v13  ;;  %3889 = vmatprep.subr.bf16.mxu1 %v4306_v36 }
 0xbb8   :  { %2721 = vmatpush1.bf16.msra.mxu0 %v5232_v51  ;;  %3890 = vmatpush3.bf16.msra.mxu1 %v5288_v47 }
 0xbb9   :  { %2722 = vmatprep.subr.bf16.mxu0 %v5237_v46  ;;  %3891 = vmatprep.subr.bf16.mxu1 %v4306_v36 }
 0xbbc   :  { %2723 = vmatpush1.bf16.msra.mxu0 %v5251_v49  ;;  %3892 = vmatpush3.bf16.msra.mxu1 %v5295_v30 }
 0xbbd   :  { %2823 = vmatprep.subr.bf16.mxu0 %v5150_v63  ;;  %3897 = vmatprep.subr.bf16.mxu1 %v4306_v36 }
 0xc72   :  { %v2627_v7 = vpop.f32.mrb[76].mxu0  ;;  %v2668_v34 = vpop.f32.mrb[60].mxu1 }
 0xc73   :  { %v2675_v60 = vadd.f32 %v2674_v14, %v2627_v7  ;;  %v2629_v55 = vpop.f32.mrb[77].mxu0  ;;  %v3875_v39 = vpop.f32.mrb[61].mxu1  ;;  %v2693_v27 = vadd.f32 %v5413_v29, %v2668_v34 }
 0xc74   :  { %v2686_v31 = vadd.f32 %v2685_v37, %v2629_v55  ;;  %v2631_v40 = vpop.f32.mrb[78].mxu0  ;;  %v2671_v61 = vpop.f32.mrb[62].mxu1  ;;  %v5629_v37 = vld [vmem:[%s5843_s5 + $0xc0] ss:$12 sps:$4 sm:$0xff]   ;;  %v5641_v55 = vld [vmem:[%s5843_s5 + $0xdc] ss:$12 sps:$4 sm:$0xff]  }
 0xc75   :  { %v3374_v41 = vmul.f32 -1.442695, %v2675_v60  ;;  %v2632_v25 = vpop.f32.mrb[79].mxu0  ;;  %v3876_v44 = vpop.f32.mrb[63].mxu1  ;;  %v5635_v60 = vld [vmem:[%s5843_s5 + $0xc8] ss:$12 sps:$4 sm:$0xff]  }
 0xc76   :  { %v3375_v63 = vmul.f32 -1.442695, %v2686_v31  ;;  %v5651_v39 = vld [vmem:[%s5843_s5 + $0xd8] ss:$12 sps:$4 sm:$0xff]   ;;  %v5657_v31 = vld [vmem:[%s5843_s5 + $0xe0] ss:$12 sps:$4 sm:$0xff]  }
 0xc77   :  { %4206 = vpow2.f32 %v3374_v41  ;;  %v5663_v40 = vld [vmem:[%s5843_s5 + $0xf4] ss:$12 sps:$4 sm:$0xff]   ;;  %v5670_v61 = vld [vmem:[%s5843_s5 + $0xf0] ss:$12 sps:$4 sm:$0xff]   ;;  %v5676_v41 = vld [vmem:[%s5843_s5 + $0xf8] ss:$12 sps:$4 sm:$0xff]  }
 0xc78   :  { %4208 = vpow2.f32 %v3375_v63  ;;  %v5682_v25 = vld [vmem:[%s5843_s5 + $0x10c] ss:$12 sps:$4 sm:$0xff]   ;;  %v5689_v44 = vld [vmem:[%s5843_s5 + $0x108] ss:$12 sps:$4 sm:$0xff]   ;;  %v5695_v63 = vld [vmem:[%s5843_s5 + $0x110] ss:$12 sps:$4 sm:$0xff]  }
 0xc81   :  { %v4207_v45 = vpop.eup %4206 }
 0xc82   :  { %v2679_v19 = vadd.f32 1.0, %v4207_v45  ;;  %v4209_v56 = vpop.eup %4208  ;;  %v5701_v45 = vld [vmem:[%s5843_s5 + $0x124] ss:$12 sps:$4 sm:$0xff]  }
 0xc83   :  { %v2690_v23 = vadd.f32 1.0, %v4209_v56  ;;  %v5720_v56 = vld [vmem:[%s5843_s5 + $0x13c] ss:$12 sps:$4 sm:$0xff]  }
 0xc84   :  { %4210 = vrcp.f32 %v2679_v19  ;;  %v5708_v19 = vld [vmem:[%s5843_s5 + $0x120] ss:$12 sps:$4 sm:$0xff]  }
 0xc8e   :  { %v4211_v18 = vpop.eup %4210 }
 0xc8f   :  { %v2694_v42 = vmul.f32 %v4211_v18, %v2693_v27  ;;  %v5727_v27 = vld [vmem:[%s5843_s5 + $0x138] ss:$12 sps:$4 sm:$0xff]   ;;  %v5733_v18 = vld [vmem:[%s5843_s5 + $0x140] ss:$12 sps:$4 sm:$0xff]  }
 0xc91   :  { %v2696_v16 = vadd.f32 %v2695_v4, %v2694_v42  ;;  %v5739_v42 = vld [vmem:[%s5843_s5 + $0x154] ss:$12 sps:$4 sm:$0xff]   ;;  %v5746_v4 = vld [vmem:[%s5843_s5 + $0x150] ss:$12 sps:$4 sm:$0xff]  }
 0xc93   :  { %4212 = vtanh.f32 %v2696_v16  ;;  %v5752_v16 = vld [vmem:[%s5843_s5 + $0x158] ss:$12 sps:$4 sm:$0xff]  }
 0xc94   :  { %4214 = vrcp.f32 %v2690_v23  ;;  %v5758_v23 = vld [vmem:[%s5843_s5 + $0x16c] ss:$12 sps:$4 sm:$0xff]  }
 0xc9d   :  { %v4213_v28 = vpop.eup %4212 }
 0xc9e   :  { %v2698_v62 = vsub.f32 %v5515_v33, %v4213_v28  ;;  %v4215_v35 = vpop.eup %4214 }
 0xca0   :  { %v2699_v43 = vmul.f32 %v4215_v35, %v2698_v62  ;;  %v5771_v62 = vld [vmem:[%s5843_s5 + $0x170] ss:$12 sps:$4 sm:$0xff]   ;;  %v2913_v35 = vrot.slane %v5348_v50, 4 }
 0xca2   :  { %v5565_v32 = vadd.f32 %v4213_v28, %v2699_v43  ;;  %v5765_v28 = vld [vmem:[%s5843_s5 + $0x168] ss:$12 sps:$4 sm:$0xff]   ;;  %v2904_v43 = vunpack.c.l.bf16 %v5348_v50 }
 0xca4   :  { %3376 = vst [vmem:[%s5850_s8 + $0x18] sm:$0xff] %v5565_v32  ;;  %v2707_v48 = vpack.c.bf16 %v5565_v32, %v5565_v32 }
 0xca6   :  { %2741 = vmatmul.mubr.bf16.vlgmr.msra.gmra.mrb[80].mxu0 %v2707_v48  ;;  %3894 = vmatmul.mubr.bf16.vlgmr.msra.gmra.mrb[64].mxu1 %v2707_v48 }
 0xca7   :  { %2824 = vmatpush1.bf16.msra.mxu0 %v5155_v0  ;;  %3898 = vmatpush3.bf16.msra.mxu1 %v5227_v15  ;;  %v5609_v0 = vld [vmem:[%s5843_s5 + $0xc4] ss:$12 sps:$4 sm:$0xff]  }
 0xca8   :  { %2825 = vmatprep.subr.bf16.mxu0 %v5162_v24  ;;  %3899 = vmatprep.subr.bf16.mxu1 %v4306_v36  ;;  %v2798_v24 = vrot.slane %v5345_v57, 4 }
 0xca9   :  { %2855 = vmatprep.mubr.bf16.mxu0 %v4305_v1  ;;  %3913 = vmatprep.mubr.msk.bf16.mxu1 %vm4307_vm0, %v4306_v36 }
 0xcab   :  { %2826 = vmatpush1.bf16.msra.mxu0 %v5167_v2  ;;  %3900 = vmatpush3.bf16.msra.mxu1 %v5244_v17  ;;  %v2789_v2 = vunpack.c.l.bf16 %v5345_v57 }
 0xcac   :  { %2827 = vmatprep.subr.bf16.mxu0 %v5174_v3  ;;  %3901 = vmatprep.subr.bf16.mxu1 %v4306_v36 }
 0xcaf   :  { %2828 = vmatpush1.bf16.msra.mxu0 %v5179_v10  ;;  %3902 = vmatpush3.bf16.msra.mxu1 %v5260_v52 }
 0xcb0   :  { %2829 = vmatprep.subr.bf16.mxu0 %v5186_v53  ;;  %3903 = vmatprep.subr.bf16.mxu1 %v4306_v36  ;;  %v2800_v53 = vunpack.c.l.bf16 %v2798_v24  ;;  %v2915_v24 = vunpack.c.l.bf16 %v2913_v35  ;;  %v3134_v35 = vunpack.c.l.bf16 %v5406_v38 }
 0xcb3   :  { %2830 = vmatpush1.bf16.msra.mxu0 %v5191_v22  ;;  %3904 = vmatpush3.bf16.msra.mxu1 %v5267_v20 }
 0xcb4   :  { %2831 = vmatprep.subr.bf16.mxu0 %v5198_v11  ;;  %3905 = vmatprep.subr.bf16.mxu1 %v4306_v36 }
 0xcb7   :  { %2832 = vmatpush1.bf16.msra.mxu0 %v5203_v6  ;;  %3906 = vmatpush3.bf16.msra.mxu1 %v5274_v5 }
 0xcb8   :  { %2833 = vmatprep.subr.bf16.mxu0 %v5210_v9  ;;  %3907 = vmatprep.subr.bf16.mxu1 %v4306_v36 }
 0xcbb   :  { %2834 = vmatpush1.bf16.msra.mxu0 %v5215_v12  ;;  %3908 = vmatpush3.bf16.msra.mxu1 %v5281_v59 }
 0xcbc   :  { %2835 = vmatprep.subr.bf16.mxu0 %v5222_v13  ;;  %3909 = vmatprep.subr.bf16.mxu1 %v4306_v36 }
 0xcbf   :  { %2836 = vmatpush1.bf16.msra.mxu0 %v5232_v51  ;;  %3910 = vmatpush3.bf16.msra.mxu1 %v5288_v47 }
 0xcc0   :  { %2837 = vmatprep.subr.bf16.mxu0 %v5237_v46  ;;  %3911 = vmatprep.subr.bf16.mxu1 %v4306_v36 }
 0xcc3   :  { %2838 = vmatpush1.bf16.msra.mxu0 %v5251_v49  ;;  %3912 = vmatpush3.bf16.msra.mxu1 %v5295_v30  ;;  %v2810_v30 = vunpack.c.h.bf16 %v5560_v26  ;;  %v5714_v26 = vld [vmem:[%s5843_s5 + $0x128] ss:$12 sps:$4 sm:$0xff]  }
 0xcc4   :  { %2938 = vmatprep.subr.bf16.mxu0 %v5609_v0  ;;  %3917 = vmatprep.subr.bf16.mxu1 %v4306_v36 }
 0xd79   :  { %v2742_v3 = vpop.f32.mrb[80].mxu0  ;;  %v2783_v10 = vpop.f32.mrb[64].mxu1 }
 0xd7a   :  { %v2790_v22 = vadd.f32 %v2789_v2, %v2742_v3  ;;  %v2744_v11 = vpop.f32.mrb[81].mxu0  ;;  %v3895_v6 = vpop.f32.mrb[65].mxu1  ;;  %v2808_v5 = vadd.f32 %v5413_v29, %v2783_v10 }
 0xd7b   :  { %v2801_v9 = vadd.f32 %v2800_v53, %v2744_v11  ;;  %v2746_v12 = vpop.f32.mrb[82].mxu0  ;;  %v2786_v13 = vpop.f32.mrb[66].mxu1 }
 0xd7c   :  { %v3377_v15 = vmul.f32 -1.442695, %v2790_v22  ;;  %v2747_v51 = vpop.f32.mrb[83].mxu0  ;;  %v3896_v46 = vpop.f32.mrb[67].mxu1 }
 0xd7d   :  { %v3378_v17 = vmul.f32 -1.442695, %v2801_v9  ;;  %v5778_v51 = vld [vmem:[#allocation4 + $0x44] ss:$12 sps:$4 sm:$0xff]  }
 0xd7e   :  { %4216 = vpow2.f32 %v3377_v15 }
 0xd7f   :  { %4218 = vpow2.f32 %v3378_v17 }
 0xd88   :  { %v4217_v49 = vpop.eup %4216 }
 0xd89   :  { %v2794_v52 = vadd.f32 1.0, %v4217_v49  ;;  %v4219_v20 = vpop.eup %4218 }
 0xd8a   :  { %v2805_v58 = vadd.f32 1.0, %v4219_v20 }
 0xd8b   :  { %4220 = vrcp.f32 %v2794_v52  ;;  %v2925_v52 = vunpack.c.l.bf16 %v5778_v51 }
 0xd95   :  { %v4221_v59 = vpop.eup %4220 }
 0xd96   :  { %v2809_v47 = vmul.f32 %v4221_v59, %v2808_v5 }
 0xd98   :  { %v2811_v57 = vadd.f32 %v2810_v30, %v2809_v47 }
 0xd9a   :  { %4222 = vtanh.f32 %v2811_v57 }
 0xd9b   :  { %4224 = vrcp.f32 %v2805_v58 }
 0xda4   :  { %v4223_v33 = vpop.eup %4222 }
 0xda5   :  { %v2813_v8 = vsub.f32 %v5565_v32, %v4223_v33  ;;  %v4225_v21 = vpop.eup %4224 }
 0xda7   :  { %v2814_v14 = vmul.f32 %v4225_v21, %v2813_v8  ;;  %v3019_v8 = vunpack.c.l.bf16 %v5402_v54 }
 0xda9   :  { %v5618_v7 = vadd.f32 %v4223_v33, %v2814_v14 }
 0xdab   :  { %3379 = vst [vmem:[%s5850_s8 + $0x20] sm:$0xff] %v5618_v7  ;;  %v2822_v34 = vpack.c.bf16 %v5618_v7, %v5618_v7 }
 0xdad   :  { %2856 = vmatmul.mubr.bf16.vlgmr.msra.gmra.mrb[84].mxu0 %v2822_v34  ;;  %3914 = vmatmul.mubr.bf16.vlgmr.msra.gmra.mrb[68].mxu1 %v2822_v34 }
 0xdae   :  { %2939 = vmatpush1.bf16.msra.mxu0 %v5629_v37  ;;  %3918 = vmatpush3.bf16.msra.mxu1 %v5635_v60 }
 0xdaf   :  { %2940 = vmatprep.subr.bf16.mxu0 %v5641_v55  ;;  %3919 = vmatprep.subr.bf16.mxu1 %v4306_v36 }
 0xdb0   :  { %2970 = vmatprep.mubr.bf16.mxu0 %v4305_v1  ;;  %3933 = vmatprep.mubr.msk.bf16.mxu1 %vm4307_vm0, %v4306_v36 }
 0xdb2   :  { %2941 = vmatpush1.bf16.msra.mxu0 %v5651_v39  ;;  %3920 = vmatpush3.bf16.msra.mxu1 %v5657_v31 }
 0xdb3   :  { %2942 = vmatprep.subr.bf16.mxu0 %v5663_v40  ;;  %3921 = vmatprep.subr.bf16.mxu1 %v4306_v36 }
 0xdb6   :  { %2943 = vmatpush1.bf16.msra.mxu0 %v5670_v61  ;;  %3922 = vmatpush3.bf16.msra.mxu1 %v5676_v41 }
 0xdb7   :  { %2944 = vmatprep.subr.bf16.mxu0 %v5682_v25  ;;  %3923 = vmatprep.subr.bf16.mxu1 %v4306_v36 }
 0xdba   :  { %2945 = vmatpush1.bf16.msra.mxu0 %v5689_v44  ;;  %3924 = vmatpush3.bf16.msra.mxu1 %v5695_v63 }
 0xdbb   :  { %2946 = vmatprep.subr.bf16.mxu0 %v5701_v45  ;;  %3925 = vmatprep.subr.bf16.mxu1 %v4306_v36 }
 0xdbe   :  { %2947 = vmatpush1.bf16.msra.mxu0 %v5708_v19  ;;  %3926 = vmatpush3.bf16.msra.mxu1 %v5714_v26 }
 0xdbf   :  { %2948 = vmatprep.subr.bf16.mxu0 %v5720_v56  ;;  %3927 = vmatprep.subr.bf16.mxu1 %v4306_v36 }
 0xdc2   :  { %2949 = vmatpush1.bf16.msra.mxu0 %v5727_v27  ;;  %3928 = vmatpush3.bf16.msra.mxu1 %v5733_v18 }
 0xdc3   :  { %2950 = vmatprep.subr.bf16.mxu0 %v5739_v42  ;;  %3929 = vmatprep.subr.bf16.mxu1 %v4306_v36 }
 0xdc6   :  { %2951 = vmatpush1.bf16.msra.mxu0 %v5746_v4  ;;  %3930 = vmatpush3.bf16.msra.mxu1 %v5752_v16 }
 0xdc7   :  { %2952 = vmatprep.subr.bf16.mxu0 %v5758_v23  ;;  %3931 = vmatprep.subr.bf16.mxu1 %v4306_v36 }
 0xdca   :  { %2953 = vmatpush1.bf16.msra.mxu0 %v5765_v28  ;;  %3932 = vmatpush3.bf16.msra.mxu1 %v5771_v62 }
 0xdcb   :  { %3053 = vmatprep.subr.bf16.mxu0 %v5609_v0  ;;  %3937 = vmatprep.subr.bf16.mxu1 %v4306_v36 }
 0xe80   :  { %v2857_v32 = vpop.f32.mrb[84].mxu0  ;;  %v2898_v48 = vpop.f32.mrb[68].mxu1 }
 0xe81   :  { %v2905_v2 = vadd.f32 %v2904_v43, %v2857_v32  ;;  %v2859_v3 = vpop.f32.mrb[85].mxu0  ;;  %v3915_v10 = vpop.f32.mrb[69].mxu1  ;;  %v2923_v46 = vadd.f32 %v5413_v29, %v2898_v48 }
 0xe82   :  { %v2916_v53 = vadd.f32 %v2915_v24, %v2859_v3  ;;  %v2861_v22 = vpop.f32.mrb[86].mxu0  ;;  %v2901_v11 = vpop.f32.mrb[70].mxu1 }
 0xe83   :  { %v3380_v6 = vmul.f32 -1.442695, %v2905_v2  ;;  %v2862_v9 = vpop.f32.mrb[87].mxu0  ;;  %v3916_v12 = vpop.f32.mrb[71].mxu1 }
 0xe84   :  { %v3381_v0 = vmul.f32 -1.442695, %v2916_v53 }
 0xe85   :  { %4226 = vpow2.f32 %v3380_v6 }
 0xe86   :  { %4228 = vpow2.f32 %v3381_v0 }
 0xe8f   :  { %v4227_v13 = vpop.eup %4226 }
 0xe90   :  { %v2909_v15 = vadd.f32 1.0, %v4227_v13  ;;  %v4229_v50 = vpop.eup %4228 }
 0xe91   :  { %v2920_v5 = vadd.f32 1.0, %v4229_v50 }
 0xe92   :  { %4230 = vrcp.f32 %v2909_v15  ;;  %v3051_v15 = vld [vmem:[#allocation4 + $0x5c] sm:$0xf] }
 0xe9c   :  { %v4231_v17 = vpop.eup %4230 }
 0xe9d   :  { %v2924_v49 = vmul.f32 %v4231_v17, %v2923_v46  ;;  %v3155_v17 = vunpack.c.l.bf16 %v3051_v15 }
 0xe9f   :  { %v2926_v20 = vadd.f32 %v2925_v52, %v2924_v49 }
 0xea1   :  { %4232 = vtanh.f32 %v2926_v20 }
 0xea2   :  { %4234 = vrcp.f32 %v2920_v5 }
 0xeab   :  { %v4233_v59 = vpop.eup %4232 }
 0xeac   :  { %v2928_v47 = vsub.f32 %v5618_v7, %v4233_v59  ;;  %v4235_v30 = vpop.eup %4234 }
 0xeae   :  { %v2929_v57 = vmul.f32 %v4235_v30, %v2928_v47 }
 0xeb0   :  { %v5783_v58 = vadd.f32 %v4233_v59, %v2929_v57 }
 0xeb2   :  { %3382 = vst [vmem:[%s5850_s8 + $0x28] sm:$0xff] %v5783_v58  ;;  %v2937_v33 = vpack.c.bf16 %v5783_v58, %v5783_v58 }
 0xeb4   :  { %2971 = vmatmul.mubr.bf16.vlgmr.msra.gmra.mrb[88].mxu0 %v2937_v33  ;;  %3934 = vmatmul.mubr.bf16.vlgmr.msra.gmra.mrb[72].mxu1 %v2937_v33 }
 0xeb5   :  { %3054 = vmatpush1.bf16.msra.mxu0 %v5629_v37  ;;  %3938 = vmatpush3.bf16.msra.mxu1 %v5635_v60 }
 0xeb6   :  { %3055 = vmatprep.subr.bf16.mxu0 %v5641_v55  ;;  %3939 = vmatprep.subr.bf16.mxu1 %v4306_v36 }
 0xeb7   :  { %3085 = vmatprep.mubr.bf16.mxu0 %v4305_v1  ;;  %3953 = vmatprep.mubr.msk.bf16.mxu1 %vm4307_vm0, %v4306_v36  ;;  %v3028_v1 = vrot.slane %v5402_v54, 4 }
 0xeb9   :  { %3056 = vmatpush1.bf16.msra.mxu0 %v5651_v39  ;;  %3940 = vmatpush3.bf16.msra.mxu1 %v5657_v31  ;;  %v3030_v7 = vunpack.c.l.bf16 %v3028_v1 }
 0xeba   :  { %3057 = vmatprep.subr.bf16.mxu0 %v5663_v40  ;;  %3941 = vmatprep.subr.bf16.mxu1 %v4306_v36 }
 0xebd   :  { %3058 = vmatpush1.bf16.msra.mxu0 %v5670_v61  ;;  %3942 = vmatpush3.bf16.msra.mxu1 %v5676_v41 }
 0xebe   :  { %3059 = vmatprep.subr.bf16.mxu0 %v5682_v25  ;;  %3943 = vmatprep.subr.bf16.mxu1 %v4306_v36 }
 0xec1   :  { %3060 = vmatpush1.bf16.msra.mxu0 %v5689_v44  ;;  %3944 = vmatpush3.bf16.msra.mxu1 %v5695_v63 }
 0xec2   :  { %3061 = vmatprep.subr.bf16.mxu0 %v5701_v45  ;;  %3945 = vmatprep.subr.bf16.mxu1 %v4306_v36 }
 0xec5   :  { %3062 = vmatpush1.bf16.msra.mxu0 %v5708_v19  ;;  %3946 = vmatpush3.bf16.msra.mxu1 %v5714_v26  ;;  %v3040_v26 = vunpack.c.h.bf16 %v5778_v51 }
 0xec6   :  { %3063 = vmatprep.subr.bf16.mxu0 %v5720_v56  ;;  %3947 = vmatprep.subr.bf16.mxu1 %v4306_v36 }
 0xec9   :  { %3064 = vmatpush1.bf16.msra.mxu0 %v5727_v27  ;;  %3948 = vmatpush3.bf16.msra.mxu1 %v5733_v18 }
 0xeca   :  { %3065 = vmatprep.subr.bf16.mxu0 %v5739_v42  ;;  %3949 = vmatprep.subr.bf16.mxu1 %v4306_v36 }
 0xecd   :  { %3066 = vmatpush1.bf16.msra.mxu0 %v5746_v4  ;;  %3950 = vmatpush3.bf16.msra.mxu1 %v5752_v16 }
 0xece   :  { %3067 = vmatprep.subr.bf16.mxu0 %v5758_v23  ;;  %3951 = vmatprep.subr.bf16.mxu1 %v4306_v36 }
 0xed1   :  { %3068 = vmatpush1.bf16.msra.mxu0 %v5765_v28  ;;  %3952 = vmatpush3.bf16.msra.mxu1 %v5771_v62  ;;  %v3143_v62 = vrot.slane %v5406_v38, 4 }
 0xed3   :  { %v3145_v48 = vunpack.c.l.bf16 %v3143_v62 }
 0xf87   :  { %v2972_v21 = vpop.f32.mrb[88].mxu0  ;;  %v3013_v14 = vpop.f32.mrb[72].mxu1 }
 0xf88   :  { %v3020_v34 = vadd.f32 %v3019_v8, %v2972_v21  ;;  %v2974_v37 = vpop.f32.mrb[89].mxu0  ;;  %v3935_v60 = vpop.f32.mrb[73].mxu1  ;;  %v3038_v54 = vadd.f32 %v5413_v29, %v3013_v14 }
 0xf89   :  { %v3031_v55 = vadd.f32 %v3030_v7, %v2974_v37  ;;  %v2976_v39 = vpop.f32.mrb[90].mxu0  ;;  %v3016_v31 = vpop.f32.mrb[74].mxu1 }
 0xf8a   :  { %v3383_v40 = vmul.f32 -1.442695, %v3020_v34  ;;  %v2977_v61 = vpop.f32.mrb[91].mxu0  ;;  %v3936_v36 = vpop.f32.mrb[75].mxu1 }
 0xf8b   :  { %v3384_v41 = vmul.f32 -1.442695, %v3031_v55 }
 0xf8c   :  { %4236 = vpow2.f32 %v3383_v40 }
 0xf8d   :  { %4238 = vpow2.f32 %v3384_v41 }
 0xf96   :  { %v4237_v25 = vpop.eup %4236 }
 0xf97   :  { %v3024_v44 = vadd.f32 1.0, %v4237_v25  ;;  %v4239_v63 = vpop.eup %4238 }
 0xf98   :  { %v3035_v27 = vadd.f32 1.0, %v4239_v63 }
 0xf99   :  { %4240 = vrcp.f32 %v3024_v44 }
 0xfa3   :  { %v4241_v45 = vpop.eup %4240 }
 0xfa4   :  { %v3039_v19 = vmul.f32 %v4241_v45, %v3038_v54 }
 0xfa6   :  { %v3041_v56 = vadd.f32 %v3040_v26, %v3039_v19 }
 0xfa8   :  { %4242 = vtanh.f32 %v3041_v56 }
 0xfa9   :  { %4244 = vrcp.f32 %v3035_v27 }
 0xfb2   :  { %v4243_v18 = vpop.eup %4242 }
 0xfb3   :  { %v3043_v42 = vsub.f32 %v5783_v58, %v4243_v18  ;;  %v4245_v4 = vpop.eup %4244 }
 0xfb5   :  { %v3044_v16 = vmul.f32 %v4245_v4, %v3043_v42 }
 0xfb7   :  { %v3045_v23 = vadd.f32 %v4243_v18, %v3044_v16 }
 0xfb9   :  { %3385 = vst [vmem:[%s5850_s8 + $0x30] sm:$0xff] %v3045_v23  ;;  %v3052_v28 = vpack.c.bf16 %v3045_v23, %v3045_v23 }
 0xfbb   :  { %3086 = vmatmul.mubr.bf16.vlgmr.msra.gmra.mrb[92].mxu0 %v3052_v28  ;;  %3954 = vmatmul.mubr.bf16.vlgmr.msra.gmra.mrb[76].mxu1 %v3052_v28 }
0x108e   :  { %v3087_v43 = vpop.f32.mrb[92].mxu0  ;;  %v3128_v32 = vpop.f32.mrb[76].mxu1 }
0x108f   :  { %v3135_v24 = vadd.f32 %v3134_v35, %v3087_v43  ;;  %v3089_v2 = vpop.f32.mrb[93].mxu0  ;;  %v3955_v3 = vpop.f32.mrb[77].mxu1  ;;  %v3153_v51 = vadd.f32 %v5413_v29, %v3128_v32 }
0x1090   :  { %v3146_v10 = vadd.f32 %v3145_v48, %v3089_v2  ;;  %v3091_v53 = vpop.f32.mrb[94].mxu0  ;;  %v3131_v22 = vpop.f32.mrb[78].mxu1 }
0x1091   :  { %v3386_v11 = vmul.f32 -1.442695, %v3135_v24  ;;  %v3092_v6 = vpop.f32.mrb[95].mxu0  ;;  %v3956_v9 = vpop.f32.mrb[79].mxu1 }
0x1092   :  { %v3387_v12 = vmul.f32 -1.442695, %v3146_v10 }
0x1093   :  { %4246 = vpow2.f32 %v3386_v11 }
0x1094   :  { %4248 = vpow2.f32 %v3387_v12 }
0x109d   :  { %v4247_v0 = vpop.eup %4246 }
0x109e   :  { %v3139_v13 = vadd.f32 1.0, %v4247_v0  ;;  %v4249_v38 = vpop.eup %4248 }
0x109f   :  { %v3150_v52 = vadd.f32 1.0, %v4249_v38 }
0x10a0   :  { %4250 = vrcp.f32 %v3139_v13 }
0x10aa   :  { %v4251_v50 = vpop.eup %4250 }
0x10ab   :  { %v3154_v46 = vmul.f32 %v4251_v50, %v3153_v51 }
0x10ad   :  { %v3156_v49 = vadd.f32 %v3155_v17, %v3154_v46 }
0x10af   :  { %4252 = vtanh.f32 %v3156_v49 }
0x10b0   :  { %4254 = vrcp.f32 %v3150_v52 }
0x10b9   :  { %v4253_v20 = vpop.eup %4252 }
0x10ba   :  { %v3158_v5 = vsub.f32 %v3045_v23, %v4253_v20  ;;  %v4255_v59 = vpop.eup %4254 }
0x10bc   :  { %v3159_v47 = vmul.f32 %v4255_v59, %v3158_v5 }
0x10be   :  { %v3160_v30 = vadd.f32 %v4253_v20, %v3159_v47 }
0x10c0   :  { %3388 = vst [vmem:[%s5850_s8 + $0x38] sm:$0xff] %v3160_v30  ;;  %3170 = vst [vmem:[%s5849_s9 + $0x8] sm:$0xff] %v3160_v30 }

</bundles_post_ra>
